<compile_context>
chip_gen: v7x
topology: tpu7x:2x2x1
jax: 0.10.0
libtpu: 0.0.40
codegen_flags: <defaults>
</compile_context>

<pallas_src>
import functools

import jax
import jax.numpy as jnp
from jax.experimental import pallas as pl
from jax.experimental.pallas import tpu as pltpu

VMEM_LIMIT = 32 * 1024 * 1024  # v7x has 64 MiB/TC physical; 32 MiB is safe everywhere.


# ----------------------------------------------------------------------------
# Pallas kernel 1: y = x @ w + b, optional fused ReLU (used for each conv layer
# after im2col).  bf16 inputs, f32 accumulation, bf16 output.
# ----------------------------------------------------------------------------
def _mm_bias_kernel(x_ref, w_ref, b_ref, o_ref, *, relu):
    acc = jnp.dot(x_ref[...], w_ref[...], preferred_element_type=jnp.float32)
    acc = acc + b_ref[...]
    if relu:
        acc = jnp.maximum(acc, 0.0)
    o_ref[...] = acc.astype(o_ref.dtype)


def pallas_matmul_bias(x, w, b, *, relu, out_dtype=jnp.bfloat16):
    """x:(M,K) bf16, w:(K,N) bf16, b:(1,N) f32 -> (M,N) out_dtype."""
    M, K = x.shape
    N = w.shape[1]
    # Split large-M matmuls (conv1: M=800) across a parallel grid so both v7x
    # TensorCores get work; tiny matmuls stay a single full-VMEM block.
    gm = 2 if (M % 16 == 0 and M >= 256) else 1
    tm = M // gm
    return pl.pallas_call(
        functools.partial(_mm_bias_kernel, relu=relu),
        out_shape=jax.ShapeDtypeStruct((M, N), out_dtype),
        grid_spec=pltpu.PrefetchScalarGridSpec(
            num_scalar_prefetch=0,
            grid=(gm,),
            in_specs=[
                pl.BlockSpec((tm, K), lambda i: (i, 0)),
                pl.BlockSpec((K, N), lambda i: (0, 0)),
                pl.BlockSpec((1, N), lambda i: (0, 0)),
            ],
            out_specs=pl.BlockSpec((tm, N), lambda i: (i, 0)),
        ),
        compiler_params=pltpu.CompilerParams(
            dimension_semantics=("parallel",),
            vmem_limit_bytes=VMEM_LIMIT,
        ),
    )(x, w, b)


# ----------------------------------------------------------------------------
# Pallas kernel 2: the whole dense head fused in one launch.
#   f = relu(xf@W1+b1); f = relu(f@W2+b2); f = f@W3+b3
#   v = x2@W4+b4;       v = v@W5+b5
#   logits = f@W6f + v@W6v + b6        (== cat([f,v])@W6 without the concat)
# Small weights are zero-padded to 128-wide at init; the padded lanes stay zero
# through the chain and are sliced off before the final store.
# ----------------------------------------------------------------------------
def _dense_head_kernel(xf_ref, x2_ref, w1_ref, b1_ref, w2_ref, b2_ref,
                       w3_ref, b3_ref, w4_ref, b4_ref, w5_ref, b5_ref,
                       w6f_ref, w6v_ref, b6_ref, o_ref):
    f = jnp.dot(xf_ref[...], w1_ref[...], preferred_element_type=jnp.float32) + b1_ref[...]
    f = jnp.maximum(f, 0.0).astype(jnp.bfloat16)
    f = jnp.dot(f, w2_ref[...], preferred_element_type=jnp.float32) + b2_ref[...]
    f = jnp.maximum(f, 0.0).astype(jnp.bfloat16)
    f = (jnp.dot(f, w3_ref[...], preferred_element_type=jnp.float32) + b3_ref[...]
         ).astype(jnp.bfloat16)
    v = (jnp.dot(x2_ref[...], w4_ref[...], preferred_element_type=jnp.float32) + b4_ref[...]
         ).astype(jnp.bfloat16)
    v = (jnp.dot(v, w5_ref[...], preferred_element_type=jnp.float32) + b5_ref[...]
         ).astype(jnp.bfloat16)
    logits = (jnp.dot(f, w6f_ref[...], preferred_element_type=jnp.float32)
              + jnp.dot(v, w6v_ref[...], preferred_element_type=jnp.float32)
              + b6_ref[...])
    o_ref[...] = logits[:, :o_ref.shape[1]].astype(o_ref.dtype)


def dense_head(packed, xf, x2p):
    w1, b1 = packed["dense1"]
    w2, b2 = packed["dense2"]
    w3, b3 = packed["dense3"]
    w4, b4 = packed["inputdense1"]
    w5, b5 = packed["inputdense2"]
    w6f, w6v, b6 = packed["catdense"]
    args = (xf, x2p, w1, b1, w2, b2, w3, b3, w4, b4, w5, b5, w6f, w6v, b6)
    B = xf.shape[0]
    return pl.pallas_call(
        _dense_head_kernel,
        out_shape=jax.ShapeDtypeStruct((B, 21), jnp.float32),
        grid_spec=pltpu.PrefetchScalarGridSpec(
            num_scalar_prefetch=0,
            grid=(1,),
            in_specs=[pl.BlockSpec(a.shape, lambda i: (0, 0)) for a in args],
            out_specs=pl.BlockSpec((B, 21), lambda i: (0, 0)),
        ),
        compiler_params=pltpu.CompilerParams(
            dimension_semantics=("arbitrary",),
            vmem_limit_bytes=VMEM_LIMIT,
        ),
    )(*args)


# ----------------------------------------------------------------------------
# Conv layer = lightweight NHWC im2col glue (fused by jit) + Pallas matmul.
# Weights are pre-packed at init to (kh*kw*Cin, Cout) bf16; K index = (i*kw+j)*Cin+c.
# ----------------------------------------------------------------------------
def conv_block(x, wpack, bias, *, ksize, stride, pad, relu):
    B, H, W, C = x.shape
    kh, kw = ksize
    sh, sw = stride
    ph, pw = pad
    Ho = (H + 2 * ph - kh) // sh + 1
    Wo = (W + 2 * pw - kw) // sw + 1
    xp = jnp.pad(x, ((0, 0), (ph, ph), (pw, pw), (0, 0))) if (ph or pw) else x
    patches = [xp[:, i:i + (Ho - 1) * sh + 1:sh, j:j + (Wo - 1) * sw + 1:sw, :]
               for i in range(kh) for j in range(kw)]
    cols = jnp.stack(patches, axis=3).reshape(B * Ho * Wo, kh * kw * C)
    y = pallas_matmul_bias(cols, wpack, bias, relu=relu)      # (B*Ho*Wo, Cout) bf16
    return y.reshape(B, Ho, Wo, -1)
    # TODO(synk): patch extraction stays as XLA glue; a fully in-kernel
    # (shifted-slice accumulate) conv would need Mosaic-unfriendly 4D reshapes.


# ----------------------------------------------------------------------------
# Deterministic parameter init (PyTorch-default-like, in torch layouts).
# ----------------------------------------------------------------------------
def init_params(key):
    def dense(k, out_f, in_f):
        k1, k2 = jax.random.split(k)
        bound = 1.0 / float(in_f) ** 0.5
        w = jax.random.uniform(k1, (out_f, in_f), jnp.float32, -bound, bound)
        b = jax.random.uniform(k2, (out_f,), jnp.float32, -bound, bound)
        return w, b

    def conv(k, out_c, in_c, kh, kw):
        k1, k2 = jax.random.split(k)
        bound = 1.0 / float(in_c * kh * kw) ** 0.5
        w = jax.random.uniform(k1, (out_c, in_c, kh, kw), jnp.float32, -bound, bound)
        b = jax.random.uniform(k2, (out_c,), jnp.float32, -bound, bound)
        return w, b

    ks = jax.random.split(key, 10)
    return dict(
        conv1=conv(ks[0], 16, 4, 8, 8),
        conv2=conv(ks[1], 32, 16, 4, 4),
        conv3=conv(ks[2], 64, 32, 3, 3),
        conv4=conv(ks[3], 128, 64, 3, 3),
        dense1=dense(ks[4], 512, 3200),
        dense2=dense(ks[5], 128, 512),
        dense3=dense(ks[6], 21, 128),
        inputdense1=dense(ks[7], 16, 4),
        inputdense2=dense(ks[8], 21, 16),
        catdense=dense(ks[9], 21, 42),
    )


# ----------------------------------------------------------------------------
# One-time weight packing (hoisted out of the hot path).
# ----------------------------------------------------------------------------
def prepare_params(p):
    def conv_pack(w, b):
        o, i, kh, kw = w.shape
        wp = jnp.transpose(w, (2, 3, 1, 0)).reshape(kh * kw * i, o).astype(jnp.bfloat16)
        return wp, b.reshape(1, o).astype(jnp.float32)

    def lin_pack(w, b, kpad=None, npad=None):
        wt = jnp.transpose(w).astype(jnp.bfloat16)          # (in, out)
        K, N = wt.shape
        kp = K if kpad is None else kpad
        np_ = N if npad is None else npad
        wp = jnp.zeros((kp, np_), jnp.bfloat16).at[:K, :N].set(wt)
        bp = jnp.zeros((1, np_), jnp.float32).at[0, :N].set(b.astype(jnp.float32))
        return wp, bp

    packed = {name: conv_pack(*p[name]) for name in ("conv1", "conv2", "conv3", "conv4")}

    # Dense1: fold torch's channel-major flatten (c,h,w) into the weight rows so
    # the NHWC conv4 output (h,w,c) can be flattened with NO runtime transpose.
    w1, b1 = p["dense1"]                                     # (512, 3200)
    C, H, W = 128, 5, 5
    w1t = jnp.transpose(w1).reshape(C, H, W, 512)            # rows indexed (c,h,w)
    w1p = jnp.transpose(w1t, (1, 2, 0, 3)).reshape(H * W * C, 512).astype(jnp.bfloat16)
    packed["dense1"] = (w1p, b1.reshape(1, 512).astype(jnp.float32))

    packed["dense2"] = lin_pack(*p["dense2"])                       # (512,128)
    packed["dense3"] = lin_pack(*p["dense3"], npad=128)             # (128,128)
    packed["inputdense1"] = lin_pack(*p["inputdense1"], kpad=128, npad=128)
    packed["inputdense2"] = lin_pack(*p["inputdense2"], kpad=128, npad=128)

    # catDense split into the f- and v- halves (avoids an in-kernel concat).
    w6, b6 = p["catdense"]                                   # (21, 42)
    w6f = jnp.zeros((128, 128), jnp.bfloat16).at[:21, :21].set(
        jnp.transpose(w6[:, :21]).astype(jnp.bfloat16))
    w6v = jnp.zeros((128, 128), jnp.bfloat16).at[:21, :21].set(
        jnp.transpose(w6[:, 21:]).astype(jnp.bfloat16))
    b6p = jnp.zeros((1, 128), jnp.float32).at[0, :21].set(b6.astype(jnp.float32))
    packed["catdense"] = (w6f, w6v, b6p)
    return packed


# ----------------------------------------------------------------------------
# Forward pass matching Data_dim_reduce.forward(x1, x2).
# ----------------------------------------------------------------------------
def data_dim_reduce_forward(packed, x1, x2):
    x = jnp.transpose(x1, (0, 2, 3, 1)).astype(jnp.bfloat16)     # single NCHW->NHWC
    x = conv_block(x, *packed["conv1"], ksize=(8, 8), stride=(4, 4), pad=(0, 0), relu=True)
    x = conv_block(x, *packed["conv2"], ksize=(4, 4), stride=(4, 4), pad=(1, 1), relu=True)
    x = conv_block(x, *packed["conv3"], ksize=(3, 3), stride=(1, 1), pad=(1, 1), relu=True)
    x = conv_block(x, *packed["conv4"], ksize=(3, 3), stride=(1, 1), pad=(1, 1), relu=False)
    B = x.shape[0]
    xf = x.reshape(B, -1)           # NHWC flatten; dense1 rows already permuted to match
    x2p = jnp.zeros((B, 128), jnp.bfloat16).at[:, : x2.shape[1]].set(x2.astype(jnp.bfloat16))
    return dense_head(packed, xf, x2p)                            # (B, 21) f32


if __name__ == "__main__":
    key = jax.random.PRNGKey(0)
    kp, kx1, kx2 = jax.random.split(key, 3)
    params = init_params(kp)
    packed = prepare_params(params)

    # Dense1 in_features=3200 == 128*5*5 forces an 84x84 spatial input
    # (conv1 84->20, conv2 20->5, conv3/conv4 keep 5x5).
    x1 = jax.random.normal(kx1, (2, 4, 84, 84), jnp.float32)
    x2 = jax.random.normal(kx2, (2, 4), jnp.float32)

    fwd = jax.jit(data_dim_reduce_forward)
    logits = fwd(packed, x1, x2)
    jax.block_until_ready(logits)
    assert logits.shape == (2, 21), logits.shape
    print("KERNEL_OK")
</pallas_src>

<mosaic_0001>
module attributes {stable_mosaic.version = 11 : i64} {
  func.func @_mm_bias_kernel(%arg0: i32, %arg1: memref<400x256xbf16, #tpu.memory_space<vmem>>, %arg2: memref<256x16xbf16, #tpu.memory_space<vmem>>, %arg3: memref<1x16xf32, #tpu.memory_space<vmem>>, %arg4: memref<400x16xbf16, #tpu.memory_space<vmem>>) attributes {dimension_semantics = [#tpu.dimension_semantics<parallel>], iteration_bounds = array<i64: 2>, scalar_prefetch = 0 : i64, scratch_operands = 0 : i64, tpu.core_type = #tpu.core_type<tc>, window_params = [{transform_indices = @transform_0, window_bounds = array<i64: 400, 256>}, {pipeline_mode = #tpu.pipeline_mode<synchronous>, transform_indices = @transform_1, window_bounds = array<i64: 256, 16>}, {pipeline_mode = #tpu.pipeline_mode<synchronous>, transform_indices = @transform_2, window_bounds = array<i64: 1, 16>}, {transform_indices = @transform_3, window_bounds = array<i64: 400, 16>}]} {
    %c0 = arith.constant 0 : index
    %c0_0 = arith.constant 0 : index
    %0 = vector.load %arg1[%c0, %c0_0] : memref<400x256xbf16, #tpu.memory_space<vmem>>, vector<400x256xbf16>
    %c0_1 = arith.constant 0 : index
    %c0_2 = arith.constant 0 : index
    %1 = vector.load %arg2[%c0_1, %c0_2] : memref<256x16xbf16, #tpu.memory_space<vmem>>, vector<256x16xbf16>
    %cst = arith.constant dense<0.000000e+00> : vector<400x16xf32>
    %2 = tpu.matmul %0, %1, %cst {dimension_numbers = #tpu.dot_dimension_numbers<[1], [0], [0], [1], [0, 0, 1, 1], [], []>} : vector<400x256xbf16>, vector<256x16xbf16>, vector<400x16xf32> -> vector<400x16xf32>
    %c0_3 = arith.constant 0 : index
    %c0_4 = arith.constant 0 : index
    %3 = vector.load %arg3[%c0_3, %c0_4] : memref<1x16xf32, #tpu.memory_space<vmem>>, vector<1x16xf32>
    %4 = vector.broadcast %3 : vector<1x16xf32> to vector<400x16xf32>
    %5 = arith.addf %2, %4 : vector<400x16xf32>
    %cst_5 = arith.constant 0.000000e+00 : f32
    %6 = vector.broadcast %cst_5 : f32 to vector<400x16xf32>
    %7 = arith.maximumf %5, %6 : vector<400x16xf32>
    %8 = arith.truncf %7 : vector<400x16xf32> to vector<400x16xbf16>
    %c0_6 = arith.constant 0 : index
    %c0_7 = arith.constant 0 : index
    %9 = vector.load %arg4[%c0_6, %c0_7] : memref<400x16xbf16, #tpu.memory_space<vmem>>, vector<400x16xbf16>
    tpu.vector_store %arg4[%c0_6, %c0_7], %8 {strides = array<i32>} : memref<400x16xbf16, #tpu.memory_space<vmem>>, vector<400x16xbf16>,
    return
  }
  func.func @transform_0(%arg0: i32) -> (i32, i32) {
    %c0_i32 = arith.constant 0 : i32
    %c0_i32_0 = arith.constant 0 : i32
    return %arg0, %c0_i32 : i32, i32
  }
  func.func @transform_1(%arg0: i32) -> (i32, i32) {
    %c0_i32 = arith.constant 0 : i32
    %c0_i32_0 = arith.constant 0 : i32
    %c0_i32_1 = arith.constant 0 : i32
    return %c0_i32, %c0_i32_0 : i32, i32
  }
  func.func @transform_2(%arg0: i32) -> (i32, i32) {
    %c0_i32 = arith.constant 0 : i32
    %c0_i32_0 = arith.constant 0 : i32
    %c0_i32_1 = arith.constant 0 : i32
    return %c0_i32, %c0_i32_0 : i32, i32
  }
  func.func @transform_3(%arg0: i32) -> (i32, i32) {
    %c0_i32 = arith.constant 0 : i32
    %c0_i32_0 = arith.constant 0 : i32
    return %arg0, %c0_i32 : i32, i32
  }
}

module attributes {stable_mosaic.version = 11 : i64} {
  func.func @_mm_bias_kernel(%arg0: i32, %arg1: memref<50x256xbf16, #tpu.memory_space<vmem>>, %arg2: memref<256x32xbf16, #tpu.memory_space<vmem>>, %arg3: memref<1x32xf32, #tpu.memory_space<vmem>>, %arg4: memref<50x32xbf16, #tpu.memory_space<vmem>>) attributes {dimension_semantics = [#tpu.dimension_semantics<parallel>], iteration_bounds = array<i64: 1>, scalar_prefetch = 0 : i64, scratch_operands = 0 : i64, tpu.core_type = #tpu.core_type<tc>, window_params = [{transform_indices = @transform_0, window_bounds = array<i64: 50, 256>}, {pipeline_mode = #tpu.pipeline_mode<synchronous>, transform_indices = @transform_1, window_bounds = array<i64: 256, 32>}, {pipeline_mode = #tpu.pipeline_mode<synchronous>, transform_indices = @transform_2, window_bounds = array<i64: 1, 32>}, {transform_indices = @transform_3, window_bounds = array<i64: 50, 32>}]} {
    %c0 = arith.constant 0 : index
    %c0_0 = arith.constant 0 : index
    %0 = vector.load %arg1[%c0, %c0_0] : memref<50x256xbf16, #tpu.memory_space<vmem>>, vector<50x256xbf16>
    %c0_1 = arith.constant 0 : index
    %c0_2 = arith.constant 0 : index
    %1 = vector.load %arg2[%c0_1, %c0_2] : memref<256x32xbf16, #tpu.memory_space<vmem>>, vector<256x32xbf16>
    %cst = arith.constant dense<0.000000e+00> : vector<50x32xf32>
    %2 = tpu.matmul %0, %1, %cst {dimension_numbers = #tpu.dot_dimension_numbers<[1], [0], [0], [1], [0, 0, 1, 1], [], []>} : vector<50x256xbf16>, vector<256x32xbf16>, vector<50x32xf32> -> vector<50x32xf32>
    %c0_3 = arith.constant 0 : index
    %c0_4 = arith.constant 0 : index
    %3 = vector.load %arg3[%c0_3, %c0_4] : memref<1x32xf32, #tpu.memory_space<vmem>>, vector<1x32xf32>
    %4 = vector.broadcast %3 : vector<1x32xf32> to vector<50x32xf32>
    %5 = arith.addf %2, %4 : vector<50x32xf32>
    %cst_5 = arith.constant 0.000000e+00 : f32
    %6 = vector.broadcast %cst_5 : f32 to vector<50x32xf32>
    %7 = arith.maximumf %5, %6 : vector<50x32xf32>
    %8 = arith.truncf %7 : vector<50x32xf32> to vector<50x32xbf16>
    %c0_6 = arith.constant 0 : index
    %c0_7 = arith.constant 0 : index
    %9 = vector.load %arg4[%c0_6, %c0_7] : memref<50x32xbf16, #tpu.memory_space<vmem>>, vector<50x32xbf16>
    tpu.vector_store %arg4[%c0_6, %c0_7], %8 {strides = array<i32>} : memref<50x32xbf16, #tpu.memory_space<vmem>>, vector<50x32xbf16>,
    return
  }
  func.func @transform_0(%arg0: i32) -> (i32, i32) {
    %c0_i32 = arith.constant 0 : i32
    %c0_i32_0 = arith.constant 0 : i32
    return %arg0, %c0_i32 : i32, i32
  }
  func.func @transform_1(%arg0: i32) -> (i32, i32) {
    %c0_i32 = arith.constant 0 : i32
    %c0_i32_0 = arith.constant 0 : i32
    %c0_i32_1 = arith.constant 0 : i32
    return %c0_i32, %c0_i32_0 : i32, i32
  }
  func.func @transform_2(%arg0: i32) -> (i32, i32) {
    %c0_i32 = arith.constant 0 : i32
    %c0_i32_0 = arith.constant 0 : i32
    %c0_i32_1 = arith.constant 0 : i32
    return %c0_i32, %c0_i32_0 : i32, i32
  }
  func.func @transform_3(%arg0: i32) -> (i32, i32) {
    %c0_i32 = arith.constant 0 : i32
    %c0_i32_0 = arith.constant 0 : i32
    return %arg0, %c0_i32 : i32, i32
  }
}

module attributes {stable_mosaic.version = 11 : i64} {
  func.func @_mm_bias_kernel(%arg0: i32, %arg1: memref<50x288xbf16, #tpu.memory_space<vmem>>, %arg2: memref<288x64xbf16, #tpu.memory_space<vmem>>, %arg3: memref<1x64xf32, #tpu.memory_space<vmem>>, %arg4: memref<50x64xbf16, #tpu.memory_space<vmem>>) attributes {dimension_semantics = [#tpu.dimension_semantics<parallel>], iteration_bounds = array<i64: 1>, scalar_prefetch = 0 : i64, scratch_operands = 0 : i64, tpu.core_type = #tpu.core_type<tc>, window_params = [{transform_indices = @transform_0, window_bounds = array<i64: 50, 288>}, {pipeline_mode = #tpu.pipeline_mode<synchronous>, transform_indices = @transform_1, window_bounds = array<i64: 288, 64>}, {pipeline_mode = #tpu.pipeline_mode<synchronous>, transform_indices = @transform_2, window_bounds = array<i64: 1, 64>}, {transform_indices = @transform_3, window_bounds = array<i64: 50, 64>}]} {
    %c0 = arith.constant 0 : index
    %c0_0 = arith.constant 0 : index
    %0 = vector.load %arg1[%c0, %c0_0] : memref<50x288xbf16, #tpu.memory_space<vmem>>, vector<50x288xbf16>
    %c0_1 = arith.constant 0 : index
    %c0_2 = arith.constant 0 : index
    %1 = vector.load %arg2[%c0_1, %c0_2] : memref<288x64xbf16, #tpu.memory_space<vmem>>, vector<288x64xbf16>
    %cst = arith.constant dense<0.000000e+00> : vector<50x64xf32>
    %2 = tpu.matmul %0, %1, %cst {dimension_numbers = #tpu.dot_dimension_numbers<[1], [0], [0], [1], [0, 0, 1, 1], [], []>} : vector<50x288xbf16>, vector<288x64xbf16>, vector<50x64xf32> -> vector<50x64xf32>
    %c0_3 = arith.constant 0 : index
    %c0_4 = arith.constant 0 : index
    %3 = vector.load %arg3[%c0_3, %c0_4] : memref<1x64xf32, #tpu.memory_space<vmem>>, vector<1x64xf32>
    %4 = vector.broadcast %3 : vector<1x64xf32> to vector<50x64xf32>
    %5 = arith.addf %2, %4 : vector<50x64xf32>
    %cst_5 = arith.constant 0.000000e+00 : f32
    %6 = vector.broadcast %cst_5 : f32 to vector<50x64xf32>
    %7 = arith.maximumf %5, %6 : vector<50x64xf32>
    %8 = arith.truncf %7 : vector<50x64xf32> to vector<50x64xbf16>
    %c0_6 = arith.constant 0 : index
    %c0_7 = arith.constant 0 : index
    %9 = vector.load %arg4[%c0_6, %c0_7] : memref<50x64xbf16, #tpu.memory_space<vmem>>, vector<50x64xbf16>
    tpu.vector_store %arg4[%c0_6, %c0_7], %8 {strides = array<i32>} : memref<50x64xbf16, #tpu.memory_space<vmem>>, vector<50x64xbf16>,
    return
  }
  func.func @transform_0(%arg0: i32) -> (i32, i32) {
    %c0_i32 = arith.constant 0 : i32
    %c0_i32_0 = arith.constant 0 : i32
    return %arg0, %c0_i32 : i32, i32
  }
  func.func @transform_1(%arg0: i32) -> (i32, i32) {
    %c0_i32 = arith.constant 0 : i32
    %c0_i32_0 = arith.constant 0 : i32
    %c0_i32_1 = arith.constant 0 : i32
    return %c0_i32, %c0_i32_0 : i32, i32
  }
  func.func @transform_2(%arg0: i32) -> (i32, i32) {
    %c0_i32 = arith.constant 0 : i32
    %c0_i32_0 = arith.constant 0 : i32
    %c0_i32_1 = arith.constant 0 : i32
    return %c0_i32, %c0_i32_0 : i32, i32
  }
  func.func @transform_3(%arg0: i32) -> (i32, i32) {
    %c0_i32 = arith.constant 0 : i32
    %c0_i32_0 = arith.constant 0 : i32
    return %arg0, %c0_i32 : i32, i32
  }
}

module attributes {stable_mosaic.version = 11 : i64} {
  func.func @_mm_bias_kernel(%arg0: i32, %arg1: memref<50x576xbf16, #tpu.memory_space<vmem>>, %arg2: memref<576x128xbf16, #tpu.memory_space<vmem>>, %arg3: memref<1x128xf32, #tpu.memory_space<vmem>>, %arg4: memref<50x128xbf16, #tpu.memory_space<vmem>>) attributes {dimension_semantics = [#tpu.dimension_semantics<parallel>], iteration_bounds = array<i64: 1>, scalar_prefetch = 0 : i64, scratch_operands = 0 : i64, tpu.core_type = #tpu.core_type<tc>, window_params = [{transform_indices = @transform_0, window_bounds = array<i64: 50, 576>}, {pipeline_mode = #tpu.pipeline_mode<synchronous>, transform_indices = @transform_1, window_bounds = array<i64: 576, 128>}, {pipeline_mode = #tpu.pipeline_mode<synchronous>, transform_indices = @transform_2, window_bounds = array<i64: 1, 128>}, {transform_indices = @transform_3, window_bounds = array<i64: 50, 128>}]} {
    %c0 = arith.constant 0 : index
    %c0_0 = arith.constant 0 : index
    %0 = vector.load %arg1[%c0, %c0_0] : memref<50x576xbf16, #tpu.memory_space<vmem>>, vector<50x576xbf16>
    %c0_1 = arith.constant 0 : index
    %c0_2 = arith.constant 0 : index
    %1 = vector.load %arg2[%c0_1, %c0_2] : memref<576x128xbf16, #tpu.memory_space<vmem>>, vector<576x128xbf16>
    %cst = arith.constant dense<0.000000e+00> : vector<50x128xf32>
    %2 = tpu.matmul %0, %1, %cst {dimension_numbers = #tpu.dot_dimension_numbers<[1], [0], [0], [1], [0, 0, 1, 1], [], []>} : vector<50x576xbf16>, vector<576x128xbf16>, vector<50x128xf32> -> vector<50x128xf32>
    %c0_3 = arith.constant 0 : index
    %c0_4 = arith.constant 0 : index
    %3 = vector.load %arg3[%c0_3, %c0_4] : memref<1x128xf32, #tpu.memory_space<vmem>>, vector<1x128xf32>
    %4 = vector.broadcast %3 : vector<1x128xf32> to vector<50x128xf32>
    %5 = arith.addf %2, %4 : vector<50x128xf32>
    %6 = arith.truncf %5 : vector<50x128xf32> to vector<50x128xbf16>
    %c0_5 = arith.constant 0 : index
    %c0_6 = arith.constant 0 : index
    %7 = vector.load %arg4[%c0_5, %c0_6] : memref<50x128xbf16, #tpu.memory_space<vmem>>, vector<50x128xbf16>
    tpu.vector_store %arg4[%c0_5, %c0_6], %6 {strides = array<i32>} : memref<50x128xbf16, #tpu.memory_space<vmem>>, vector<50x128xbf16>,
    return
  }
  func.func @transform_0(%arg0: i32) -> (i32, i32) {
    %c0_i32 = arith.constant 0 : i32
    %c0_i32_0 = arith.constant 0 : i32
    return %arg0, %c0_i32 : i32, i32
  }
  func.func @transform_1(%arg0: i32) -> (i32, i32) {
    %c0_i32 = arith.constant 0 : i32
    %c0_i32_0 = arith.constant 0 : i32
    %c0_i32_1 = arith.constant 0 : i32
    return %c0_i32, %c0_i32_0 : i32, i32
  }
  func.func @transform_2(%arg0: i32) -> (i32, i32) {
    %c0_i32 = arith.constant 0 : i32
    %c0_i32_0 = arith.constant 0 : i32
    %c0_i32_1 = arith.constant 0 : i32
    return %c0_i32, %c0_i32_0 : i32, i32
  }
  func.func @transform_3(%arg0: i32) -> (i32, i32) {
    %c0_i32 = arith.constant 0 : i32
    %c0_i32_0 = arith.constant 0 : i32
    return %arg0, %c0_i32 : i32, i32
  }
}

module attributes {stable_mosaic.version = 11 : i64} {
  func.func @_dense_head_kernel(%arg0: i32, %arg1: memref<2x3200xbf16, #tpu.memory_space<vmem>>, %arg2: memref<2x128xbf16, #tpu.memory_space<vmem>>, %arg3: memref<3200x512xbf16, #tpu.memory_space<vmem>>, %arg4: memref<1x512xf32, #tpu.memory_space<vmem>>, %arg5: memref<512x128xbf16, #tpu.memory_space<vmem>>, %arg6: memref<1x128xf32, #tpu.memory_space<vmem>>, %arg7: memref<128x128xbf16, #tpu.memory_space<vmem>>, %arg8: memref<1x128xf32, #tpu.memory_space<vmem>>, %arg9: memref<128x128xbf16, #tpu.memory_space<vmem>>, %arg10: memref<1x128xf32, #tpu.memory_space<vmem>>, %arg11: memref<128x128xbf16, #tpu.memory_space<vmem>>, %arg12: memref<1x128xf32, #tpu.memory_space<vmem>>, %arg13: memref<128x128xbf16, #tpu.memory_space<vmem>>, %arg14: memref<128x128xbf16, #tpu.memory_space<vmem>>, %arg15: memref<1x128xf32, #tpu.memory_space<vmem>>, %arg16: memref<2x21xf32, #tpu.memory_space<vmem>>) attributes {dimension_semantics = [#tpu.dimension_semantics<arbitrary>], iteration_bounds = array<i64: 1>, scalar_prefetch = 0 : i64, scratch_operands = 0 : i64, tpu.core_type = #tpu.core_type<tc>, window_params = [{pipeline_mode = #tpu.pipeline_mode<synchronous>, transform_indices = @transform_0, window_bounds = array<i64: 2, 3200>}, {pipeline_mode = #tpu.pipeline_mode<synchronous>, transform_indices = @transform_1, window_bounds = array<i64: 2, 128>}, {pipeline_mode = #tpu.pipeline_mode<synchronous>, transform_indices = @transform_2, window_bounds = array<i64: 3200, 512>}, {pipeline_mode = #tpu.pipeline_mode<synchronous>, transform_indices = @transform_3, window_bounds = array<i64: 1, 512>}, {pipeline_mode = #tpu.pipeline_mode<synchronous>, transform_indices = @transform_4, window_bounds = array<i64: 512, 128>}, {pipeline_mode = #tpu.pipeline_mode<synchronous>, transform_indices = @transform_5, window_bounds = array<i64: 1, 128>}, {pipeline_mode = #tpu.pipeline_mode<synchronous>, transform_indices = @transform_6, window_bounds = array<i64: 128, 128>}, {pipeline_mode = #tpu.pipeline_mode<synchronous>, transform_indices = @transform_7, window_bounds = array<i64: 1, 128>}, {pipeline_mode = #tpu.pipeline_mode<synchronous>, transform_indices = @transform_8, window_bounds = array<i64: 128, 128>}, {pipeline_mode = #tpu.pipeline_mode<synchronous>, transform_indices = @transform_9, window_bounds = array<i64: 1, 128>}, {pipeline_mode = #tpu.pipeline_mode<synchronous>, transform_indices = @transform_10, window_bounds = array<i64: 128, 128>}, {pipeline_mode = #tpu.pipeline_mode<synchronous>, transform_indices = @transform_11, window_bounds = array<i64: 1, 128>}, {pipeline_mode = #tpu.pipeline_mode<synchronous>, transform_indices = @transform_12, window_bounds = array<i64: 128, 128>}, {pipeline_mode = #tpu.pipeline_mode<synchronous>, transform_indices = @transform_13, window_bounds = array<i64: 128, 128>}, {pipeline_mode = #tpu.pipeline_mode<synchronous>, transform_indices = @transform_14, window_bounds = array<i64: 1, 128>}, {pipeline_mode = #tpu.pipeline_mode<synchronous>, transform_indices = @transform_15, window_bounds = array<i64: 2, 21>}]} {
    %c0 = arith.constant 0 : index
    %c0_0 = arith.constant 0 : index
    %0 = vector.load %arg1[%c0, %c0_0] : memref<2x3200xbf16, #tpu.memory_space<vmem>>, vector<2x3200xbf16>
    %c0_1 = arith.constant 0 : index
    %c0_2 = arith.constant 0 : index
    %1 = vector.load %arg3[%c0_1, %c0_2] : memref<3200x512xbf16, #tpu.memory_space<vmem>>, vector<3200x512xbf16>
    %cst = arith.constant dense<0.000000e+00> : vector<2x512xf32>
    %2 = tpu.matmul %0, %1, %cst {dimension_numbers = #tpu.dot_dimension_numbers<[1], [0], [0], [1], [0, 0, 1, 1], [], []>} : vector<2x3200xbf16>, vector<3200x512xbf16>, vector<2x512xf32> -> vector<2x512xf32>
    %c0_3 = arith.constant 0 : index
    %c0_4 = arith.constant 0 : index
    %3 = vector.load %arg4[%c0_3, %c0_4] : memref<1x512xf32, #tpu.memory_space<vmem>>, vector<1x512xf32>
    %4 = vector.broadcast %3 : vector<1x512xf32> to vector<2x512xf32>
    %5 = arith.addf %2, %4 : vector<2x512xf32>
    %cst_5 = arith.constant 0.000000e+00 : f32
    %6 = vector.broadcast %cst_5 : f32 to vector<2x512xf32>
    %7 = arith.maximumf %5, %6 : vector<2x512xf32>
    %8 = arith.truncf %7 : vector<2x512xf32> to vector<2x512xbf16>
    %c0_6 = arith.constant 0 : index
    %c0_7 = arith.constant 0 : index
    %9 = vector.load %arg5[%c0_6, %c0_7] : memref<512x128xbf16, #tpu.memory_space<vmem>>, vector<512x128xbf16>
    %cst_8 = arith.constant dense<0.000000e+00> : vector<2x128xf32>
    %10 = tpu.matmul %8, %9, %cst_8 {dimension_numbers = #tpu.dot_dimension_numbers<[1], [0], [0], [1], [0, 0, 1, 1], [], []>} : vector<2x512xbf16>, vector<512x128xbf16>, vector<2x128xf32> -> vector<2x128xf32>
    %c0_9 = arith.constant 0 : index
    %c0_10 = arith.constant 0 : index
    %11 = vector.load %arg6[%c0_9, %c0_10] : memref<1x128xf32, #tpu.memory_space<vmem>>, vector<1x128xf32>
    %12 = vector.broadcast %11 : vector<1x128xf32> to vector<2x128xf32>
    %13 = arith.addf %10, %12 : vector<2x128xf32>
    %cst_11 = arith.constant 0.000000e+00 : f32
    %14 = vector.broadcast %cst_11 : f32 to vector<2x128xf32>
    %15 = arith.maximumf %13, %14 : vector<2x128xf32>
    %16 = arith.truncf %15 : vector<2x128xf32> to vector<2x128xbf16>
    %c0_12 = arith.constant 0 : index
    %c0_13 = arith.constant 0 : index
    %17 = vector.load %arg7[%c0_12, %c0_13] : memref<128x128xbf16, #tpu.memory_space<vmem>>, vector<128x128xbf16>
    %cst_14 = arith.constant dense<0.000000e+00> : vector<2x128xf32>
    %18 = tpu.matmul %16, %17, %cst_14 {dimension_numbers = #tpu.dot_dimension_numbers<[1], [0], [0], [1], [0, 0, 1, 1], [], []>} : vector<2x128xbf16>, vector<128x128xbf16>, vector<2x128xf32> -> vector<2x128xf32>
    %c0_15 = arith.constant 0 : index
    %c0_16 = arith.constant 0 : index
    %19 = vector.load %arg8[%c0_15, %c0_16] : memref<1x128xf32, #tpu.memory_space<vmem>>, vector<1x128xf32>
    %20 = vector.broadcast %19 : vector<1x128xf32> to vector<2x128xf32>
    %21 = arith.addf %18, %20 : vector<2x128xf32>
    %22 = arith.truncf %21 : vector<2x128xf32> to vector<2x128xbf16>
    %c0_17 = arith.constant 0 : index
    %c0_18 = arith.constant 0 : index
    %23 = vector.load %arg2[%c0_17, %c0_18] : memref<2x128xbf16, #tpu.memory_space<vmem>>, vector<2x128xbf16>
    %c0_19 = arith.constant 0 : index
    %c0_20 = arith.constant 0 : index
    %24 = vector.load %arg9[%c0_19, %c0_20] : memref<128x128xbf16, #tpu.memory_space<vmem>>, vector<128x128xbf16>
    %cst_21 = arith.constant dense<0.000000e+00> : vector<2x128xf32>
    %25 = tpu.matmul %23, %24, %cst_21 {dimension_numbers = #tpu.dot_dimension_numbers<[1], [0], [0], [1], [0, 0, 1, 1], [], []>} : vector<2x128xbf16>, vector<128x128xbf16>, vector<2x128xf32> -> vector<2x128xf32>
    %c0_22 = arith.constant 0 : index
    %c0_23 = arith.constant 0 : index
    %26 = vector.load %arg10[%c0_22, %c0_23] : memref<1x128xf32, #tpu.memory_space<vmem>>, vector<1x128xf32>
    %27 = vector.broadcast %26 : vector<1x128xf32> to vector<2x128xf32>
    %28 = arith.addf %25, %27 : vector<2x128xf32>
    %29 = arith.truncf %28 : vector<2x128xf32> to vector<2x128xbf16>
    %c0_24 = arith.constant 0 : index
    %c0_25 = arith.constant 0 : index
    %30 = vector.load %arg11[%c0_24, %c0_25] : memref<128x128xbf16, #tpu.memory_space<vmem>>, vector<128x128xbf16>
    %cst_26 = arith.constant dense<0.000000e+00> : vector<2x128xf32>
    %31 = tpu.matmul %29, %30, %cst_26 {dimension_numbers = #tpu.dot_dimension_numbers<[1], [0], [0], [1], [0, 0, 1, 1], [], []>} : vector<2x128xbf16>, vector<128x128xbf16>, vector<2x128xf32> -> vector<2x128xf32>
    %c0_27 = arith.constant 0 : index
    %c0_28 = arith.constant 0 : index
    %32 = vector.load %arg12[%c0_27, %c0_28] : memref<1x128xf32, #tpu.memory_space<vmem>>, vector<1x128xf32>
    %33 = vector.broadcast %32 : vector<1x128xf32> to vector<2x128xf32>
    %34 = arith.addf %31, %33 : vector<2x128xf32>
    %35 = arith.truncf %34 : vector<2x128xf32> to vector<2x128xbf16>
    %c0_29 = arith.constant 0 : index
    %c0_30 = arith.constant 0 : index
    %36 = vector.load %arg13[%c0_29, %c0_30] : memref<128x128xbf16, #tpu.memory_space<vmem>>, vector<128x128xbf16>
    %cst_31 = arith.constant dense<0.000000e+00> : vector<2x128xf32>
    %37 = tpu.matmul %22, %36, %cst_31 {dimension_numbers = #tpu.dot_dimension_numbers<[1], [0], [0], [1], [0, 0, 1, 1], [], []>} : vector<2x128xbf16>, vector<128x128xbf16>, vector<2x128xf32> -> vector<2x128xf32>
    %c0_32 = arith.constant 0 : index
    %c0_33 = arith.constant 0 : index
    %38 = vector.load %arg14[%c0_32, %c0_33] : memref<128x128xbf16, #tpu.memory_space<vmem>>, vector<128x128xbf16>
    %cst_34 = arith.constant dense<0.000000e+00> : vector<2x128xf32>
    %39 = tpu.matmul %35, %38, %cst_34 {dimension_numbers = #tpu.dot_dimension_numbers<[1], [0], [0], [1], [0, 0, 1, 1], [], []>} : vector<2x128xbf16>, vector<128x128xbf16>, vector<2x128xf32> -> vector<2x128xf32>
    %40 = arith.addf %37, %39 : vector<2x128xf32>
    %c0_35 = arith.constant 0 : index
    %c0_36 = arith.constant 0 : index
    %41 = vector.load %arg15[%c0_35, %c0_36] : memref<1x128xf32, #tpu.memory_space<vmem>>, vector<1x128xf32>
    %42 = vector.broadcast %41 : vector<1x128xf32> to vector<2x128xf32>
    %43 = arith.addf %40, %42 : vector<2x128xf32>
    %44 = vector.extract_strided_slice %43 {offsets = [0, 0], sizes = [2, 21], strides = [1, 1]} : vector<2x128xf32> to vector<2x21xf32>
    %c0_37 = arith.constant 0 : index
    %c0_38 = arith.constant 0 : index
    %45 = vector.load %arg16[%c0_37, %c0_38] : memref<2x21xf32, #tpu.memory_space<vmem>>, vector<2x21xf32>
    tpu.vector_store %arg16[%c0_37, %c0_38], %44 {strides = array<i32>} : memref<2x21xf32, #tpu.memory_space<vmem>>, vector<2x21xf32>,
    return
  }
  func.func @transform_0(%arg0: i32) -> (i32, i32) {
    %c0_i32 = arith.constant 0 : i32
    %c0_i32_0 = arith.constant 0 : i32
    %c0_i32_1 = arith.constant 0 : i32
    return %c0_i32, %c0_i32_0 : i32, i32
  }
  func.func @transform_1(%arg0: i32) -> (i32, i32) {
    %c0_i32 = arith.constant 0 : i32
    %c0_i32_0 = arith.constant 0 : i32
    %c0_i32_1 = arith.constant 0 : i32
    return %c0_i32, %c0_i32_0 : i32, i32
  }
  func.func @transform_2(%arg0: i32) -> (i32, i32) {
    %c0_i32 = arith.constant 0 : i32
    %c0_i32_0 = arith.constant 0 : i32
    %c0_i32_1 = arith.constant 0 : i32
    return %c0_i32, %c0_i32_0 : i32, i32
  }
  func.func @transform_3(%arg0: i32) -> (i32, i32) {
    %c0_i32 = arith.constant 0 : i32
    %c0_i32_0 = arith.constant 0 : i32
    %c0_i32_1 = arith.constant 0 : i32
    return %c0_i32, %c0_i32_0 : i32, i32
  }
  func.func @transform_4(%arg0: i32) -> (i32, i32) {
    %c0_i32 = arith.constant 0 : i32
    %c0_i32_0 = arith.constant 0 : i32
    %c0_i32_1 = arith.constant 0 : i32
    return %c0_i32, %c0_i32_0 : i32, i32
  }
  func.func @transform_5(%arg0: i32) -> (i32, i32) {
    %c0_i32 = arith.constant 0 : i32
    %c0_i32_0 = arith.constant 0 : i32
    %c0_i32_1 = arith.constant 0 : i32
    return %c0_i32, %c0_i32_0 : i32, i32
  }
  func.func @transform_6(%arg0: i32) -> (i32, i32) {
    %c0_i32 = arith.constant 0 : i32
    %c0_i32_0 = arith.constant 0 : i32
    %c0_i32_1 = arith.constant 0 : i32
    return %c0_i32, %c0_i32_0 : i32, i32
  }
  func.func @transform_7(%arg0: i32) -> (i32, i32) {
    %c0_i32 = arith.constant 0 : i32
    %c0_i32_0 = arith.constant 0 : i32
    %c0_i32_1 = arith.constant 0 : i32
    return %c0_i32, %c0_i32_0 : i32, i32
  }
  func.func @transform_8(%arg0: i32) -> (i32, i32) {
    %c0_i32 = arith.constant 0 : i32
    %c0_i32_0 = arith.constant 0 : i32
    %c0_i32_1 = arith.constant 0 : i32
    return %c0_i32, %c0_i32_0 : i32, i32
  }
  func.func @transform_9(%arg0: i32) -> (i32, i32) {
    %c0_i32 = arith.constant 0 : i32
    %c0_i32_0 = arith.constant 0 : i32
    %c0_i32_1 = arith.constant 0 : i32
    return %c0_i32, %c0_i32_0 : i32, i32
  }
  func.func @transform_10(%arg0: i32) -> (i32, i32) {
    %c0_i32 = arith.constant 0 : i32
    %c0_i32_0 = arith.constant 0 : i32
    %c0_i32_1 = arith.constant 0 : i32
    return %c0_i32, %c0_i32_0 : i32, i32
  }
  func.func @transform_11(%arg0: i32) -> (i32, i32) {
    %c0_i32 = arith.constant 0 : i32
    %c0_i32_0 = arith.constant 0 : i32
    %c0_i32_1 = arith.constant 0 : i32
    return %c0_i32, %c0_i32_0 : i32, i32
  }
  func.func @transform_12(%arg0: i32) -> (i32, i32) {
    %c0_i32 = arith.constant 0 : i32
    %c0_i32_0 = arith.constant 0 : i32
    %c0_i32_1 = arith.constant 0 : i32
    return %c0_i32, %c0_i32_0 : i32, i32
  }
  func.func @transform_13(%arg0: i32) -> (i32, i32) {
    %c0_i32 = arith.constant 0 : i32
    %c0_i32_0 = arith.constant 0 : i32
    %c0_i32_1 = arith.constant 0 : i32
    return %c0_i32, %c0_i32_0 : i32, i32
  }
  func.func @transform_14(%arg0: i32) -> (i32, i32) {
    %c0_i32 = arith.constant 0 : i32
    %c0_i32_0 = arith.constant 0 : i32
    %c0_i32_1 = arith.constant 0 : i32
    return %c0_i32, %c0_i32_0 : i32, i32
  }
  func.func @transform_15(%arg0: i32) -> (i32, i32) {
    %c0_i32 = arith.constant 0 : i32
    %c0_i32_0 = arith.constant 0 : i32
    %c0_i32_1 = arith.constant 0 : i32
    return %c0_i32, %c0_i32_0 : i32, i32
  }
}

</mosaic_0001>

<bundles_post_ra>
// kernel: data_dim_reduce_forward.5
= control target key start
LH: loop header
LB: loop body
LE: loop exit
PB: predicated region body
PF: predicated region fallthrough
CT: control target
= control target key end

     0   :  { %s1542_s12 = smov 0   ;;  %s1852_s0 = inlined_call_operand.vmem [shape: bf16[800,256], index: 0, kind: input, shape index: {}]   ;;  %s1853_s1 = inlined_call_operand.vmem [shape: bf16[256,16], index: 1, kind: input, shape index: {}]   ;;  %s1854_s2 = inlined_call_operand.vmem [shape: f32[1,16], index: 2, kind: input, shape index: {}]   ;;  %s1855_s3 = inlined_call_operand.vmem [shape: bf16[800,16], index: 3, kind: output, shape index: {}]  }
   0x1 LB: > { %s1203_s13 = sadd.s32 4294967295, %s1519_s12   ;;  %p1207_p0 = scmp.ge.s32.totalorder %s1519_s12, 1  ;;  %s1519_s12 = sphi %s1542_s12, %s13_s12  }
   0x2   : > { %p139_p1 = scmp.lt.s32.totalorder %s1519_s12, 3 }
   0x4   : > { %p140_p2 = pnand %p1207_p0, %p139_p1 }
   0x5   : > { %v1422_v0 = vld [vmem:[%s1853_s1] sm:$0xff] (!%p140_p2)   ;;  %v1521_v1 = vmov (!%p140_p2), 0   ;;  %s164_s16 = smul.u32 (!%p140_p2), 50, %s1203_s13  ;;  %v1423_v2 = vld [vmem:[%s1853_s1 + $0x8] sm:$0xff] (!%p140_p2)   ;;  %v1424_v3 = vld [vmem:[%s1853_s1 + $0x10] sm:$0xff] (!%p140_p2)   ;;  %vm1096_vm0 = vcmask (!%p140_p2), 125952  }
   0x6   : > { %143 = sbr.rel (%p140_p2) target bundleno = 387 (0x183), region = 32  ;;  %613 = vmatprep.subr.bf16.mxu0 (!%p140_p2), %v1521_v1  ;;  %1381 = vmatprep.subr.bf16.mxu1 (!%p140_p2), %v1521_v1  ;;  %v1425_v4 = vld [vmem:[%s1853_s1 + $0x18] sm:$0xff] (!%p140_p2)   ;;  %v1426_v5 = vld [vmem:[%s1853_s1 + $0x20] sm:$0xff] (!%p140_p2)   ;;  %v1427_v7 = vld [vmem:[%s1853_s1 + $0x28] sm:$0xff] (!%p140_p2)  }
   0x7   : > { %614 = vmatpush1.bf16.msra.mxu0 (!%p140_p2), %v1422_v0  ;;  %1397 = vmatpush1.bf16.msra.mxu1 (!%p140_p2), %v1422_v0  ;;  %p165_p3 = scmp.lt.s32.totalorder (!%p140_p2), %s164_s16, 99  ;;  %v1428_v9 = vld [vmem:[%s1853_s1 + $0x30] sm:$0xff] (!%p140_p2)   ;;  %v1429_v10 = vld [vmem:[%s1853_s1 + $0x38] sm:$0xff] (!%p140_p2)   ;;  %v1430_v11 = vld [vmem:[%s1853_s1 + $0x40] sm:$0xff] (!%p140_p2)  }
   0x8   : > { %615 = vmatprep.subr.bf16.mxu0 (!%p140_p2), %v1521_v1  ;;  %1382 = vmatprep.subr.bf16.mxu1 (!%p140_p2), %v1521_v1  ;;  %v1431_v12 = vld [vmem:[%s1853_s1 + $0x48] sm:$0xff] (!%p140_p2)   ;;  %v1432_v13 = vld [vmem:[%s1853_s1 + $0x50] sm:$0xff] (!%p140_p2)   ;;  %v1433_v14 = vld [vmem:[%s1853_s1 + $0x58] sm:$0xff] (!%p140_p2)  }
   0x9   : > { %v1434_v15 = vld [vmem:[%s1853_s1 + $0x60] sm:$0xff] (!%p140_p2)   ;;  %v1435_v16 = vld [vmem:[%s1853_s1 + $0x68] sm:$0xff] (!%p140_p2)   ;;  %v1436_v17 = vld [vmem:[%s1853_s1 + $0x70] sm:$0xff] (!%p140_p2)  }
   0xa   : > { %v1437_v18 = vld [vmem:[%s1853_s1 + $0x78] sm:$0xff] (!%p140_p2)  }
   0xb   : > { %616 = vmatpush1.bf16.msra.mxu0 (!%p140_p2), %v1423_v2  ;;  %1398 = vmatpush1.bf16.msra.mxu1 (!%p140_p2), %v1423_v2 }
   0xc   : > { %617 = vmatprep.subr.bf16.mxu0 (!%p140_p2), %v1521_v1  ;;  %1383 = vmatprep.subr.bf16.mxu1 (!%p140_p2), %v1521_v1 }
   0xd   : > { %s1857_s16 = smov (!%p165_p3, %s164_s16), 99 }
   0xe   : > { %s1330_s23 = sshll.u32 %s1857_s16, 3  ;;  %s1210_s29 = sshll.u32 %s1857_s16, 2 }
   0xf   : > { %618 = vmatpush1.bf16.msra.mxu0 %v1424_v3  ;;  %1399 = vmatpush1.bf16.msra.mxu1 %v1424_v3  ;;  %s1579_s28 = scalar_lea.vmem %s1852_s0, %s1330_s23  ;;  %v1691_v3 = vld [vmem:[%s1854_s2] ss:$0 sm:$0xff]  ;;  %s1701_s16 = scalar_lea.vmem %s1855_s3, %s1210_s29 }
  0x10   : > { %619 = vmatprep.subr.bf16.mxu0 %v1521_v1  ;;  %1384 = vmatprep.subr.bf16.mxu1 %v1521_v1  ;;  %v1440_v6 = vld [vmem:[%s1579_s28 + $0x4] ss:$8 sps:$4 sm:$0xff]   ;;  %v1443_v8 = vld [vmem:[%s1579_s28 + $0xd4] ss:$8 sps:$4 sm:$0xff]   ;;  %v1438_v19 = vld [vmem:[%s1579_s28] ss:$8 sps:$4 sm:$0xff]  }
  0x11   : > { %645 = vmatprep.mubr.bf16.mxu0 %v1440_v6  ;;  %749 = vmatprep.mubr.bf16.mxu1 %v1443_v8  ;;  %v1441_v20 = vld [vmem:[%s1579_s28 + $0xd0] ss:$8 sps:$4 sm:$0xff]   ;;  %v1444_v21 = vld [vmem:[%s1579_s28 + $0x14] ss:$8 sps:$4 sm:$0xff]   ;;  %v1447_v22 = vld [vmem:[%s1579_s28 + $0xe4] ss:$8 sps:$4 sm:$0xff]  }
  0x12   : > { %v1446_v23 = vld [vmem:[%s1579_s28 + $0x10] ss:$8 sps:$4 sm:$0xff]   ;;  %v1449_v24 = vld [vmem:[%s1579_s28 + $0xe0] ss:$8 sps:$4 sm:$0xff]   ;;  %v1450_v25 = vld [vmem:[%s1579_s28 + $0x24] ss:$8 sps:$4 sm:$0xff]  }
  0x13   : > { %620 = vmatpush1.bf16.msra.mxu0 %v1425_v4  ;;  %1400 = vmatpush1.bf16.msra.mxu1 %v1425_v4  ;;  %v1453_v26 = vld [vmem:[%s1579_s28 + $0xf4] ss:$8 sps:$4 sm:$0xff]   ;;  %v1452_v27 = vld [vmem:[%s1579_s28 + $0x20] ss:$8 sps:$4 sm:$0xff]   ;;  %v1455_v28 = vld [vmem:[%s1579_s28 + $0xf0] ss:$8 sps:$4 sm:$0xff]  }
  0x14   : > { %621 = vmatprep.subr.bf16.mxu0 %v1521_v1  ;;  %1385 = vmatprep.subr.bf16.mxu1 %v1521_v1  ;;  %v1456_v29 = vld [vmem:[%s1579_s28 + $0x34] ss:$8 sps:$4 sm:$0xff]   ;;  %v1459_v30 = vld [vmem:[%s1579_s28 + $0x104] ss:$8 sps:$4 sm:$0xff]   ;;  %v1458_v31 = vld [vmem:[%s1579_s28 + $0x30] ss:$8 sps:$4 sm:$0xff]  }
  0x15   : > { %v1461_v32 = vld [vmem:[%s1579_s28 + $0x100] ss:$8 sps:$4 sm:$0xff]   ;;  %v1462_v33 = vld [vmem:[%s1579_s28 + $0x44] ss:$8 sps:$4 sm:$0xff]   ;;  %v1465_v34 = vld [vmem:[%s1579_s28 + $0x114] ss:$8 sps:$4 sm:$0xff]  }
  0x16   : > { %v1464_v35 = vld [vmem:[%s1579_s28 + $0x40] ss:$8 sps:$4 sm:$0xff]   ;;  %v1467_v36 = vld [vmem:[%s1579_s28 + $0x110] ss:$8 sps:$4 sm:$0xff]   ;;  %v1468_v37 = vld [vmem:[%s1579_s28 + $0x54] ss:$8 sps:$4 sm:$0xff]  }
  0x17   : > { %622 = vmatpush1.bf16.msra.mxu0 %v1426_v5  ;;  %1401 = vmatpush1.bf16.msra.mxu1 %v1426_v5  ;;  %v1471_v38 = vld [vmem:[%s1579_s28 + $0x124] ss:$8 sps:$4 sm:$0xff]   ;;  %v1470_v39 = vld [vmem:[%s1579_s28 + $0x50] ss:$8 sps:$4 sm:$0xff]   ;;  %v1473_v40 = vld [vmem:[%s1579_s28 + $0x120] ss:$8 sps:$4 sm:$0xff]  }
  0x18   : > { %623 = vmatprep.subr.bf16.mxu0 %v1521_v1  ;;  %1386 = vmatprep.subr.bf16.mxu1 %v1521_v1  ;;  %v1474_v41 = vld [vmem:[%s1579_s28 + $0x64] ss:$8 sps:$4 sm:$0xff]   ;;  %v1477_v42 = vld [vmem:[%s1579_s28 + $0x134] ss:$8 sps:$4 sm:$0xff]   ;;  %v1476_v43 = vld [vmem:[%s1579_s28 + $0x60] ss:$8 sps:$4 sm:$0xff]  }
  0x19   : > { %v1479_v44 = vld [vmem:[%s1579_s28 + $0x130] ss:$8 sps:$4 sm:$0xff]   ;;  %v1480_v45 = vld [vmem:[%s1579_s28 + $0x74] ss:$8 sps:$4 sm:$0xff]   ;;  %v1483_v46 = vld [vmem:[%s1579_s28 + $0x144] ss:$8 sps:$4 sm:$0xff]  }
  0x1a   : > { %v1482_v47 = vld [vmem:[%s1579_s28 + $0x70] ss:$8 sps:$4 sm:$0xff]   ;;  %v1485_v48 = vld [vmem:[%s1579_s28 + $0x140] ss:$8 sps:$4 sm:$0xff]   ;;  %v1486_v49 = vld [vmem:[%s1579_s28 + $0x84] ss:$8 sps:$4 sm:$0xff]  }
  0x1b   : > { %624 = vmatpush1.bf16.msra.mxu0 %v1427_v7  ;;  %1402 = vmatpush1.bf16.msra.mxu1 %v1427_v7  ;;  %v1489_v50 = vld [vmem:[%s1579_s28 + $0x154] ss:$8 sps:$4 sm:$0xff]   ;;  %v1488_v51 = vld [vmem:[%s1579_s28 + $0x80] ss:$8 sps:$4 sm:$0xff]   ;;  %v1491_v52 = vld [vmem:[%s1579_s28 + $0x150] ss:$8 sps:$4 sm:$0xff]  }
  0x1c   : > { %625 = vmatprep.subr.bf16.mxu0 %v1521_v1  ;;  %1387 = vmatprep.subr.bf16.mxu1 %v1521_v1  ;;  %v1492_v53 = vld [vmem:[%s1579_s28 + $0x94] ss:$8 sps:$4 sm:$0xff]   ;;  %v1495_v54 = vld [vmem:[%s1579_s28 + $0x164] ss:$8 sps:$4 sm:$0xff]   ;;  %v1494_v55 = vld [vmem:[%s1579_s28 + $0x90] ss:$8 sps:$4 sm:$0xff]  }
  0x1d   : > { %v1497_v56 = vld [vmem:[%s1579_s28 + $0x160] ss:$8 sps:$4 sm:$0xff]   ;;  %v1498_v57 = vld [vmem:[%s1579_s28 + $0xa4] ss:$8 sps:$4 sm:$0xff]   ;;  %v1501_v58 = vld [vmem:[%s1579_s28 + $0x174] ss:$8 sps:$4 sm:$0xff]  }
  0x1e   : > { %v1500_v59 = vld [vmem:[%s1579_s28 + $0xa0] ss:$8 sps:$4 sm:$0xff]   ;;  %v1503_v60 = vld [vmem:[%s1579_s28 + $0x170] ss:$8 sps:$4 sm:$0xff]   ;;  %v1504_v61 = vld [vmem:[%s1579_s28 + $0xb4] ss:$8 sps:$4 sm:$0xff]  }
  0x1f   : > { %626 = vmatpush1.bf16.msra.mxu0 %v1428_v9  ;;  %1403 = vmatpush1.bf16.msra.mxu1 %v1428_v9  ;;  %v1507_v62 = vld [vmem:[%s1579_s28 + $0x184] ss:$8 sps:$4 sm:$0xff]   ;;  %v1506_v63 = vld [vmem:[%s1579_s28 + $0xb0] ss:$8 sps:$4 sm:$0xff]   ;;  %v1509_v0 = vld [vmem:[%s1579_s28 + $0x180] ss:$8 sps:$4 sm:$0xff]  }
  0x20   : > { %627 = vmatprep.subr.bf16.mxu0 %v1521_v1  ;;  %1388 = vmatprep.subr.bf16.mxu1 %v1521_v1  ;;  %v1512_v2 = vld [vmem:[%s1579_s28 + $0xc0] ss:$8 sps:$4 sm:$0xff]  }
  0x23   : > { %628 = vmatpush1.bf16.msra.mxu0 %v1429_v10  ;;  %1404 = vmatpush1.bf16.msra.mxu1 %v1429_v10 }
  0x24   : > { %629 = vmatprep.subr.bf16.mxu0 %v1521_v1  ;;  %1389 = vmatprep.subr.bf16.mxu1 %v1521_v1 }
  0x27   : > { %630 = vmatpush1.bf16.msra.mxu0 %v1430_v11  ;;  %1405 = vmatpush1.bf16.msra.mxu1 %v1430_v11 }
  0x28   : > { %631 = vmatprep.subr.bf16.mxu0 %v1521_v1  ;;  %1390 = vmatprep.subr.bf16.mxu1 %v1521_v1 }
  0x2b   : > { %632 = vmatpush1.bf16.msra.mxu0 %v1431_v12  ;;  %1406 = vmatpush1.bf16.msra.mxu1 %v1431_v12 }
  0x2c   : > { %633 = vmatprep.subr.bf16.mxu0 %v1521_v1  ;;  %1391 = vmatprep.subr.bf16.mxu1 %v1521_v1 }
  0x2f   : > { %634 = vmatpush1.bf16.msra.mxu0 %v1432_v13  ;;  %1407 = vmatpush1.bf16.msra.mxu1 %v1432_v13 }
  0x30   : > { %635 = vmatprep.subr.bf16.mxu0 %v1521_v1  ;;  %1392 = vmatprep.subr.bf16.mxu1 %v1521_v1 }
  0x33   : > { %636 = vmatpush1.bf16.msra.mxu0 %v1433_v14  ;;  %1408 = vmatpush1.bf16.msra.mxu1 %v1433_v14 }
  0x34   : > { %637 = vmatprep.subr.bf16.mxu0 %v1521_v1  ;;  %1393 = vmatprep.subr.bf16.mxu1 %v1521_v1 }
  0x37   : > { %638 = vmatpush1.bf16.msra.mxu0 %v1434_v15  ;;  %1409 = vmatpush1.bf16.msra.mxu1 %v1434_v15 }
  0x38   : > { %639 = vmatprep.subr.bf16.mxu0 %v1521_v1  ;;  %1394 = vmatprep.subr.bf16.mxu1 %v1521_v1 }
  0x3b   : > { %640 = vmatpush1.bf16.msra.mxu0 %v1435_v16  ;;  %1410 = vmatpush1.bf16.msra.mxu1 %v1435_v16 }
  0x3c   : > { %641 = vmatprep.subr.bf16.mxu0 %v1521_v1  ;;  %1395 = vmatprep.subr.bf16.mxu1 %v1521_v1 }
  0x3f   : > { %642 = vmatpush1.bf16.msra.mxu0 %v1436_v17  ;;  %1411 = vmatpush1.bf16.msra.mxu1 %v1436_v17 }
  0x40   : > { %643 = vmatprep.subr.bf16.mxu0 %v1521_v1  ;;  %1396 = vmatprep.subr.bf16.mxu1 %v1521_v1  ;;  %v1510_v1 = vld [vmem:[%s1579_s28 + $0xc4] ss:$8 sps:$4 sm:$0xff]  }
  0x43   : > { %644 = vmatpush1.bf16.msra.mxu0 %v1437_v18  ;;  %1412 = vmatpush1.bf16.msra.mxu1 %v1437_v18 }
  0x46   : > { %646 = vmatmul.mubr.bf16.vlgmr.msra.gmra.mrb[0].mxu0 %v1438_v19  ;;  %750 = vmatmul.mubr.bf16.vlgmr.msra.gmra.mrb[0].mxu1 %v1441_v20 }
  0x47   : > { %653 = vmatprep.mubr.bf16.mxu0 %v1444_v21  ;;  %757 = vmatprep.mubr.bf16.mxu1 %v1447_v22 }
  0x4e   : > { %654 = vmatmul.mubr.bf16.gmra.mrb[4].mxu0 %v1446_v23  ;;  %758 = vmatmul.mubr.bf16.gmra.mrb[4].mxu1 %v1449_v24 }
  0x4f   : > { %661 = vmatprep.mubr.bf16.mxu0 %v1450_v25  ;;  %765 = vmatprep.mubr.bf16.mxu1 %v1453_v26 }
  0x56   : > { %662 = vmatmul.mubr.bf16.gmra.mrb[8].mxu0 %v1452_v27  ;;  %766 = vmatmul.mubr.bf16.gmra.mrb[8].mxu1 %v1455_v28 }
  0x57   : > { %669 = vmatprep.mubr.bf16.mxu0 %v1456_v29  ;;  %773 = vmatprep.mubr.bf16.mxu1 %v1459_v30 }
  0x5e   : > { %670 = vmatmul.mubr.bf16.gmra.mrb[12].mxu0 %v1458_v31  ;;  %774 = vmatmul.mubr.bf16.gmra.mrb[12].mxu1 %v1461_v32 }
  0x5f   : > { %677 = vmatprep.mubr.bf16.mxu0 %v1462_v33  ;;  %781 = vmatprep.mubr.bf16.mxu1 %v1465_v34 }
  0x66   : > { %678 = vmatmul.mubr.bf16.gmra.mrb[16].mxu0 %v1464_v35  ;;  %782 = vmatmul.mubr.bf16.gmra.mrb[16].mxu1 %v1467_v36 }
  0x67   : > { %685 = vmatprep.mubr.bf16.mxu0 %v1468_v37  ;;  %789 = vmatprep.mubr.bf16.mxu1 %v1471_v38 }
  0x6e   : > { %686 = vmatmul.mubr.bf16.gmra.mrb[20].mxu0 %v1470_v39  ;;  %790 = vmatmul.mubr.bf16.gmra.mrb[20].mxu1 %v1473_v40 }
  0x6f   : > { %693 = vmatprep.mubr.bf16.mxu0 %v1474_v41  ;;  %797 = vmatprep.mubr.bf16.mxu1 %v1477_v42 }
  0x76   : > { %694 = vmatmul.mubr.bf16.gmra.mrb[24].mxu0 %v1476_v43  ;;  %798 = vmatmul.mubr.bf16.gmra.mrb[24].mxu1 %v1479_v44 }
  0x77   : > { %701 = vmatprep.mubr.bf16.mxu0 %v1480_v45  ;;  %805 = vmatprep.mubr.bf16.mxu1 %v1483_v46 }
  0x7e   : > { %702 = vmatmul.mubr.bf16.gmra.mrb[28].mxu0 %v1482_v47  ;;  %806 = vmatmul.mubr.bf16.gmra.mrb[28].mxu1 %v1485_v48 }
  0x7f   : > { %709 = vmatprep.mubr.bf16.mxu0 %v1486_v49  ;;  %813 = vmatprep.mubr.bf16.mxu1 %v1489_v50 }
  0x86   : > { %710 = vmatmul.mubr.bf16.gmra.mrb[32].mxu0 %v1488_v51  ;;  %814 = vmatmul.mubr.bf16.gmra.mrb[32].mxu1 %v1491_v52 }
  0x87   : > { %717 = vmatprep.mubr.bf16.mxu0 %v1492_v53  ;;  %821 = vmatprep.mubr.bf16.mxu1 %v1495_v54 }
  0x8e   : > { %718 = vmatmul.mubr.bf16.gmra.mrb[36].mxu0 %v1494_v55  ;;  %822 = vmatmul.mubr.bf16.gmra.mrb[36].mxu1 %v1497_v56 }
  0x8f   : > { %725 = vmatprep.mubr.bf16.mxu0 %v1498_v57  ;;  %829 = vmatprep.mubr.bf16.mxu1 %v1501_v58 }
  0x96   : > { %726 = vmatmul.mubr.bf16.gmra.mrb[40].mxu0 %v1500_v59  ;;  %830 = vmatmul.mubr.bf16.gmra.mrb[40].mxu1 %v1503_v60 }
  0x97   : > { %733 = vmatprep.mubr.bf16.mxu0 %v1504_v61  ;;  %837 = vmatprep.mubr.bf16.mxu1 %v1507_v62 }
  0x9e   : > { %734 = vmatmul.mubr.bf16.gmra.mrb[44].mxu0 %v1506_v63  ;;  %838 = vmatmul.mubr.bf16.gmra.mrb[44].mxu1 %v1509_v0 }
  0x9f   : > { %741 = vmatprep.mubr.bf16.mxu0 %v1510_v1 }
  0xa6   : > { %742 = vmatmul.mubr.bf16.gmra.mrb[48].mxu0 %v1512_v2 }
 0x119   : > { %v647_v4 = vpop.f32.mrb[0].mxu0  ;;  %v751_v5 = vpop.f32.mrb[0].mxu1 }
 0x11a   : > { %v648_v6 = vadd.f32 %v1691_v3, %v647_v4  ;;  %v649_v7 = vpop.f32.mrb[1].mxu0  ;;  %v752_v8 = vadd.f32 %v1691_v3, %v751_v5  ;;  %v753_v9 = vpop.f32.mrb[1].mxu1 }
 0x11b   : > { %v650_v10 = vpop.f32.mrb[2].mxu0  ;;  %v754_v11 = vpop.f32.mrb[2].mxu1 }
 0x11c   : > { %v846_v12 = vmax.f32 %v648_v6, 0.0  ;;  %v651_v13 = vadd.f32 %v1691_v3, %v650_v10  ;;  %v652_v14 = vpop.f32.mrb[3].mxu0  ;;  %v872_v15 = vmax.f32 %v752_v8, 0.0  ;;  %v755_v16 = vadd.f32 %v1691_v3, %v754_v11  ;;  %v756_v17 = vpop.f32.mrb[3].mxu1 }
 0x11e   : > { %v1331_v18 = vpack.c.bf16 %v846_v12, %v846_v12  ;;  %v847_v19 = vmax.f32 %v651_v13, 0.0  ;;  %v1357_v20 = vpack.c.bf16 %v872_v15, %v872_v15  ;;  %v873_v21 = vmax.f32 %v755_v16, 0.0 }
 0x120   : > { %1097 = vst.msk [vmem:[%s1701_s16] sm:$0xf] %vm1096_vm0, %v1331_v18  ;;  %v1332_v22 = vpack.c.bf16 %v847_v19, %v847_v19  ;;  %1123 = vst.msk [vmem:[%s1701_s16 + $0x68] sm:$0xf] %vm1096_vm0, %v1357_v20  ;;  %v1358_v23 = vpack.c.bf16 %v873_v21, %v873_v21 }
 0x121   : > { %v655_v24 = vpop.f32.mrb[4].mxu0  ;;  %v759_v25 = vpop.f32.mrb[4].mxu1 }
 0x122   : > { %1098 = vst.msk [vmem:[%s1701_s16 + $0x4] sm:$0xf] %vm1096_vm0, %v1332_v22  ;;  %1124 = vst.msk [vmem:[%s1701_s16 + $0x6c] sm:$0xf] %vm1096_vm0, %v1358_v23  ;;  %v656_v26 = vadd.f32 %v1691_v3, %v655_v24  ;;  %v657_v27 = vpop.f32.mrb[5].mxu0  ;;  %v760_v28 = vadd.f32 %v1691_v3, %v759_v25  ;;  %v761_v29 = vpop.f32.mrb[5].mxu1 }
 0x123   : > { %v658_v30 = vpop.f32.mrb[6].mxu0  ;;  %v762_v31 = vpop.f32.mrb[6].mxu1 }
 0x124   : > { %v848_v32 = vmax.f32 %v656_v26, 0.0  ;;  %v659_v33 = vadd.f32 %v1691_v3, %v658_v30  ;;  %v660_v34 = vpop.f32.mrb[7].mxu0  ;;  %v874_v35 = vmax.f32 %v760_v28, 0.0  ;;  %v763_v36 = vadd.f32 %v1691_v3, %v762_v31  ;;  %v764_v37 = vpop.f32.mrb[7].mxu1 }
 0x126   : > { %v1333_v38 = vpack.c.bf16 %v848_v32, %v848_v32  ;;  %v849_v39 = vmax.f32 %v659_v33, 0.0  ;;  %v1359_v40 = vpack.c.bf16 %v874_v35, %v874_v35  ;;  %v875_v41 = vmax.f32 %v763_v36, 0.0 }
 0x128   : > { %1099 = vst.msk [vmem:[%s1701_s16 + $0x8] sm:$0xf] %vm1096_vm0, %v1333_v38  ;;  %v1334_v42 = vpack.c.bf16 %v849_v39, %v849_v39  ;;  %1125 = vst.msk [vmem:[%s1701_s16 + $0x70] sm:$0xf] %vm1096_vm0, %v1359_v40  ;;  %v1360_v43 = vpack.c.bf16 %v875_v41, %v875_v41 }
 0x129   : > { %v663_v44 = vpop.f32.mrb[8].mxu0  ;;  %v767_v45 = vpop.f32.mrb[8].mxu1 }
 0x12a   : > { %1100 = vst.msk [vmem:[%s1701_s16 + $0xc] sm:$0xf] %vm1096_vm0, %v1334_v42  ;;  %1126 = vst.msk [vmem:[%s1701_s16 + $0x74] sm:$0xf] %vm1096_vm0, %v1360_v43  ;;  %v664_v46 = vadd.f32 %v1691_v3, %v663_v44  ;;  %v665_v47 = vpop.f32.mrb[9].mxu0  ;;  %v768_v48 = vadd.f32 %v1691_v3, %v767_v45  ;;  %v769_v49 = vpop.f32.mrb[9].mxu1 }
 0x12b   : > { %v666_v50 = vpop.f32.mrb[10].mxu0  ;;  %v770_v51 = vpop.f32.mrb[10].mxu1 }
 0x12c   : > { %v850_v52 = vmax.f32 %v664_v46, 0.0  ;;  %v667_v53 = vadd.f32 %v1691_v3, %v666_v50  ;;  %v668_v54 = vpop.f32.mrb[11].mxu0  ;;  %v876_v55 = vmax.f32 %v768_v48, 0.0  ;;  %v771_v56 = vadd.f32 %v1691_v3, %v770_v51  ;;  %v772_v57 = vpop.f32.mrb[11].mxu1 }
 0x12e   : > { %v1335_v58 = vpack.c.bf16 %v850_v52, %v850_v52  ;;  %v851_v59 = vmax.f32 %v667_v53, 0.0  ;;  %v1361_v60 = vpack.c.bf16 %v876_v55, %v876_v55  ;;  %v877_v61 = vmax.f32 %v771_v56, 0.0 }
 0x130   : > { %1101 = vst.msk [vmem:[%s1701_s16 + $0x10] sm:$0xf] %vm1096_vm0, %v1335_v58  ;;  %v1336_v62 = vpack.c.bf16 %v851_v59, %v851_v59  ;;  %1127 = vst.msk [vmem:[%s1701_s16 + $0x78] sm:$0xf] %vm1096_vm0, %v1361_v60  ;;  %v1362_v63 = vpack.c.bf16 %v877_v61, %v877_v61 }
 0x131   : > { %v671_v0 = vpop.f32.mrb[12].mxu0  ;;  %v775_v1 = vpop.f32.mrb[12].mxu1 }
 0x132   : > { %1102 = vst.msk [vmem:[%s1701_s16 + $0x14] sm:$0xf] %vm1096_vm0, %v1336_v62  ;;  %1128 = vst.msk [vmem:[%s1701_s16 + $0x7c] sm:$0xf] %vm1096_vm0, %v1362_v63  ;;  %v672_v2 = vadd.f32 %v1691_v3, %v671_v0  ;;  %v673_v4 = vpop.f32.mrb[13].mxu0  ;;  %v776_v5 = vadd.f32 %v1691_v3, %v775_v1  ;;  %v777_v6 = vpop.f32.mrb[13].mxu1 }
 0x133   : > { %v674_v7 = vpop.f32.mrb[14].mxu0  ;;  %v778_v8 = vpop.f32.mrb[14].mxu1 }
 0x134   : > { %v852_v9 = vmax.f32 %v672_v2, 0.0  ;;  %v675_v10 = vadd.f32 %v1691_v3, %v674_v7  ;;  %v676_v11 = vpop.f32.mrb[15].mxu0  ;;  %v878_v12 = vmax.f32 %v776_v5, 0.0  ;;  %v779_v13 = vadd.f32 %v1691_v3, %v778_v8  ;;  %v780_v14 = vpop.f32.mrb[15].mxu1 }
 0x136   : > { %v1337_v15 = vpack.c.bf16 %v852_v9, %v852_v9  ;;  %v853_v16 = vmax.f32 %v675_v10, 0.0  ;;  %v1363_v17 = vpack.c.bf16 %v878_v12, %v878_v12  ;;  %v879_v18 = vmax.f32 %v779_v13, 0.0 }
 0x138   : > { %1103 = vst.msk [vmem:[%s1701_s16 + $0x18] sm:$0xf] %vm1096_vm0, %v1337_v15  ;;  %v1338_v19 = vpack.c.bf16 %v853_v16, %v853_v16  ;;  %1129 = vst.msk [vmem:[%s1701_s16 + $0x80] sm:$0xf] %vm1096_vm0, %v1363_v17  ;;  %v1364_v20 = vpack.c.bf16 %v879_v18, %v879_v18 }
 0x139   : > { %v679_v21 = vpop.f32.mrb[16].mxu0  ;;  %v783_v22 = vpop.f32.mrb[16].mxu1 }
 0x13a   : > { %1104 = vst.msk [vmem:[%s1701_s16 + $0x1c] sm:$0xf] %vm1096_vm0, %v1338_v19  ;;  %1130 = vst.msk [vmem:[%s1701_s16 + $0x84] sm:$0xf] %vm1096_vm0, %v1364_v20  ;;  %v680_v23 = vadd.f32 %v1691_v3, %v679_v21  ;;  %v681_v24 = vpop.f32.mrb[17].mxu0  ;;  %v784_v25 = vadd.f32 %v1691_v3, %v783_v22  ;;  %v785_v26 = vpop.f32.mrb[17].mxu1 }
 0x13b   : > { %v682_v27 = vpop.f32.mrb[18].mxu0  ;;  %v786_v28 = vpop.f32.mrb[18].mxu1 }
 0x13c   : > { %v854_v29 = vmax.f32 %v680_v23, 0.0  ;;  %v683_v30 = vadd.f32 %v1691_v3, %v682_v27  ;;  %v684_v31 = vpop.f32.mrb[19].mxu0  ;;  %v880_v32 = vmax.f32 %v784_v25, 0.0  ;;  %v787_v33 = vadd.f32 %v1691_v3, %v786_v28  ;;  %v788_v34 = vpop.f32.mrb[19].mxu1 }
 0x13e   : > { %v1339_v35 = vpack.c.bf16 %v854_v29, %v854_v29  ;;  %v855_v36 = vmax.f32 %v683_v30, 0.0  ;;  %v1365_v37 = vpack.c.bf16 %v880_v32, %v880_v32  ;;  %v881_v38 = vmax.f32 %v787_v33, 0.0 }
 0x140   : > { %1105 = vst.msk [vmem:[%s1701_s16 + $0x20] sm:$0xf] %vm1096_vm0, %v1339_v35  ;;  %v1340_v39 = vpack.c.bf16 %v855_v36, %v855_v36  ;;  %1131 = vst.msk [vmem:[%s1701_s16 + $0x88] sm:$0xf] %vm1096_vm0, %v1365_v37  ;;  %v1366_v40 = vpack.c.bf16 %v881_v38, %v881_v38 }
 0x141   : > { %v687_v41 = vpop.f32.mrb[20].mxu0  ;;  %v791_v42 = vpop.f32.mrb[20].mxu1 }
 0x142   : > { %1106 = vst.msk [vmem:[%s1701_s16 + $0x24] sm:$0xf] %vm1096_vm0, %v1340_v39  ;;  %1132 = vst.msk [vmem:[%s1701_s16 + $0x8c] sm:$0xf] %vm1096_vm0, %v1366_v40  ;;  %v688_v43 = vadd.f32 %v1691_v3, %v687_v41  ;;  %v689_v44 = vpop.f32.mrb[21].mxu0  ;;  %v792_v45 = vadd.f32 %v1691_v3, %v791_v42  ;;  %v793_v46 = vpop.f32.mrb[21].mxu1 }
 0x143   : > { %v690_v47 = vpop.f32.mrb[22].mxu0  ;;  %v794_v48 = vpop.f32.mrb[22].mxu1 }
 0x144   : > { %v856_v49 = vmax.f32 %v688_v43, 0.0  ;;  %v691_v50 = vadd.f32 %v1691_v3, %v690_v47  ;;  %v692_v51 = vpop.f32.mrb[23].mxu0  ;;  %v882_v52 = vmax.f32 %v792_v45, 0.0  ;;  %v795_v53 = vadd.f32 %v1691_v3, %v794_v48  ;;  %v796_v54 = vpop.f32.mrb[23].mxu1 }
 0x146   : > { %v1341_v55 = vpack.c.bf16 %v856_v49, %v856_v49  ;;  %v857_v56 = vmax.f32 %v691_v50, 0.0  ;;  %v1367_v57 = vpack.c.bf16 %v882_v52, %v882_v52  ;;  %v883_v58 = vmax.f32 %v795_v53, 0.0 }
 0x148   : > { %1107 = vst.msk [vmem:[%s1701_s16 + $0x28] sm:$0xf] %vm1096_vm0, %v1341_v55  ;;  %v1342_v59 = vpack.c.bf16 %v857_v56, %v857_v56  ;;  %1133 = vst.msk [vmem:[%s1701_s16 + $0x90] sm:$0xf] %vm1096_vm0, %v1367_v57  ;;  %v1368_v60 = vpack.c.bf16 %v883_v58, %v883_v58 }
 0x149   : > { %v695_v61 = vpop.f32.mrb[24].mxu0  ;;  %v799_v62 = vpop.f32.mrb[24].mxu1 }
 0x14a   : > { %1108 = vst.msk [vmem:[%s1701_s16 + $0x2c] sm:$0xf] %vm1096_vm0, %v1342_v59  ;;  %1134 = vst.msk [vmem:[%s1701_s16 + $0x94] sm:$0xf] %vm1096_vm0, %v1368_v60  ;;  %v696_v63 = vadd.f32 %v1691_v3, %v695_v61  ;;  %v697_v0 = vpop.f32.mrb[25].mxu0  ;;  %v800_v1 = vadd.f32 %v1691_v3, %v799_v62  ;;  %v801_v2 = vpop.f32.mrb[25].mxu1 }
 0x14b   : > { %v698_v4 = vpop.f32.mrb[26].mxu0  ;;  %v802_v5 = vpop.f32.mrb[26].mxu1 }
 0x14c   : > { %v858_v6 = vmax.f32 %v696_v63, 0.0  ;;  %v699_v7 = vadd.f32 %v1691_v3, %v698_v4  ;;  %v700_v8 = vpop.f32.mrb[27].mxu0  ;;  %v884_v9 = vmax.f32 %v800_v1, 0.0  ;;  %v803_v10 = vadd.f32 %v1691_v3, %v802_v5  ;;  %v804_v11 = vpop.f32.mrb[27].mxu1 }
 0x14e   : > { %v1343_v12 = vpack.c.bf16 %v858_v6, %v858_v6  ;;  %v859_v13 = vmax.f32 %v699_v7, 0.0  ;;  %v1369_v14 = vpack.c.bf16 %v884_v9, %v884_v9  ;;  %v885_v15 = vmax.f32 %v803_v10, 0.0 }
 0x150   : > { %1109 = vst.msk [vmem:[%s1701_s16 + $0x30] sm:$0xf] %vm1096_vm0, %v1343_v12  ;;  %v1344_v16 = vpack.c.bf16 %v859_v13, %v859_v13  ;;  %1135 = vst.msk [vmem:[%s1701_s16 + $0x98] sm:$0xf] %vm1096_vm0, %v1369_v14  ;;  %v1370_v17 = vpack.c.bf16 %v885_v15, %v885_v15 }
 0x151   : > { %v703_v18 = vpop.f32.mrb[28].mxu0  ;;  %v807_v19 = vpop.f32.mrb[28].mxu1 }
 0x152   : > { %1110 = vst.msk [vmem:[%s1701_s16 + $0x34] sm:$0xf] %vm1096_vm0, %v1344_v16  ;;  %1136 = vst.msk [vmem:[%s1701_s16 + $0x9c] sm:$0xf] %vm1096_vm0, %v1370_v17  ;;  %v704_v20 = vadd.f32 %v1691_v3, %v703_v18  ;;  %v705_v21 = vpop.f32.mrb[29].mxu0  ;;  %v808_v22 = vadd.f32 %v1691_v3, %v807_v19  ;;  %v809_v23 = vpop.f32.mrb[29].mxu1 }
 0x153   : > { %v706_v24 = vpop.f32.mrb[30].mxu0  ;;  %v810_v25 = vpop.f32.mrb[30].mxu1 }
 0x154   : > { %v860_v26 = vmax.f32 %v704_v20, 0.0  ;;  %v707_v27 = vadd.f32 %v1691_v3, %v706_v24  ;;  %v708_v28 = vpop.f32.mrb[31].mxu0  ;;  %v886_v29 = vmax.f32 %v808_v22, 0.0  ;;  %v811_v30 = vadd.f32 %v1691_v3, %v810_v25  ;;  %v812_v31 = vpop.f32.mrb[31].mxu1 }
 0x156   : > { %v1345_v32 = vpack.c.bf16 %v860_v26, %v860_v26  ;;  %v861_v33 = vmax.f32 %v707_v27, 0.0  ;;  %v1371_v34 = vpack.c.bf16 %v886_v29, %v886_v29  ;;  %v887_v35 = vmax.f32 %v811_v30, 0.0 }
 0x158   : > { %1111 = vst.msk [vmem:[%s1701_s16 + $0x38] sm:$0xf] %vm1096_vm0, %v1345_v32  ;;  %v1346_v36 = vpack.c.bf16 %v861_v33, %v861_v33  ;;  %1137 = vst.msk [vmem:[%s1701_s16 + $0xa0] sm:$0xf] %vm1096_vm0, %v1371_v34  ;;  %v1372_v37 = vpack.c.bf16 %v887_v35, %v887_v35 }
 0x159   : > { %v711_v38 = vpop.f32.mrb[32].mxu0  ;;  %v815_v39 = vpop.f32.mrb[32].mxu1 }
 0x15a   : > { %1112 = vst.msk [vmem:[%s1701_s16 + $0x3c] sm:$0xf] %vm1096_vm0, %v1346_v36  ;;  %1138 = vst.msk [vmem:[%s1701_s16 + $0xa4] sm:$0xf] %vm1096_vm0, %v1372_v37  ;;  %v712_v40 = vadd.f32 %v1691_v3, %v711_v38  ;;  %v713_v41 = vpop.f32.mrb[33].mxu0  ;;  %v816_v42 = vadd.f32 %v1691_v3, %v815_v39  ;;  %v817_v43 = vpop.f32.mrb[33].mxu1 }
 0x15b   : > { %v714_v44 = vpop.f32.mrb[34].mxu0  ;;  %v818_v45 = vpop.f32.mrb[34].mxu1 }
 0x15c   : > { %v862_v46 = vmax.f32 %v712_v40, 0.0  ;;  %v715_v47 = vadd.f32 %v1691_v3, %v714_v44  ;;  %v716_v48 = vpop.f32.mrb[35].mxu0  ;;  %v888_v49 = vmax.f32 %v816_v42, 0.0  ;;  %v819_v50 = vadd.f32 %v1691_v3, %v818_v45  ;;  %v820_v51 = vpop.f32.mrb[35].mxu1 }
 0x15e   : > { %v1347_v52 = vpack.c.bf16 %v862_v46, %v862_v46  ;;  %v863_v53 = vmax.f32 %v715_v47, 0.0  ;;  %v1373_v54 = vpack.c.bf16 %v888_v49, %v888_v49  ;;  %v889_v55 = vmax.f32 %v819_v50, 0.0 }
 0x160   : > { %1113 = vst.msk [vmem:[%s1701_s16 + $0x40] sm:$0xf] %vm1096_vm0, %v1347_v52  ;;  %v1348_v56 = vpack.c.bf16 %v863_v53, %v863_v53  ;;  %1139 = vst.msk [vmem:[%s1701_s16 + $0xa8] sm:$0xf] %vm1096_vm0, %v1373_v54  ;;  %v1374_v57 = vpack.c.bf16 %v889_v55, %v889_v55 }
 0x161   : > { %v719_v58 = vpop.f32.mrb[36].mxu0  ;;  %v823_v59 = vpop.f32.mrb[36].mxu1 }
 0x162   : > { %1114 = vst.msk [vmem:[%s1701_s16 + $0x44] sm:$0xf] %vm1096_vm0, %v1348_v56  ;;  %1140 = vst.msk [vmem:[%s1701_s16 + $0xac] sm:$0xf] %vm1096_vm0, %v1374_v57  ;;  %v720_v60 = vadd.f32 %v1691_v3, %v719_v58  ;;  %v721_v61 = vpop.f32.mrb[37].mxu0  ;;  %v824_v62 = vadd.f32 %v1691_v3, %v823_v59  ;;  %v825_v63 = vpop.f32.mrb[37].mxu1 }
 0x163   : > { %v722_v0 = vpop.f32.mrb[38].mxu0  ;;  %v826_v1 = vpop.f32.mrb[38].mxu1 }
 0x164   : > { %v864_v2 = vmax.f32 %v720_v60, 0.0  ;;  %v723_v4 = vadd.f32 %v1691_v3, %v722_v0  ;;  %v724_v5 = vpop.f32.mrb[39].mxu0  ;;  %v890_v6 = vmax.f32 %v824_v62, 0.0  ;;  %v827_v7 = vadd.f32 %v1691_v3, %v826_v1  ;;  %v828_v8 = vpop.f32.mrb[39].mxu1 }
 0x166   : > { %v1349_v9 = vpack.c.bf16 %v864_v2, %v864_v2  ;;  %v865_v10 = vmax.f32 %v723_v4, 0.0  ;;  %v1375_v11 = vpack.c.bf16 %v890_v6, %v890_v6  ;;  %v891_v12 = vmax.f32 %v827_v7, 0.0 }
 0x168   : > { %1115 = vst.msk [vmem:[%s1701_s16 + $0x48] sm:$0xf] %vm1096_vm0, %v1349_v9  ;;  %v1350_v13 = vpack.c.bf16 %v865_v10, %v865_v10  ;;  %1141 = vst.msk [vmem:[%s1701_s16 + $0xb0] sm:$0xf] %vm1096_vm0, %v1375_v11  ;;  %v1376_v14 = vpack.c.bf16 %v891_v12, %v891_v12 }
 0x169   : > { %v727_v15 = vpop.f32.mrb[40].mxu0  ;;  %v831_v16 = vpop.f32.mrb[40].mxu1 }
 0x16a   : > { %1116 = vst.msk [vmem:[%s1701_s16 + $0x4c] sm:$0xf] %vm1096_vm0, %v1350_v13  ;;  %1142 = vst.msk [vmem:[%s1701_s16 + $0xb4] sm:$0xf] %vm1096_vm0, %v1376_v14  ;;  %v728_v17 = vadd.f32 %v1691_v3, %v727_v15  ;;  %v729_v18 = vpop.f32.mrb[41].mxu0  ;;  %v832_v19 = vadd.f32 %v1691_v3, %v831_v16  ;;  %v833_v20 = vpop.f32.mrb[41].mxu1 }
 0x16b   : > { %v730_v21 = vpop.f32.mrb[42].mxu0  ;;  %v834_v22 = vpop.f32.mrb[42].mxu1 }
 0x16c   : > { %v866_v23 = vmax.f32 %v728_v17, 0.0  ;;  %v731_v24 = vadd.f32 %v1691_v3, %v730_v21  ;;  %v732_v25 = vpop.f32.mrb[43].mxu0  ;;  %v892_v26 = vmax.f32 %v832_v19, 0.0  ;;  %v835_v27 = vadd.f32 %v1691_v3, %v834_v22  ;;  %v836_v28 = vpop.f32.mrb[43].mxu1 }
 0x16e   : > { %v1351_v29 = vpack.c.bf16 %v866_v23, %v866_v23  ;;  %v867_v30 = vmax.f32 %v731_v24, 0.0  ;;  %v1377_v31 = vpack.c.bf16 %v892_v26, %v892_v26  ;;  %v893_v32 = vmax.f32 %v835_v27, 0.0 }
 0x170   : > { %1117 = vst.msk [vmem:[%s1701_s16 + $0x50] sm:$0xf] %vm1096_vm0, %v1351_v29  ;;  %v1352_v33 = vpack.c.bf16 %v867_v30, %v867_v30  ;;  %1143 = vst.msk [vmem:[%s1701_s16 + $0xb8] sm:$0xf] %vm1096_vm0, %v1377_v31  ;;  %v1378_v34 = vpack.c.bf16 %v893_v32, %v893_v32 }
 0x171   : > { %v735_v35 = vpop.f32.mrb[44].mxu0  ;;  %v839_v36 = vpop.f32.mrb[44].mxu1 }
 0x172   : > { %1118 = vst.msk [vmem:[%s1701_s16 + $0x54] sm:$0xf] %vm1096_vm0, %v1352_v33  ;;  %1144 = vst.msk [vmem:[%s1701_s16 + $0xbc] sm:$0xf] %vm1096_vm0, %v1378_v34  ;;  %v736_v37 = vadd.f32 %v1691_v3, %v735_v35  ;;  %v737_v38 = vpop.f32.mrb[45].mxu0  ;;  %v840_v39 = vadd.f32 %v1691_v3, %v839_v36  ;;  %v841_v40 = vpop.f32.mrb[45].mxu1 }
 0x173   : > { %v738_v41 = vpop.f32.mrb[46].mxu0  ;;  %v842_v42 = vpop.f32.mrb[46].mxu1 }
 0x174   : > { %v868_v43 = vmax.f32 %v736_v37, 0.0  ;;  %v739_v44 = vadd.f32 %v1691_v3, %v738_v41  ;;  %v740_v45 = vpop.f32.mrb[47].mxu0  ;;  %v894_v46 = vmax.f32 %v840_v39, 0.0  ;;  %v843_v47 = vadd.f32 %v1691_v3, %v842_v42  ;;  %v844_v48 = vpop.f32.mrb[47].mxu1 }
 0x176   : > { %v1353_v49 = vpack.c.bf16 %v868_v43, %v868_v43  ;;  %v869_v50 = vmax.f32 %v739_v44, 0.0  ;;  %v1379_v51 = vpack.c.bf16 %v894_v46, %v894_v46  ;;  %v895_v52 = vmax.f32 %v843_v47, 0.0 }
 0x178   : > { %1119 = vst.msk [vmem:[%s1701_s16 + $0x58] sm:$0xf] %vm1096_vm0, %v1353_v49  ;;  %v1354_v53 = vpack.c.bf16 %v869_v50, %v869_v50  ;;  %1145 = vst.msk [vmem:[%s1701_s16 + $0xc0] sm:$0xf] %vm1096_vm0, %v1379_v51  ;;  %v1380_v54 = vpack.c.bf16 %v895_v52, %v895_v52 }
 0x179   : > { %v743_v55 = vpop.f32.mrb[48].mxu0 }
 0x17a   : > { %1120 = vst.msk [vmem:[%s1701_s16 + $0x5c] sm:$0xf] %vm1096_vm0, %v1354_v53  ;;  %1146 = vst.msk [vmem:[%s1701_s16 + $0xc4] sm:$0xf] %vm1096_vm0, %v1380_v54  ;;  %v744_v56 = vadd.f32 %v1691_v3, %v743_v55  ;;  %v745_v57 = vpop.f32.mrb[49].mxu0 }
 0x17b   : > { %v746_v58 = vpop.f32.mrb[50].mxu0 }
 0x17c   : > { %v870_v59 = vmax.f32 %v744_v56, 0.0  ;;  %v747_v60 = vadd.f32 %v1691_v3, %v746_v58  ;;  %v748_v61 = vpop.f32.mrb[51].mxu0 }
 0x17e   : > { %v1355_v62 = vpack.c.bf16 %v870_v59, %v870_v59  ;;  %v871_v63 = vmax.f32 %v747_v60, 0.0 }
 0x180   : > { %1121 = vst.msk [vmem:[%s1701_s16 + $0x60] sm:$0xf] %vm1096_vm0, %v1355_v62  ;;  %v1356_v0 = vpack.c.bf16 %v871_v63, %v871_v63 }
 0x182   : > { %1122 = vst.msk [vmem:[%s1701_s16 + $0x64] sm:$0xf] %vm1096_vm0, %v1356_v0 }
 0x183 PF: > { %s13_s12 = sadd.s32 1, %s1519_s12  }
 0x184   : > { %p10_p4 = scmp.ge.s32.totalorder %s13_s12, 4  }
 0x186   :  { %12 = sbr.rel (!%p10_p4) target bundleno = 1 (0x1), region = 62 }

// kernel: data_dim_reduce_forward.6
= control target key start
LH: loop header
LB: loop body
LE: loop exit
PB: predicated region body
PF: predicated region fallthrough
CT: control target
= control target key end

     0   :  { %vm294_vm0 = vcmask 257024   ;;  %vm301_vm1 = vcmask 253952   ;;  %s548_s1 = inlined_call_operand.vmem [shape: bf16[256,32], index: 1, kind: input, shape index: {}]   ;;  %s549_s0 = inlined_call_operand.vmem [shape: bf16[50,256], index: 0, kind: input, shape index: {}]   ;;  %s550_s2 = inlined_call_operand.vmem [shape: f32[1,32], index: 2, kind: input, shape index: {}]   ;;  %s551_s3 = inlined_call_operand.vmem [shape: bf16[50,32], index: 3, kind: output, shape index: {}]  }
   0x1   :  { %v402_v0 = vld [vmem:[%s548_s1 + $0x40] sm:$0xff]   ;;  %v404_v2 = vld [vmem:[%s548_s1 + $0x48] sm:$0xff]   ;;  %v406_v4 = vld [vmem:[%s548_s1 + $0x50] sm:$0xff]  }
   0x2   :  { %v403_v1 = vld [vmem:[%s548_s1] sm:$0xff]   ;;  %346 = vmatprep.subr.bf16.mxu0 %v402_v0  ;;  %386 = vmatprep.subr.bf16.mxu1 %v402_v0  ;;  %v405_v3 = vld [vmem:[%s548_s1 + $0x8] sm:$0xff]   ;;  %v407_v5 = vld [vmem:[%s548_s1 + $0x10] sm:$0xff]  }
   0x3   :  { %347 = vmatpush3.bf16.msra.mxu0 %v403_v1  ;;  %394 = vmatpush3.bf16.msra.mxu1 %v403_v1  ;;  %v408_v6 = vld [vmem:[%s548_s1 + $0x58] sm:$0xff]   ;;  %v410_v8 = vld [vmem:[%s548_s1 + $0x60] sm:$0xff]   ;;  %v412_v10 = vld [vmem:[%s548_s1 + $0x68] sm:$0xff]  }
   0x4   :  { %348 = vmatprep.subr.bf16.mxu0 %v404_v2  ;;  %387 = vmatprep.subr.bf16.mxu1 %v404_v2  ;;  %v409_v7 = vld [vmem:[%s548_s1 + $0x18] sm:$0xff]   ;;  %v411_v9 = vld [vmem:[%s548_s1 + $0x20] sm:$0xff]   ;;  %v413_v13 = vld [vmem:[%s548_s1 + $0x28] sm:$0xff]  }
   0x5   :  { %v420_v11 = vld [vmem:[%s549_s0 + $0x4] ss:$8 sps:$4 sm:$0xff]   ;;  %v414_v14 = vld [vmem:[%s548_s1 + $0x70] sm:$0xff]   ;;  %v416_v16 = vld [vmem:[%s548_s1 + $0x78] sm:$0xff]  }
   0x6   :  { %v423_v12 = vld [vmem:[%s549_s0 + $0x24] ss:$8 sps:$4 sm:$0xff]   ;;  %226 = vmatprep.mubr.bf16.mxu0 %v420_v11  ;;  %v415_v15 = vld [vmem:[%s548_s1 + $0x30] sm:$0xff]   ;;  %v417_v17 = vld [vmem:[%s548_s1 + $0x38] sm:$0xff]  }
   0x7   :  { %349 = vmatpush3.bf16.msra.mxu0 %v405_v3  ;;  %395 = vmatpush3.bf16.msra.mxu1 %v405_v3  ;;  %v21_v18 = vld [vmem:[%s549_s0 + $0x30] sm:$0x11]  ;;  %v418_v19 = vld [vmem:[%s549_s0] ss:$8 sps:$4 sm:$0xff]  }
   0x8   :  { %350 = vmatprep.subr.bf16.mxu0 %v406_v4  ;;  %388 = vmatprep.subr.bf16.mxu1 %v406_v4  ;;  %v421_v20 = vld [vmem:[%s549_s0 + $0x20] ss:$8 sps:$4 sm:$0xff]   ;;  %v424_v21 = vld [vmem:[%s549_s0 + $0x14] ss:$8 sps:$4 sm:$0xff]   ;;  %v315_v22 = vcombine.high %v21_v18, %v21_v18  ;;  %v427_v23 = vld [vmem:[%s549_s0 + $0x10] ss:$8 sps:$4 sm:$0xff]   ;;  %v314_v24 = vcombine.low %v21_v18, %v21_v18 }
   0x9   :  { %242 = vmatprep.mubr.bf16.mxu1 %v423_v12  ;;  %v307_v27 = vld [vmem:[%s550_s2] ss:$0 sm:$0xff] }
   0xb   :  { %351 = vmatpush3.bf16.msra.mxu0 %v407_v5  ;;  %396 = vmatpush3.bf16.msra.mxu1 %v407_v5 }
   0xc   :  { %352 = vmatprep.subr.bf16.mxu0 %v408_v6  ;;  %389 = vmatprep.subr.bf16.mxu1 %v408_v6 }
   0xf   :  { %353 = vmatpush3.bf16.msra.mxu0 %v409_v7  ;;  %397 = vmatpush3.bf16.msra.mxu1 %v409_v7 }
  0x10   :  { %354 = vmatprep.subr.bf16.mxu0 %v410_v8  ;;  %390 = vmatprep.subr.bf16.mxu1 %v410_v8 }
  0x13   :  { %355 = vmatpush3.bf16.msra.mxu0 %v411_v9  ;;  %398 = vmatpush3.bf16.msra.mxu1 %v411_v9 }
  0x14   :  { %356 = vmatprep.subr.bf16.mxu0 %v412_v10  ;;  %391 = vmatprep.subr.bf16.mxu1 %v412_v10 }
  0x17   :  { %357 = vmatpush3.bf16.msra.mxu0 %v413_v13  ;;  %399 = vmatpush3.bf16.msra.mxu1 %v413_v13 }
  0x18   :  { %358 = vmatprep.subr.bf16.mxu0 %v414_v14  ;;  %392 = vmatprep.subr.bf16.mxu1 %v414_v14 }
  0x1b   :  { %359 = vmatpush3.bf16.msra.mxu0 %v415_v15  ;;  %400 = vmatpush3.bf16.msra.mxu1 %v415_v15 }
  0x1c   :  { %360 = vmatprep.subr.bf16.mxu0 %v416_v16  ;;  %393 = vmatprep.subr.bf16.mxu1 %v416_v16 }
  0x1f   :  { %361 = vmatpush3.bf16.msra.mxu0 %v417_v17  ;;  %401 = vmatpush3.bf16.msra.mxu1 %v417_v17 }
  0x22   :  { %227 = vmatmul.mubr.bf16.vlgmr.msra.gmra.mrb[0].mxu0 %v418_v19  ;;  %243 = vmatmul.mubr.bf16.vlgmr.msra.gmra.mrb[0].mxu1 %v421_v20 }
  0x23   :  { %234 = vmatprep.mubr.bf16.mxu0 %v424_v21  ;;  %250 = vmatprep.mubr.bf16.mxu1 %v315_v22 }
  0x2a   :  { %235 = vmatmul.mubr.bf16.gmra.mrb[4].mxu0 %v427_v23  ;;  %251 = vmatmul.mubr.bf16.gmra.mrb[4].mxu1 %v314_v24 }
  0xf5   :  { %v362_v25 = vpop.f32.mrb[0].mxu0  ;;  %v374_v26 = vpop.f32.mrb[0].mxu1 }
  0xf6   :  { %v363_v28 = vpop.f32.mrb[1].mxu0  ;;  %v375_v29 = vpop.f32.mrb[1].mxu1 }
  0xf7   :  { %v364_v30 = vadd.f32 %v363_v28, %v362_v25  ;;  %v376_v31 = vadd.f32 %v375_v29, %v374_v26  ;;  %v365_v32 = vpop.f32.mrb[2].mxu0  ;;  %v377_v33 = vpop.f32.mrb[2].mxu1 }
  0xf8   :  { %v366_v34 = vpop.f32.mrb[3].mxu0  ;;  %v378_v35 = vpop.f32.mrb[3].mxu1 }
  0xf9   :  { %v229_v36 = vadd.f32 %v364_v30, %v307_v27  ;;  %v245_v37 = vadd.f32 %v376_v31, %v307_v27  ;;  %v367_v38 = vadd.f32 %v366_v34, %v365_v32  ;;  %v379_v39 = vadd.f32 %v378_v35, %v377_v33 }
  0xfb   :  { %v258_v40 = vmax.f32 %v229_v36, 0.0  ;;  %v262_v41 = vmax.f32 %v245_v37, 0.0  ;;  %v232_v42 = vadd.f32 %v367_v38, %v307_v27  ;;  %v248_v43 = vadd.f32 %v379_v39, %v307_v27 }
  0xfd   :  { %v339_v44 = vpack.c.bf16 %v258_v40, %v258_v40  ;;  %v343_v45 = vpack.c.bf16 %v262_v41, %v262_v41  ;;  %v259_v46 = vmax.f32 %v232_v42, 0.0  ;;  %v263_v47 = vmax.f32 %v248_v43, 0.0  ;;  %v368_v48 = vpop.f32.mrb[4].mxu0  ;;  %v380_v49 = vpop.f32.mrb[4].mxu1 }
  0xfe   :  { %v369_v50 = vpop.f32.mrb[5].mxu0  ;;  %v381_v51 = vpop.f32.mrb[5].mxu1 }
  0xff   :  { %295 = vst.msk [vmem:[%s551_s3] sm:$0xf] %vm294_vm0, %v339_v44  ;;  %299 = vst.msk [vmem:[%s551_s3 + $0x10] sm:$0xf] %vm294_vm0, %v343_v45  ;;  %v340_v52 = vpack.c.bf16 %v259_v46, %v259_v46  ;;  %v344_v53 = vpack.c.bf16 %v263_v47, %v263_v47  ;;  %v370_v54 = vadd.f32 %v369_v50, %v368_v48  ;;  %v371_v56 = vpop.f32.mrb[6].mxu0  ;;  %v383_v57 = vpop.f32.mrb[6].mxu1 }
 0x100   :  { %v382_v55 = vadd.f32 %v381_v51, %v380_v49  ;;  %v372_v58 = vpop.f32.mrb[7].mxu0  ;;  %v384_v59 = vpop.f32.mrb[7].mxu1 }
 0x101   :  { %296 = vst.msk [vmem:[%s551_s3 + $0x4] sm:$0xf] %vm294_vm0, %v340_v52  ;;  %300 = vst.msk [vmem:[%s551_s3 + $0x14] sm:$0xf] %vm294_vm0, %v344_v53  ;;  %v237_v60 = vadd.f32 %v370_v54, %v307_v27  ;;  %v373_v62 = vadd.f32 %v372_v58, %v371_v56 }
 0x102   :  { %v253_v61 = vadd.f32 %v382_v55, %v307_v27 }
 0x103   :  { %v260_v63 = vmax.f32 %v237_v60, 0.0  ;;  %v240_v1 = vadd.f32 %v373_v62, %v307_v27 }
 0x104   :  { %v264_v0 = vmax.f32 %v253_v61, 0.0 }
 0x105   :  { %v341_v2 = vpack.c.bf16 %v260_v63, %v260_v63  ;;  %v261_v4 = vmax.f32 %v240_v1, 0.0 }
 0x106   :  { %v345_v3 = vpack.c.bf16 %v264_v0, %v264_v0 }
 0x107   :  { %297 = vst.msk [vmem:[%s551_s3 + $0x8] sm:$0xf] %vm294_vm0, %v341_v2  ;;  %v342_v5 = vpack.c.bf16 %v261_v4, %v261_v4 }
 0x108   :  { %302 = vst.msk [vmem:[%s551_s3 + $0x18] sm:$0x1] %vm301_vm1, %v345_v3 }
 0x109   :  { %298 = vst.msk [vmem:[%s551_s3 + $0xc] sm:$0xf] %vm294_vm0, %v342_v5 }

// kernel: data_dim_reduce_forward.7
= control target key start
LH: loop header
LB: loop body
LE: loop exit
PB: predicated region body
PF: predicated region fallthrough
CT: control target
= control target key end

     0   :  { %vm235_vm0 = vcmask 261120   ;;  %vm412_vm1 = vcmask 519168   ;;  %vm419_vm2 = vcmask 516096   ;;  %s722_s1 = inlined_call_operand.vmem [shape: bf16[288,64], index: 1, kind: input, shape index: {}]   ;;  %s723_s0 = inlined_call_operand.vmem [shape: bf16[50,288], index: 0, kind: input, shape index: {}]   ;;  %s724_s2 = inlined_call_operand.vmem [shape: f32[1,64], index: 2, kind: input, shape index: {}]   ;;  %s725_s3 = inlined_call_operand.vmem [shape: bf16[50,64], index: 3, kind: output, shape index: {}]  }
   0x1   :  { %v548_v0 = vld [vmem:[%s722_s1 + $0x40] sm:$0xff]   ;;  %v550_v2 = vld [vmem:[%s722_s1 + $0x48] sm:$0xff]   ;;  %v552_v4 = vld [vmem:[%s722_s1 + $0x50] sm:$0xff]  }
   0x2   :  { %v549_v1 = vld [vmem:[%s722_s1] sm:$0xff]   ;;  %474 = vmatprep.subr.bf16.mxu0 %v548_v0  ;;  %532 = vmatprep.subr.bf16.mxu1 %v548_v0  ;;  %v551_v3 = vld [vmem:[%s722_s1 + $0x8] sm:$0xff]   ;;  %v553_v5 = vld [vmem:[%s722_s1 + $0x10] sm:$0xff]  }
   0x3   :  { %475 = vmatpush3.bf16.msra.mxu0 %v549_v1  ;;  %540 = vmatpush3.bf16.msra.mxu1 %v549_v1  ;;  %v554_v6 = vld [vmem:[%s722_s1 + $0x58] sm:$0xff]   ;;  %v556_v8 = vld [vmem:[%s722_s1 + $0x60] sm:$0xff]   ;;  %v558_v10 = vld [vmem:[%s722_s1 + $0x68] sm:$0xff]  }
   0x4   :  { %476 = vmatprep.subr.bf16.mxu0 %v550_v2  ;;  %533 = vmatprep.subr.bf16.mxu1 %v550_v2  ;;  %v555_v7 = vld [vmem:[%s722_s1 + $0x18] sm:$0xff]   ;;  %v557_v9 = vld [vmem:[%s722_s1 + $0x20] sm:$0xff]   ;;  %v27_v12 = vld [vmem:[%s723_s0 + $0x48] sm:$0x11] }
   0x5   :  { %v566_v11 = vld [vmem:[%s723_s0 + $0x4] ss:$12 sps:$4 sm:$0xff]   ;;  %v436_v13 = vcombine.high %v27_v12, %v27_v12  ;;  %v559_v14 = vld [vmem:[%s722_s1 + $0x28] sm:$0xff]   ;;  %v562_v17 = vld [vmem:[%s722_s1 + $0x78] sm:$0xff]   ;;  %v435_v21 = vcombine.low %v27_v12, %v27_v12 }
   0x6   :  { %v560_v15 = vld [vmem:[%s722_s1 + $0x70] sm:$0xff]   ;;  %280 = vmatprep.mubr.bf16.mxu0 %v566_v11  ;;  %v563_v18 = vld [vmem:[%s722_s1 + $0x38] sm:$0xff]   ;;  %v569_v19 = vld [vmem:[%s722_s1 + $0x80] sm:$0xff]  }
   0x7   :  { %477 = vmatpush3.bf16.msra.mxu0 %v551_v3  ;;  %541 = vmatpush3.bf16.msra.mxu1 %v551_v3  ;;  %v561_v16 = vld [vmem:[%s722_s1 + $0x30] sm:$0xff]   ;;  %v564_v20 = vld [vmem:[%s723_s0] ss:$12 sps:$4 sm:$0xff]   ;;  %v571_v22 = vld [vmem:[%s723_s0 + $0x1c] ss:$12 sps:$4 sm:$0xff]  }
   0x8   :  { %478 = vmatprep.subr.bf16.mxu0 %v552_v4  ;;  %534 = vmatprep.subr.bf16.mxu1 %v552_v4  ;;  %v570_v23 = vld [vmem:[%s722_s1 + $0x88] sm:$0xff]   ;;  %v574_v25 = vld [vmem:[%s723_s0 + $0x18] ss:$12 sps:$4 sm:$0xff]   ;;  %v576_v27 = vld [vmem:[%s723_s0 + $0x34] ss:$12 sps:$4 sm:$0xff]  }
   0x9   :  { %304 = vmatprep.mubr.bf16.mxu1 %v436_v13  ;;  %v573_v24 = vld [vmem:[%s723_s0 + $0x8] ss:$12 sps:$4 sm:$0xff]   ;;  %v575_v26 = vld [vmem:[%s723_s0 + $0x20] ss:$12 sps:$4 sm:$0xff]   ;;  %v578_v28 = vld [vmem:[%s723_s0 + $0x38] ss:$12 sps:$4 sm:$0xff]  }
   0xa   :  { %v579_v29 = vld [vmem:[%s723_s0 + $0x30] ss:$12 sps:$4 sm:$0xff]   ;;  %v425_v42 = vld [vmem:[%s724_s2] ss:$0 sm:$0xff] }
   0xb   :  { %479 = vmatpush3.bf16.msra.mxu0 %v553_v5  ;;  %542 = vmatpush3.bf16.msra.mxu1 %v553_v5  ;;  %v580_v30 = vld [vmem:[%s723_s0 + $0x50] ss:$0 sps:$4 sm:$0x11]  }
   0xc   :  { %480 = vmatprep.subr.bf16.mxu0 %v554_v6  ;;  %535 = vmatprep.subr.bf16.mxu1 %v554_v6 }
   0xf   :  { %481 = vmatpush3.bf16.msra.mxu0 %v555_v7  ;;  %543 = vmatpush3.bf16.msra.mxu1 %v555_v7 }
  0x10   :  { %482 = vmatprep.subr.bf16.mxu0 %v556_v8  ;;  %536 = vmatprep.subr.bf16.mxu1 %v556_v8 }
  0x13   :  { %483 = vmatpush3.bf16.msra.mxu0 %v557_v9  ;;  %544 = vmatpush3.bf16.msra.mxu1 %v557_v9 }
  0x14   :  { %484 = vmatprep.subr.bf16.mxu0 %v558_v10  ;;  %537 = vmatprep.subr.bf16.mxu1 %v558_v10 }
  0x17   :  { %485 = vmatpush3.bf16.msra.mxu0 %v559_v14  ;;  %545 = vmatpush3.bf16.msra.mxu1 %v559_v14 }
  0x18   :  { %486 = vmatprep.subr.bf16.mxu0 %v560_v15  ;;  %538 = vmatprep.subr.bf16.mxu1 %v560_v15 }
  0x1b   :  { %487 = vmatpush3.bf16.msra.mxu0 %v561_v16  ;;  %546 = vmatpush3.bf16.msra.mxu1 %v561_v16 }
  0x1c   :  { %488 = vmatprep.subr.bf16.mxu0 %v562_v17  ;;  %539 = vmatprep.subr.bf16.mxu1 %v562_v17 }
  0x1f   :  { %489 = vmatpush3.bf16.msra.mxu0 %v563_v18  ;;  %547 = vmatpush3.bf16.msra.mxu1 %v563_v18 }
  0x20   :  { %520 = vmatprep.subr.bf16.mxu1 %v569_v19 }
  0x22   :  { %281 = vmatmul.mubr.bf16.vlgmr.msra.gmra.mrb[0].mxu0 %v564_v20  ;;  %305 = vmatmul.mubr.bf16.vlgmr.msra.gmra.mrb[0].mxu1 %v435_v21 }
  0x23   :  { %521 = vmatpush3.bf16.msra.mxu1 %v569_v19  ;;  %288 = vmatprep.mubr.bf16.mxu0 %v571_v22 }
  0x24   :  { %522 = vmatprep.subr.bf16.mxu1 %v570_v23  ;;  %524 = vmatprep.mubr.msk.bf16.mxu1 %vm235_vm0, %v573_v24 }
  0x27   :  { %523 = vmatpush3.bf16.msra.mxu1 %v570_v23 }
  0x2a   :  { %289 = vmatmul.mubr.bf16.gmra.mrb[4].mxu0 %v574_v25  ;;  %525 = vmatmul.mubr.msk.bf16.vlgmr.msra.gmra.mrb[4].mxu1 %vm235_vm0, %v575_v26 }
  0x2b   :  { %296 = vmatprep.mubr.bf16.mxu0 %v576_v27  ;;  %528 = vmatprep.mubr.msk.bf16.mxu1 %vm235_vm0, %v578_v28 }
  0x32   :  { %297 = vmatmul.mubr.bf16.gmra.mrb[8].mxu0 %v579_v29  ;;  %529 = vmatmul.mubr.msk.bf16.gmra.mrb[8].mxu1 %vm235_vm0, %v580_v30 }
  0xf5   :  { %v490_v31 = vpop.f32.mrb[0].mxu0  ;;  %v508_v32 = vpop.f32.mrb[0].mxu1 }
  0xf6   :  { %v491_v33 = vpop.f32.mrb[1].mxu0  ;;  %v509_v34 = vpop.f32.mrb[1].mxu1 }
  0xf7   :  { %v492_v35 = vadd.f32 %v491_v33, %v490_v31  ;;  %v493_v36 = vpop.f32.mrb[2].mxu0  ;;  %v510_v37 = vadd.f32 %v509_v34, %v508_v32  ;;  %v511_v38 = vpop.f32.mrb[2].mxu1 }
  0xf8   :  { %v494_v39 = vpop.f32.mrb[3].mxu0  ;;  %v512_v40 = vpop.f32.mrb[3].mxu1 }
  0xf9   :  { %v495_v41 = vadd.f32 %v494_v39, %v493_v36  ;;  %v283_v45 = vadd.f32 %v492_v35, %v425_v42  ;;  %v307_v63 = vadd.f32 %v510_v37, %v425_v42 }
  0xfb   :  { %v286_v52 = vadd.f32 %v495_v41, %v425_v42 }
  0xfd   :  { %v496_v43 = vpop.f32.mrb[4].mxu0  ;;  %v526_v44 = vpop.f32.mrb[4].mxu1 }
  0xfe   :  { %v497_v46 = vpop.f32.mrb[5].mxu0  ;;  %v346_v47 = vpop.f32.mrb[5].mxu1 }
  0xff   :  { %v498_v48 = vadd.f32 %v497_v46, %v496_v43  ;;  %v347_v49 = vadd.f32 %v346_v47, %v283_v45  ;;  %v499_v50 = vpop.f32.mrb[6].mxu0  ;;  %v527_v51 = vpop.f32.mrb[6].mxu1 }
 0x100   :  { %v500_v53 = vpop.f32.mrb[7].mxu0  ;;  %v349_v54 = vpop.f32.mrb[7].mxu1 }
 0x101   :  { %v291_v55 = vadd.f32 %v498_v48, %v425_v42  ;;  %v376_v56 = vmax.f32 %v347_v49, 0.0  ;;  %v501_v57 = vadd.f32 %v500_v53, %v499_v50  ;;  %v350_v58 = vadd.f32 %v349_v54, %v286_v52 }
 0x103   :  { %v355_v59 = vadd.f32 %v526_v44, %v291_v55  ;;  %v467_v60 = vpack.c.bf16 %v376_v56, %v376_v56  ;;  %v294_v61 = vadd.f32 %v501_v57, %v425_v42  ;;  %v377_v62 = vmax.f32 %v350_v58, 0.0 }
 0x105   :  { %v378_v0 = vmax.f32 %v355_v59, 0.0  ;;  %413 = vst.msk [vmem:[%s725_s3] sm:$0xf] %vm412_vm1, %v467_v60  ;;  %v358_v1 = vadd.f32 %v527_v51, %v294_v61  ;;  %v468_v2 = vpack.c.bf16 %v377_v62, %v377_v62  ;;  %v502_v3 = vpop.f32.mrb[8].mxu0  ;;  %v530_v4 = vpop.f32.mrb[8].mxu1 }
 0x106   :  { %v371_v5 = vadd.f32 %v530_v4, %v307_v63  ;;  %v503_v6 = vpop.f32.mrb[9].mxu0  ;;  %v362_v7 = vpop.f32.mrb[9].mxu1 }
 0x107   :  { %v469_v8 = vpack.c.bf16 %v378_v0, %v378_v0  ;;  %v379_v9 = vmax.f32 %v358_v1, 0.0  ;;  %414 = vst.msk [vmem:[%s725_s3 + $0x4] sm:$0xf] %vm412_vm1, %v468_v2  ;;  %v504_v10 = vadd.f32 %v503_v6, %v502_v3  ;;  %v505_v11 = vpop.f32.mrb[10].mxu0  ;;  %v531_v12 = vpop.f32.mrb[10].mxu1 }
 0x108   :  { %v382_v13 = vmax.f32 %v371_v5, 0.0  ;;  %v506_v14 = vpop.f32.mrb[11].mxu0  ;;  %v365_v15 = vpop.f32.mrb[11].mxu1 }
 0x109   :  { %415 = vst.msk [vmem:[%s725_s3 + $0x8] sm:$0xf] %vm412_vm1, %v469_v8  ;;  %v470_v16 = vpack.c.bf16 %v379_v9, %v379_v9  ;;  %v299_v17 = vadd.f32 %v504_v10, %v425_v42  ;;  %v507_v18 = vadd.f32 %v506_v14, %v505_v11 }
 0x10a   :  { %v473_v19 = vpack.c.bf16 %v382_v13, %v382_v13 }
 0x10b   :  { %416 = vst.msk [vmem:[%s725_s3 + $0xc] sm:$0xf] %vm412_vm1, %v470_v16  ;;  %v363_v20 = vadd.f32 %v362_v7, %v299_v17  ;;  %v302_v21 = vadd.f32 %v507_v18, %v425_v42 }
 0x10c   :  { %420 = vst.msk [vmem:[%s725_s3 + $0x18] sm:$0x1] %vm419_vm2, %v473_v19 }
 0x10d   :  { %v380_v22 = vmax.f32 %v363_v20, 0.0  ;;  %v366_v23 = vadd.f32 %v365_v15, %v302_v21 }
 0x10f   :  { %v471_v24 = vpack.c.bf16 %v380_v22, %v380_v22  ;;  %v381_v25 = vmax.f32 %v366_v23, 0.0 }
 0x111   :  { %417 = vst.msk [vmem:[%s725_s3 + $0x10] sm:$0xf] %vm412_vm1, %v471_v24  ;;  %v472_v26 = vpack.c.bf16 %v381_v25, %v381_v25 }
 0x113   :  { %418 = vst.msk [vmem:[%s725_s3 + $0x14] sm:$0xf] %vm412_vm1, %v472_v26 }

// kernel: data_dim_reduce_forward.8
= control target key start
LH: loop header
LB: loop body
LE: loop exit
PB: predicated region body
PF: predicated region fallthrough
CT: control target
= control target key end

     0   :  { %vm423_vm0 = vcmask 523264   ;;  %s1131_s1 = inlined_call_operand.vmem [shape: bf16[576,128], index: 1, kind: input, shape index: {}]   ;;  %s1132_s0 = inlined_call_operand.vmem [shape: bf16[50,576], index: 0, kind: input, shape index: {}]   ;;  %s1133_s2 = inlined_call_operand.vmem [shape: f32[1,128], index: 2, kind: input, shape index: {}]   ;;  %s1134_s3 = inlined_call_operand.vmem [shape: bf16[50,128], index: 3, kind: output, shape index: {}]  }
   0x1   :  { %v872_v0 = vld [vmem:[%s1131_s1 + $0x40] sm:$0xff]   ;;  %v876_v4 = vld [vmem:[%s1131_s1 + $0x48] sm:$0xff]   ;;  %v880_v8 = vld [vmem:[%s1131_s1 + $0x50] sm:$0xff]  }
   0x2   :  { %v873_v1 = vld [vmem:[%s1131_s1 + $0xc0] sm:$0xff]   ;;  %760 = vmatprep.subr.bf16.mxu0 %v872_v0  ;;  %v877_v5 = vld [vmem:[%s1131_s1 + $0xc8] sm:$0xff]   ;;  %v881_v9 = vld [vmem:[%s1131_s1 + $0xd0] sm:$0xff]  }
   0x3   :  { %v874_v2 = vld [vmem:[%s1131_s1] sm:$0xff]   ;;  %800 = vmatprep.subr.bf16.mxu1 %v873_v1  ;;  %v878_v6 = vld [vmem:[%s1131_s1 + $0x8] sm:$0xff]   ;;  %v882_v10 = vld [vmem:[%s1131_s1 + $0x10] sm:$0xff]  }
   0x4   :  { %v875_v3 = vld [vmem:[%s1131_s1 + $0x80] sm:$0xff]   ;;  %761 = vmatpush3.bf16.msra.mxu0 %v874_v2  ;;  %v879_v7 = vld [vmem:[%s1131_s1 + $0x88] sm:$0xff]   ;;  %v883_v11 = vld [vmem:[%s1131_s1 + $0x90] sm:$0xff]  }
   0x5   :  { %801 = vmatpush3.bf16.msra.mxu1 %v875_v3  ;;  %762 = vmatprep.subr.bf16.mxu0 %v876_v4  ;;  %v884_v12 = vld [vmem:[%s1131_s1 + $0x58] sm:$0xff]   ;;  %v888_v16 = vld [vmem:[%s1131_s1 + $0x60] sm:$0xff]   ;;  %v892_v20 = vld [vmem:[%s1131_s1 + $0x68] sm:$0xff]  }
   0x6   :  { %802 = vmatprep.subr.bf16.mxu1 %v877_v5  ;;  %v885_v13 = vld [vmem:[%s1131_s1 + $0xd8] sm:$0xff]   ;;  %v889_v17 = vld [vmem:[%s1131_s1 + $0xe0] sm:$0xff]   ;;  %v893_v21 = vld [vmem:[%s1131_s1 + $0xe8] sm:$0xff]  }
   0x7   :  { %v886_v14 = vld [vmem:[%s1131_s1 + $0x18] sm:$0xff]   ;;  %v890_v18 = vld [vmem:[%s1131_s1 + $0x20] sm:$0xff]   ;;  %v894_v22 = vld [vmem:[%s1131_s1 + $0x28] sm:$0xff]  }
   0x8   :  { %763 = vmatpush3.bf16.msra.mxu0 %v878_v6  ;;  %v887_v15 = vld [vmem:[%s1131_s1 + $0x98] sm:$0xff]   ;;  %v891_v19 = vld [vmem:[%s1131_s1 + $0xa0] sm:$0xff]   ;;  %v895_v23 = vld [vmem:[%s1131_s1 + $0xa8] sm:$0xff]  }
   0x9   :  { %803 = vmatpush3.bf16.msra.mxu1 %v879_v7  ;;  %764 = vmatprep.subr.bf16.mxu0 %v880_v8  ;;  %v896_v24 = vld [vmem:[%s1131_s1 + $0x70] sm:$0xff]   ;;  %v900_v28 = vld [vmem:[%s1131_s1 + $0x78] sm:$0xff]   ;;  %v909_v35 = vld [vmem:[%s1132_s0 + $0xc] ss:$20 sps:$4 sm:$0xff]  }
   0xa   :  { %804 = vmatprep.subr.bf16.mxu1 %v881_v9  ;;  %v897_v25 = vld [vmem:[%s1131_s1 + $0xf0] sm:$0xff]   ;;  %v901_v29 = vld [vmem:[%s1131_s1 + $0xf8] sm:$0xff]   ;;  %v910_v36 = vld [vmem:[%s1131_s1 + $0x100] sm:$0xff]   ;;  %532 = vmatprep.mubr.bf16.mxu1 %v909_v35 }
   0xb   :  { %v898_v26 = vld [vmem:[%s1131_s1 + $0x30] sm:$0xff]   ;;  %v902_v30 = vld [vmem:[%s1131_s1 + $0x38] sm:$0xff]   ;;  %v911_v37 = vld [vmem:[%s1132_s0 + $0x2c] ss:$20 sps:$4 sm:$0xff]  }
   0xc   :  { %765 = vmatpush3.bf16.msra.mxu0 %v882_v10  ;;  %v899_v27 = vld [vmem:[%s1131_s1 + $0xb0] sm:$0xff]   ;;  %v903_v31 = vld [vmem:[%s1131_s1 + $0xb8] sm:$0xff]   ;;  %v917_v39 = vld [vmem:[%s1131_s1 + $0x108] sm:$0xff]  }
   0xd   :  { %805 = vmatpush3.bf16.msra.mxu1 %v883_v11  ;;  %766 = vmatprep.subr.bf16.mxu0 %v884_v12  ;;  %v904_v32 = vld [vmem:[%s1132_s0] ss:$20 sps:$4 sm:$0xff]   ;;  %v906_v33 = vld [vmem:[%s1132_s0 + $0x4] ss:$20 sps:$4 sm:$0xff]   ;;  %v907_v34 = vld [vmem:[%s1132_s0 + $0x8] ss:$20 sps:$4 sm:$0xff]  }
   0xe   :  { %806 = vmatprep.subr.bf16.mxu1 %v885_v13  ;;  %468 = vmatprep.mubr.bf16.mxu0 %v906_v33  ;;  %v913_v38 = vld [vmem:[%s1132_s0 + $0x34] ss:$20 sps:$4 sm:$0xff]   ;;  %v916_v41 = vld [vmem:[%s1132_s0 + $0x30] ss:$20 sps:$4 sm:$0xff]   ;;  %v929_v45 = vld [vmem:[%s1131_s1 + $0x118] sm:$0xff]  }
   0xf   :  { %v915_v40 = vld [vmem:[%s1132_s0 + $0x28] ss:$20 sps:$4 sm:$0xff]   ;;  %v924_v44 = vld [vmem:[%s1131_s1 + $0x110] sm:$0xff]   ;;  %v34_v47 = vld [vmem:[%s1132_s0 + $0x80] sm:$0x11] }
  0x10   :  { %767 = vmatpush3.bf16.msra.mxu0 %v886_v14  ;;  %v918_v42 = vld [vmem:[%s1132_s0 + $0x54] ss:$20 sps:$4 sm:$0xff]   ;;  %v920_v43 = vld [vmem:[%s1132_s0 + $0x5c] ss:$20 sps:$4 sm:$0xff]   ;;  %v923_v49 = vld [vmem:[%s1132_s0 + $0x58] ss:$20 sps:$4 sm:$0xff]   ;;  %v687_v51 = vcombine.high %v34_v47, %v34_v47  ;;  %v686_v53 = vcombine.low %v34_v47, %v34_v47 }
  0x11   :  { %807 = vmatpush3.bf16.msra.mxu1 %v887_v15  ;;  %768 = vmatprep.subr.bf16.mxu0 %v888_v16  ;;  %v33_v46 = vld [vmem:[%s1132_s0 + $0x78] sm:$0x11]  ;;  %v922_v48 = vld [vmem:[%s1132_s0 + $0x50] ss:$20 sps:$4 sm:$0xff]   ;;  %v931_v55 = vld [vmem:[%s1132_s0 + $0x60] ss:$20 sps:$4 sm:$0xff]  }
  0x12   :  { %808 = vmatprep.subr.bf16.mxu1 %v889_v17  ;;  %v685_v50 = vcombine.high %v33_v46, %v33_v46  ;;  %v684_v52 = vcombine.low %v33_v46, %v33_v46  ;;  %v930_v54 = vld [vmem:[%s1132_s0 + $0x10] ss:$20 sps:$4 sm:$0xff]   ;;  %v932_v56 = vld [vmem:[%s1132_s0 + $0x38] ss:$20 sps:$4 sm:$0xff]   ;;  %v668_v60 = vld [vmem:[%s1133_s2] ss:$0 sm:$0xff] }
  0x13   :  { %v933_v57 = vld [vmem:[%s1132_s0 + $0x88] ss:$0 sps:$4 sm:$0x11]  }
  0x14   :  { %769 = vmatpush3.bf16.msra.mxu0 %v890_v18 }
  0x15   :  { %809 = vmatpush3.bf16.msra.mxu1 %v891_v19  ;;  %770 = vmatprep.subr.bf16.mxu0 %v892_v20 }
  0x16   :  { %810 = vmatprep.subr.bf16.mxu1 %v893_v21 }
  0x18   :  { %771 = vmatpush3.bf16.msra.mxu0 %v894_v22 }
  0x19   :  { %811 = vmatpush3.bf16.msra.mxu1 %v895_v23  ;;  %772 = vmatprep.subr.bf16.mxu0 %v896_v24 }
  0x1a   :  { %812 = vmatprep.subr.bf16.mxu1 %v897_v25 }
  0x1c   :  { %773 = vmatpush3.bf16.msra.mxu0 %v898_v26 }
  0x1d   :  { %813 = vmatpush3.bf16.msra.mxu1 %v899_v27  ;;  %774 = vmatprep.subr.bf16.mxu0 %v900_v28 }
  0x1e   :  { %814 = vmatprep.subr.bf16.mxu1 %v901_v29 }
  0x20   :  { %775 = vmatpush3.bf16.msra.mxu0 %v902_v30 }
  0x21   :  { %815 = vmatpush3.bf16.msra.mxu1 %v903_v31  ;;  %848 = vmatprep.subr.bf16.mxu0 %v910_v36 }
  0x22   :  { %864 = vmatprep.subr.bf16.mxu1 %v910_v36 }
  0x23   :  { %469 = vmatmul.mubr.bf16.vlgmr.msra.gmra.mrb[0].mxu0 %v904_v32 }
  0x24   :  { %533 = vmatmul.mubr.bf16.vlgmr.msra.gmra.mrb[0].mxu1 %v907_v34  ;;  %849 = vmatpush3.bf16.msra.mxu0 %v910_v36 }
  0x25   :  { %868 = vmatpush3.bf16.msra.mxu1 %v910_v36  ;;  %476 = vmatprep.mubr.bf16.mxu0 %v911_v37 }
  0x26   :  { %540 = vmatprep.mubr.bf16.mxu1 %v913_v38  ;;  %850 = vmatprep.subr.bf16.mxu0 %v917_v39 }
  0x27   :  { %865 = vmatprep.subr.bf16.mxu1 %v917_v39 }
  0x28   :  { %851 = vmatpush3.bf16.msra.mxu0 %v917_v39 }
  0x29   :  { %869 = vmatpush3.bf16.msra.mxu1 %v917_v39  ;;  %852 = vmatprep.subr.bf16.mxu0 %v924_v44 }
  0x2a   :  { %866 = vmatprep.subr.bf16.mxu1 %v924_v44 }
  0x2b   :  { %477 = vmatmul.mubr.bf16.gmra.mrb[4].mxu0 %v915_v40 }
  0x2c   :  { %541 = vmatmul.mubr.bf16.gmra.mrb[4].mxu1 %v916_v41  ;;  %484 = vmatprep.mubr.bf16.mxu0 %v918_v42 }
  0x2d   :  { %548 = vmatprep.mubr.bf16.mxu1 %v920_v43  ;;  %853 = vmatpush3.bf16.msra.mxu0 %v924_v44 }
  0x2e   :  { %870 = vmatpush3.bf16.msra.mxu1 %v924_v44  ;;  %854 = vmatprep.subr.bf16.mxu0 %v929_v45 }
  0x2f   :  { %867 = vmatprep.subr.bf16.mxu1 %v929_v45 }
  0x31   :  { %855 = vmatpush3.bf16.msra.mxu0 %v929_v45 }
  0x32   :  { %871 = vmatpush3.bf16.msra.mxu1 %v929_v45 }
  0x33   :  { %485 = vmatmul.mubr.bf16.gmra.mrb[8].mxu0 %v922_v48 }
  0x34   :  { %549 = vmatmul.mubr.bf16.gmra.mrb[8].mxu1 %v923_v49  ;;  %492 = vmatprep.mubr.bf16.mxu0 %v685_v50 }
  0x35   :  { %556 = vmatprep.mubr.bf16.mxu1 %v687_v51 }
  0x3b   :  { %493 = vmatmul.mubr.bf16.gmra.mrb[12].mxu0 %v684_v52 }
  0x3c   :  { %557 = vmatmul.mubr.bf16.gmra.mrb[12].mxu1 %v686_v53  ;;  %856 = vmatprep.mubr.msk.bf16.mxu0 %vm423_vm0, %v930_v54 }
  0x3d   :  { %860 = vmatprep.mubr.msk.bf16.mxu1 %vm423_vm0, %v931_v55 }
  0x43   :  { %857 = vmatmul.mubr.msk.bf16.vlgmr.msra.gmra.mrb[16].mxu0 %vm423_vm0, %v932_v56 }
  0x44   :  { %861 = vmatmul.mubr.msk.bf16.vlgmr.msra.gmra.mrb[16].mxu1 %vm423_vm0, %v933_v57 }
  0xf6   :  { %v776_v58 = vpop.f32.mrb[0].mxu0 }
  0xf7   :  { %v816_v59 = vpop.f32.mrb[0].mxu1  ;;  %v777_v61 = vpop.f32.mrb[1].mxu0 }
  0xf8   :  { %v778_v62 = vadd.f32 %v777_v61, %v776_v58  ;;  %v817_v63 = vpop.f32.mrb[1].mxu1  ;;  %v779_v0 = vpop.f32.mrb[2].mxu0 }
  0xf9   :  { %v818_v1 = vadd.f32 %v817_v63, %v816_v59  ;;  %v819_v2 = vpop.f32.mrb[2].mxu1  ;;  %v780_v3 = vpop.f32.mrb[3].mxu0 }
  0xfa   :  { %v471_v4 = vadd.f32 %v778_v62, %v668_v60  ;;  %v781_v5 = vadd.f32 %v780_v3, %v779_v0  ;;  %v820_v6 = vpop.f32.mrb[3].mxu1 }
  0xfb   :  { %v821_v7 = vadd.f32 %v820_v6, %v819_v2 }
  0xfc   :  { %v474_v8 = vadd.f32 %v781_v5, %v668_v60  ;;  %v535_v9 = vadd.f32 %v818_v1, %v471_v4 }
  0xfe   :  { %v782_v10 = vpop.f32.mrb[4].mxu0  ;;  %v538_v11 = vadd.f32 %v821_v7, %v474_v8 }
  0xff   :  { %v822_v12 = vpop.f32.mrb[4].mxu1  ;;  %v783_v13 = vpop.f32.mrb[5].mxu0 }
 0x100   :  { %v784_v14 = vadd.f32 %v783_v13, %v782_v10  ;;  %v823_v15 = vpop.f32.mrb[5].mxu1  ;;  %v785_v16 = vpop.f32.mrb[6].mxu0 }
 0x101   :  { %v824_v17 = vadd.f32 %v823_v15, %v822_v12  ;;  %v825_v18 = vpop.f32.mrb[6].mxu1  ;;  %v786_v19 = vpop.f32.mrb[7].mxu0 }
 0x102   :  { %v479_v20 = vadd.f32 %v784_v14, %v668_v60  ;;  %v787_v21 = vadd.f32 %v786_v19, %v785_v16  ;;  %v826_v22 = vpop.f32.mrb[7].mxu1 }
 0x103   :  { %v827_v23 = vadd.f32 %v826_v22, %v825_v18 }
 0x104   :  { %v482_v24 = vadd.f32 %v787_v21, %v668_v60  ;;  %v543_v25 = vadd.f32 %v824_v17, %v479_v20 }
 0x106   :  { %v788_v26 = vpop.f32.mrb[8].mxu0  ;;  %v546_v27 = vadd.f32 %v827_v23, %v482_v24 }
 0x107   :  { %v828_v28 = vpop.f32.mrb[8].mxu1  ;;  %v789_v29 = vpop.f32.mrb[9].mxu0 }
 0x108   :  { %v790_v30 = vadd.f32 %v789_v29, %v788_v26  ;;  %v829_v31 = vpop.f32.mrb[9].mxu1  ;;  %v791_v32 = vpop.f32.mrb[10].mxu0 }
 0x109   :  { %v830_v33 = vadd.f32 %v829_v31, %v828_v28  ;;  %v831_v34 = vpop.f32.mrb[10].mxu1  ;;  %v792_v35 = vpop.f32.mrb[11].mxu0 }
 0x10a   :  { %v487_v36 = vadd.f32 %v790_v30, %v668_v60  ;;  %v793_v37 = vadd.f32 %v792_v35, %v791_v32  ;;  %v832_v38 = vpop.f32.mrb[11].mxu1 }
 0x10b   :  { %v833_v39 = vadd.f32 %v832_v38, %v831_v34 }
 0x10c   :  { %v490_v40 = vadd.f32 %v793_v37, %v668_v60  ;;  %v551_v41 = vadd.f32 %v830_v33, %v487_v36 }
 0x10e   :  { %v794_v42 = vpop.f32.mrb[12].mxu0  ;;  %v554_v43 = vadd.f32 %v833_v39, %v490_v40 }
 0x10f   :  { %v834_v44 = vpop.f32.mrb[12].mxu1  ;;  %v795_v45 = vpop.f32.mrb[13].mxu0 }
 0x110   :  { %v796_v46 = vadd.f32 %v795_v45, %v794_v42  ;;  %v835_v47 = vpop.f32.mrb[13].mxu1  ;;  %v797_v48 = vpop.f32.mrb[14].mxu0 }
 0x111   :  { %v836_v49 = vadd.f32 %v835_v47, %v834_v44  ;;  %v837_v50 = vpop.f32.mrb[14].mxu1  ;;  %v798_v51 = vpop.f32.mrb[15].mxu0 }
 0x112   :  { %v495_v52 = vadd.f32 %v796_v46, %v668_v60  ;;  %v838_v53 = vpop.f32.mrb[15].mxu1 }
 0x114   :  { %v559_v54 = vadd.f32 %v836_v49, %v495_v52 }
 0x116   :  { %v858_v55 = vpop.f32.mrb[16].mxu0 }
 0x117   :  { %v607_v56 = vadd.f32 %v858_v55, %v543_v25  ;;  %v862_v57 = vpop.f32.mrb[16].mxu1  ;;  %v598_v58 = vpop.f32.mrb[17].mxu0 }
 0x118   :  { %v623_v59 = vadd.f32 %v862_v57, %v559_v54  ;;  %v599_v61 = vadd.f32 %v598_v58, %v535_v9  ;;  %v614_v62 = vpop.f32.mrb[17].mxu1  ;;  %v859_v63 = vpop.f32.mrb[18].mxu0 }
 0x119   :  { %v615_v0 = vadd.f32 %v614_v62, %v551_v41  ;;  %v610_v1 = vadd.f32 %v859_v63, %v546_v27  ;;  %v863_v2 = vpop.f32.mrb[18].mxu1  ;;  %v601_v3 = vpop.f32.mrb[19].mxu0 }
 0x11a   :  { %v742_v4 = vpack.c.bf16 %v623_v59, %v623_v59  ;;  %v602_v5 = vadd.f32 %v601_v3, %v538_v11  ;;  %v617_v6 = vpop.f32.mrb[19].mxu1 }
 0x11b   :  { %v751_v7 = vpack.c.bf16 %v610_v1, %v607_v56  ;;  %v618_v8 = vadd.f32 %v617_v6, %v554_v43 }
 0x11c   :  { %663 = vst [vmem:[%s1134_s3 + $0x18] sm:$0x1] %v742_v4  ;;  %v746_v60 = vpack.c.bf16 %v602_v5, %v599_v61 }
 0x11d   :  { %758 = vst [vmem:[%s1134_s3 + $0x8] sm:$0xff] %v751_v7   ;;  %v756_v9 = vpack.c.bf16 %v618_v8, %v615_v0 }
 0x11e   :  { %747 = vst [vmem:[%s1134_s3] sm:$0xff] %v746_v60  }
 0x11f   :  { %759 = vst [vmem:[%s1134_s3 + $0x10] sm:$0xff] %v756_v9  }

// kernel: data_dim_reduce_forward.9
= control target key start
LH: loop header
LB: loop body
LE: loop exit
PB: predicated region body
PF: predicated region fallthrough
CT: control target
= control target key end

     0   :  { %v858_v36 = vlaneseq  ;;  %v9529_v37 = vmov 1966171168   ;;  %s12456_s0 = inlined_call_operand.vmem [shape: bf16[2,3200], index: 0, kind: input, shape index: {}]   ;;  %s12457_s1 = inlined_call_operand.vmem [shape: bf16[2,128], index: 1, kind: input, shape index: {}]   ;;  %s12458_s2 = inlined_call_operand.vmem [shape: bf16[3200,512], index: 2, kind: input, shape index: {}]   ;;  %s12459_s3 = inlined_call_operand.vmem [shape: f32[1,512], index: 3, kind: input, shape index: {}]   ;;  %s12460_s4 = inlined_call_operand.vmem [shape: bf16[512,128], index: 4, kind: input, shape index: {}]   ;;  %s12461_s5 = inlined_call_operand.vmem [shape: f32[1,128], index: 5, kind: input, shape index: {}]   ;;  %s12462_s6 = inlined_call_operand.vmem [shape: bf16[128,128], index: 6, kind: input, shape index: {}]   ;;  %s12463_s7 = inlined_call_operand.vmem [shape: f32[1,128], index: 7, kind: input, shape index: {}]   ;;  %s12464_s8 = inlined_call_operand.vmem [shape: bf16[128,128], index: 8, kind: input, shape index: {}]   ;;  %s12465_s9 = inlined_call_operand.vmem [shape: f32[1,128], index: 9, kind: input, shape index: {}]   ;;  %s12466_s10 = inlined_call_operand.vmem [shape: bf16[128,128], index: 10, kind: input, shape index: {}]   ;;  %s12467_s11 = inlined_call_operand.vmem [shape: f32[1,128], index: 11, kind: input, shape index: {}]   ;;  %s12468_s12 = inlined_call_operand.vmem [shape: bf16[128,128], index: 12, kind: input, shape index: {}]   ;;  %s12469_s13 = inlined_call_operand.vmem [shape: bf16[128,128], index: 13, kind: input, shape index: {}]   ;;  %s12470_s14 = inlined_call_operand.vmem [shape: f32[1,128], index: 14, kind: input, shape index: {}]   ;;  %s12471_s15 = inlined_call_operand.hbm [shape: f32[2,21], index: 15, kind: output, shape index: {}]  }
   0x1   :  { %v8228_v0 = vld [vmem:[%s12458_s2 + $0x4] ss:$16 sps:$4 sm:$0xff]   ;;  %v8230_v1 = vld [vmem:[%s12458_s2 + $0xc] ss:$16 sps:$4 sm:$0xff]   ;;  %v8232_v2 = vld [vmem:[%s12458_s2] ss:$16 sps:$4 sm:$0xff]   ;;  %v884_v38 = vunpack.c.l.s4 %v9529_v37 }
   0x2   :  { %5068 = vmatprep.subr.bf16.mxu0 %v8228_v0  ;;  %v8233_v3 = vld [vmem:[%s12458_s2 + $0x8] ss:$16 sps:$4 sm:$0xff]   ;;  %5601 = vmatprep.subr.bf16.mxu1 %v8230_v1  ;;  %v8234_v4 = vld [vmem:[%s12458_s2 + $0x24] ss:$16 sps:$4 sm:$0xff]   ;;  %v8236_v5 = vld [vmem:[%s12458_s2 + $0x2c] ss:$16 sps:$4 sm:$0xff]  }
   0x3   :  { %5069 = vmatpush1.bf16.msra.mxu0 %v8232_v2  ;;  %5602 = vmatpush1.bf16.msra.mxu1 %v8233_v3  ;;  %v8238_v6 = vld [vmem:[%s12458_s2 + $0x20] ss:$16 sps:$4 sm:$0xff]   ;;  %v8239_v7 = vld [vmem:[%s12458_s2 + $0x28] ss:$16 sps:$4 sm:$0xff]   ;;  %v8240_v8 = vld [vmem:[%s12458_s2 + $0x44] ss:$16 sps:$4 sm:$0xff]   ;;  %v885_v43 = vunpack.c.0.s8 %v884_v38 }
   0x4   :  { %5070 = vmatprep.subr.bf16.mxu0 %v8234_v4  ;;  %5603 = vmatprep.subr.bf16.mxu1 %v8236_v5  ;;  %v8242_v9 = vld [vmem:[%s12458_s2 + $0x4c] ss:$16 sps:$4 sm:$0xff]   ;;  %v8244_v10 = vld [vmem:[%s12458_s2 + $0x40] ss:$16 sps:$4 sm:$0xff]   ;;  %v8245_v11 = vld [vmem:[%s12458_s2 + $0x48] ss:$16 sps:$4 sm:$0xff]  }
   0x5   :  { %v8246_v12 = vld [vmem:[%s12458_s2 + $0x64] ss:$16 sps:$4 sm:$0xff]   ;;  %v8248_v13 = vld [vmem:[%s12458_s2 + $0x6c] ss:$16 sps:$4 sm:$0xff]   ;;  %v8250_v14 = vld [vmem:[%s12458_s2 + $0x60] ss:$16 sps:$4 sm:$0xff]  }
   0x6   :  { %v8251_v15 = vld [vmem:[%s12458_s2 + $0x68] ss:$16 sps:$4 sm:$0xff]   ;;  %v8252_v16 = vld [vmem:[%s12458_s2 + $0x84] ss:$16 sps:$4 sm:$0xff]   ;;  %v8254_v17 = vld [vmem:[%s12458_s2 + $0x8c] ss:$16 sps:$4 sm:$0xff]  }
   0x7   :  { %5071 = vmatpush1.bf16.msra.mxu0 %v8238_v6  ;;  %5604 = vmatpush1.bf16.msra.mxu1 %v8239_v7  ;;  %v8256_v18 = vld [vmem:[%s12458_s2 + $0x80] ss:$16 sps:$4 sm:$0xff]   ;;  %v8257_v19 = vld [vmem:[%s12458_s2 + $0x88] ss:$16 sps:$4 sm:$0xff]   ;;  %v8258_v20 = vld [vmem:[%s12458_s2 + $0xa4] ss:$16 sps:$4 sm:$0xff]  }
   0x8   :  { %5072 = vmatprep.subr.bf16.mxu0 %v8240_v8  ;;  %5605 = vmatprep.subr.bf16.mxu1 %v8242_v9  ;;  %v8260_v21 = vld [vmem:[%s12458_s2 + $0xac] ss:$16 sps:$4 sm:$0xff]   ;;  %v8262_v22 = vld [vmem:[%s12458_s2 + $0xa0] ss:$16 sps:$4 sm:$0xff]   ;;  %v8263_v23 = vld [vmem:[%s12458_s2 + $0xa8] ss:$16 sps:$4 sm:$0xff]  }
   0x9   :  { %v8264_v24 = vld [vmem:[%s12458_s2 + $0xc4] ss:$16 sps:$4 sm:$0xff]   ;;  %v8266_v25 = vld [vmem:[%s12458_s2 + $0xcc] ss:$16 sps:$4 sm:$0xff]   ;;  %v8268_v26 = vld [vmem:[%s12458_s2 + $0xc0] ss:$16 sps:$4 sm:$0xff]  }
   0xa   :  { %v8269_v27 = vld [vmem:[%s12458_s2 + $0xc8] ss:$16 sps:$4 sm:$0xff]   ;;  %v8270_v28 = vld [vmem:[%s12458_s2 + $0xe4] ss:$16 sps:$4 sm:$0xff]   ;;  %v8272_v29 = vld [vmem:[%s12458_s2 + $0xec] ss:$16 sps:$4 sm:$0xff]  }
   0xb   :  { %5073 = vmatpush1.bf16.msra.mxu0 %v8244_v10  ;;  %5606 = vmatpush1.bf16.msra.mxu1 %v8245_v11  ;;  %v8274_v30 = vld [vmem:[%s12458_s2 + $0xe0] ss:$16 sps:$4 sm:$0xff]   ;;  %v8275_v31 = vld [vmem:[%s12458_s2 + $0xe8] ss:$16 sps:$4 sm:$0xff]   ;;  %v8276_v32 = vld [vmem:[%s12458_s2 + $0x104] ss:$16 sps:$4 sm:$0xff]  }
   0xc   :  { %5074 = vmatprep.subr.bf16.mxu0 %v8246_v12  ;;  %5607 = vmatprep.subr.bf16.mxu1 %v8248_v13  ;;  %v8278_v33 = vld [vmem:[%s12458_s2 + $0x10c] ss:$16 sps:$4 sm:$0xff]   ;;  %v8280_v34 = vld [vmem:[%s12458_s2 + $0x100] ss:$16 sps:$4 sm:$0xff]   ;;  %v8281_v35 = vld [vmem:[%s12458_s2 + $0x108] ss:$16 sps:$4 sm:$0xff]  }
   0xd   :  { %v8282_v39 = vld [vmem:[%s12458_s2 + $0x124] ss:$16 sps:$4 sm:$0xff]   ;;  %v8284_v40 = vld [vmem:[%s12458_s2 + $0x12c] ss:$16 sps:$4 sm:$0xff]   ;;  %v8286_v41 = vld [vmem:[%s12458_s2 + $0x120] ss:$16 sps:$4 sm:$0xff]  }
   0xe   :  { %v9731_v42 = vshrl.u32 %v858_v36, 7  ;;  %v8287_v44 = vld [vmem:[%s12458_s2 + $0x128] ss:$16 sps:$4 sm:$0xff]   ;;  %v8288_v45 = vld [vmem:[%s12458_s2 + $0x144] ss:$16 sps:$4 sm:$0xff]  }
   0xf   :  { %5075 = vmatpush1.bf16.msra.mxu0 %v8250_v14  ;;  %5608 = vmatpush1.bf16.msra.mxu1 %v8251_v15  ;;  %v8290_v46 = vld [vmem:[%s12458_s2 + $0x14c] ss:$16 sps:$4 sm:$0xff]   ;;  %v8292_v47 = vld [vmem:[%s12458_s2 + $0x140] ss:$16 sps:$4 sm:$0xff]   ;;  %v8293_v48 = vld [vmem:[%s12458_s2 + $0x148] ss:$16 sps:$4 sm:$0xff]  }
  0x10   :  { %5076 = vmatprep.subr.bf16.mxu0 %v8252_v16  ;;  %5609 = vmatprep.subr.bf16.mxu1 %v8254_v17  ;;  %v9749_v49 = vsub.s32 %v885_v43, %v9731_v42  ;;  %v8294_v50 = vld [vmem:[%s12458_s2 + $0x164] ss:$16 sps:$4 sm:$0xff]   ;;  %v8296_v51 = vld [vmem:[%s12458_s2 + $0x16c] ss:$16 sps:$4 sm:$0xff]   ;;  %v8298_v53 = vld [vmem:[%s12458_s2 + $0x160] ss:$16 sps:$4 sm:$0xff]  }
  0x11   :  { %v9760_v52 = vld [vmem:[%s12456_s0] sm:$0xff]  ;;  %v8299_v55 = vld [vmem:[%s12458_s2 + $0x168] ss:$16 sps:$4 sm:$0xff]   ;;  %v8302_v57 = vld [vmem:[%s12458_s2 + $0x18c] ss:$16 sps:$4 sm:$0xff]  }
  0x12   :  { %v889_v54 = vrot.slane %v9760_v52, %v9749_v49  ;;  %v8300_v56 = vld [vmem:[%s12458_s2 + $0x184] ss:$16 sps:$4 sm:$0xff]   ;;  %v8304_v59 = vld [vmem:[%s12458_s2 + $0x180] ss:$16 sps:$4 sm:$0xff]   ;;  %v8305_v61 = vld [vmem:[%s12458_s2 + $0x188] ss:$16 sps:$4 sm:$0xff]  }
  0x13   :  { %5077 = vmatpush1.bf16.msra.mxu0 %v8256_v18  ;;  %5610 = vmatpush1.bf16.msra.mxu1 %v8257_v19  ;;  %v8306_v62 = vld [vmem:[%s12458_s2 + $0x1a4] ss:$16 sps:$4 sm:$0xff]   ;;  %v8308_v63 = vld [vmem:[%s12458_s2 + $0x1ac] ss:$16 sps:$4 sm:$0xff]   ;;  %v8310_v0 = vld [vmem:[%s12458_s2 + $0x1a0] ss:$16 sps:$4 sm:$0xff]  }
  0x14   :  { %5078 = vmatprep.subr.bf16.mxu0 %v8258_v20  ;;  %5611 = vmatprep.subr.bf16.mxu1 %v8260_v21  ;;  %v897_v58 = vcombine.high %v889_v54, %v889_v54  ;;  %v8311_v1 = vld [vmem:[%s12458_s2 + $0x1a8] ss:$16 sps:$4 sm:$0xff]   ;;  %v8312_v2 = vld [vmem:[%s12458_s2 + $0x1c4] ss:$16 sps:$4 sm:$0xff]   ;;  %v8314_v3 = vld [vmem:[%s12458_s2 + $0x1cc] ss:$16 sps:$4 sm:$0xff]   ;;  %v9829_v13 = vrot.slane %v889_v54, %v9749_v49 }
  0x15   :  { %v8316_v4 = vld [vmem:[%s12458_s2 + $0x1c0] ss:$16 sps:$4 sm:$0xff]   ;;  %v8317_v5 = vld [vmem:[%s12458_s2 + $0x1c8] ss:$16 sps:$4 sm:$0xff]   ;;  %v8318_v6 = vld [vmem:[%s12458_s2 + $0x1e4] ss:$16 sps:$4 sm:$0xff]  }
  0x16   :  { %v919_v60 = vrot.slane %v897_v58, %v9749_v49  ;;  %v8320_v7 = vld [vmem:[%s12458_s2 + $0x1ec] ss:$16 sps:$4 sm:$0xff]   ;;  %v8322_v8 = vld [vmem:[%s12458_s2 + $0x1e0] ss:$16 sps:$4 sm:$0xff]   ;;  %v8323_v9 = vld [vmem:[%s12458_s2 + $0x1e8] ss:$16 sps:$4 sm:$0xff]  }
  0x17   :  { %5079 = vmatpush1.bf16.msra.mxu0 %v8262_v22  ;;  %5612 = vmatpush1.bf16.msra.mxu1 %v8263_v23  ;;  %v8326_v10 = vld [vmem:[%s12458_s2 + $0x204] ss:$16 sps:$4 sm:$0xff]   ;;  %v8329_v11 = vld [vmem:[%s12458_s2 + $0x20c] ss:$16 sps:$4 sm:$0xff]   ;;  %v8324_v12 = vld [vmem:[%s12458_s2 + $0x200] ss:$16 sps:$4 sm:$0xff]  }
  0x18   :  { %5080 = vmatprep.subr.bf16.mxu0 %v8264_v24  ;;  %5613 = vmatprep.subr.bf16.mxu1 %v8266_v25  ;;  %v8327_v14 = vld [vmem:[%s12458_s2 + $0x208] ss:$16 sps:$4 sm:$0xff]   ;;  %v8332_v15 = vld [vmem:[%s12458_s2 + $0x224] ss:$16 sps:$4 sm:$0xff]   ;;  %v8335_v16 = vld [vmem:[%s12458_s2 + $0x22c] ss:$16 sps:$4 sm:$0xff]   ;;  %v929_v17 = vcombine.high %v919_v60, %v919_v60 }
  0x19   :  { %5100 = vmatprep.mubr.bf16.mxu0 %v919_v60  ;;  %5633 = vmatprep.mubr.bf16.mxu1 %v919_v60  ;;  %v8330_v18 = vld [vmem:[%s12458_s2 + $0x220] ss:$16 sps:$4 sm:$0xff]   ;;  %v8333_v19 = vld [vmem:[%s12458_s2 + $0x228] ss:$16 sps:$4 sm:$0xff]   ;;  %v8338_v20 = vld [vmem:[%s12458_s2 + $0x244] ss:$16 sps:$4 sm:$0xff]  }
  0x1a   :  { %v8341_v21 = vld [vmem:[%s12458_s2 + $0x24c] ss:$16 sps:$4 sm:$0xff]   ;;  %v8336_v22 = vld [vmem:[%s12458_s2 + $0x240] ss:$16 sps:$4 sm:$0xff]   ;;  %v8339_v23 = vld [vmem:[%s12458_s2 + $0x248] ss:$16 sps:$4 sm:$0xff]  }
  0x1b   :  { %5081 = vmatpush1.bf16.msra.mxu0 %v8268_v26  ;;  %5614 = vmatpush1.bf16.msra.mxu1 %v8269_v27  ;;  %v8344_v24 = vld [vmem:[%s12458_s2 + $0x264] ss:$16 sps:$4 sm:$0xff]   ;;  %v8347_v25 = vld [vmem:[%s12458_s2 + $0x26c] ss:$16 sps:$4 sm:$0xff]   ;;  %v8342_v26 = vld [vmem:[%s12458_s2 + $0x260] ss:$16 sps:$4 sm:$0xff]  }
  0x1c   :  { %5082 = vmatprep.subr.bf16.mxu0 %v8270_v28  ;;  %5615 = vmatprep.subr.bf16.mxu1 %v8272_v29  ;;  %v8345_v27 = vld [vmem:[%s12458_s2 + $0x268] ss:$16 sps:$4 sm:$0xff]   ;;  %v8350_v28 = vld [vmem:[%s12458_s2 + $0x284] ss:$16 sps:$4 sm:$0xff]   ;;  %v8353_v29 = vld [vmem:[%s12458_s2 + $0x28c] ss:$16 sps:$4 sm:$0xff]  }
  0x1d   :  { %v8362_v36 = vld [vmem:[%s12458_s2 + $0x2c4] ss:$16 sps:$4 sm:$0xff]   ;;  %v8365_v37 = vld [vmem:[%s12458_s2 + $0x2cc] ss:$16 sps:$4 sm:$0xff]   ;;  %v8360_v38 = vld [vmem:[%s12458_s2 + $0x2c0] ss:$16 sps:$4 sm:$0xff]  }
  0x1e   :  { %v8366_v43 = vld [vmem:[%s12458_s2 + $0x2e0] ss:$16 sps:$4 sm:$0xff]   ;;  %v8381_v54 = vld [vmem:[%s12458_s2 + $0x328] ss:$16 sps:$4 sm:$0xff]   ;;  %v8395_v60 = vld [vmem:[%s12458_s2 + $0x36c] ss:$16 sps:$4 sm:$0xff]  }
  0x1f   :  { %5083 = vmatpush1.bf16.msra.mxu0 %v8274_v30  ;;  %5616 = vmatpush1.bf16.msra.mxu1 %v8275_v31  ;;  %v8348_v30 = vld [vmem:[%s12458_s2 + $0x280] ss:$16 sps:$4 sm:$0xff]   ;;  %v8351_v31 = vld [vmem:[%s12458_s2 + $0x288] ss:$16 sps:$4 sm:$0xff]  }
  0x20   :  { %5084 = vmatprep.subr.bf16.mxu0 %v8276_v32  ;;  %5617 = vmatprep.subr.bf16.mxu1 %v8278_v33  ;;  %v8356_v32 = vld [vmem:[%s12458_s2 + $0x2a4] ss:$16 sps:$4 sm:$0xff]   ;;  %v8359_v33 = vld [vmem:[%s12458_s2 + $0x2ac] ss:$16 sps:$4 sm:$0xff]   ;;  %v8387_v58 = vld [vmem:[%s12458_s2 + $0x348] ss:$16 sps:$4 sm:$0xff]  }
  0x23   :  { %5085 = vmatpush1.bf16.msra.mxu0 %v8280_v34  ;;  %5618 = vmatpush1.bf16.msra.mxu1 %v8281_v35  ;;  %v8354_v34 = vld [vmem:[%s12458_s2 + $0x2a0] ss:$16 sps:$4 sm:$0xff]   ;;  %v8357_v35 = vld [vmem:[%s12458_s2 + $0x2a8] ss:$16 sps:$4 sm:$0xff]  }
  0x24   :  { %5086 = vmatprep.subr.bf16.mxu0 %v8282_v39  ;;  %5619 = vmatprep.subr.bf16.mxu1 %v8284_v40  ;;  %v8363_v39 = vld [vmem:[%s12458_s2 + $0x2c8] ss:$16 sps:$4 sm:$0xff]   ;;  %v8368_v40 = vld [vmem:[%s12458_s2 + $0x2e4] ss:$16 sps:$4 sm:$0xff]  }
  0x27   :  { %5087 = vmatpush1.bf16.msra.mxu0 %v8286_v41  ;;  %5620 = vmatpush1.bf16.msra.mxu1 %v8287_v44  ;;  %v8371_v41 = vld [vmem:[%s12458_s2 + $0x2ec] ss:$16 sps:$4 sm:$0xff]   ;;  %v8369_v44 = vld [vmem:[%s12458_s2 + $0x2e8] ss:$16 sps:$4 sm:$0xff]  }
  0x28   :  { %5088 = vmatprep.subr.bf16.mxu0 %v8288_v45  ;;  %5621 = vmatprep.subr.bf16.mxu1 %v8290_v46  ;;  %v8374_v45 = vld [vmem:[%s12458_s2 + $0x304] ss:$16 sps:$4 sm:$0xff]   ;;  %v8377_v46 = vld [vmem:[%s12458_s2 + $0x30c] ss:$16 sps:$4 sm:$0xff]  }
  0x2b   :  { %5089 = vmatpush1.bf16.msra.mxu0 %v8292_v47  ;;  %5622 = vmatpush1.bf16.msra.mxu1 %v8293_v48  ;;  %v8372_v47 = vld [vmem:[%s12458_s2 + $0x300] ss:$16 sps:$4 sm:$0xff]   ;;  %v8375_v48 = vld [vmem:[%s12458_s2 + $0x308] ss:$16 sps:$4 sm:$0xff]  }
  0x2c   :  { %5090 = vmatprep.subr.bf16.mxu0 %v8294_v50  ;;  %5623 = vmatprep.subr.bf16.mxu1 %v8296_v51  ;;  %v8380_v50 = vld [vmem:[%s12458_s2 + $0x324] ss:$16 sps:$4 sm:$0xff]   ;;  %v8383_v51 = vld [vmem:[%s12458_s2 + $0x32c] ss:$16 sps:$4 sm:$0xff]  }
  0x2f   :  { %5091 = vmatpush1.bf16.msra.mxu0 %v8298_v53  ;;  %5624 = vmatpush1.bf16.msra.mxu1 %v8299_v55  ;;  %v8378_v53 = vld [vmem:[%s12458_s2 + $0x320] ss:$16 sps:$4 sm:$0xff]   ;;  %v8386_v55 = vld [vmem:[%s12458_s2 + $0x344] ss:$16 sps:$4 sm:$0xff]  }
  0x30   :  { %5092 = vmatprep.subr.bf16.mxu0 %v8300_v56  ;;  %5625 = vmatprep.subr.bf16.mxu1 %v8302_v57  ;;  %v8389_v56 = vld [vmem:[%s12458_s2 + $0x34c] ss:$16 sps:$4 sm:$0xff]   ;;  %v8384_v57 = vld [vmem:[%s12458_s2 + $0x340] ss:$16 sps:$4 sm:$0xff]  }
  0x33   :  { %5093 = vmatpush1.bf16.msra.mxu0 %v8304_v59  ;;  %5626 = vmatpush1.bf16.msra.mxu1 %v8305_v61  ;;  %v8392_v59 = vld [vmem:[%s12458_s2 + $0x364] ss:$16 sps:$4 sm:$0xff]   ;;  %v8390_v61 = vld [vmem:[%s12458_s2 + $0x360] ss:$16 sps:$4 sm:$0xff]  }
  0x34   :  { %5094 = vmatprep.subr.bf16.mxu0 %v8306_v62  ;;  %5627 = vmatprep.subr.bf16.mxu1 %v8308_v63  ;;  %v8393_v62 = vld [vmem:[%s12458_s2 + $0x368] ss:$16 sps:$4 sm:$0xff]   ;;  %v8398_v63 = vld [vmem:[%s12458_s2 + $0x384] ss:$16 sps:$4 sm:$0xff]  }
  0x37   :  { %5095 = vmatpush1.bf16.msra.mxu0 %v8310_v0  ;;  %5628 = vmatpush1.bf16.msra.mxu1 %v8311_v1  ;;  %v8401_v0 = vld [vmem:[%s12458_s2 + $0x38c] ss:$16 sps:$4 sm:$0xff]   ;;  %v8396_v1 = vld [vmem:[%s12458_s2 + $0x380] ss:$16 sps:$4 sm:$0xff]  }
  0x38   :  { %5096 = vmatprep.subr.bf16.mxu0 %v8312_v2  ;;  %5629 = vmatprep.subr.bf16.mxu1 %v8314_v3  ;;  %v8399_v2 = vld [vmem:[%s12458_s2 + $0x388] ss:$16 sps:$4 sm:$0xff]   ;;  %v8404_v3 = vld [vmem:[%s12458_s2 + $0x3a4] ss:$16 sps:$4 sm:$0xff]  }
  0x3b   :  { %5097 = vmatpush1.bf16.msra.mxu0 %v8316_v4  ;;  %5630 = vmatpush1.bf16.msra.mxu1 %v8317_v5  ;;  %v8407_v4 = vld [vmem:[%s12458_s2 + $0x3ac] ss:$16 sps:$4 sm:$0xff]   ;;  %v8402_v5 = vld [vmem:[%s12458_s2 + $0x3a0] ss:$16 sps:$4 sm:$0xff]  }
  0x3c   :  { %5098 = vmatprep.subr.bf16.mxu0 %v8318_v6  ;;  %5631 = vmatprep.subr.bf16.mxu1 %v8320_v7  ;;  %v8405_v6 = vld [vmem:[%s12458_s2 + $0x3a8] ss:$16 sps:$4 sm:$0xff]   ;;  %v8410_v7 = vld [vmem:[%s12458_s2 + $0x3c4] ss:$16 sps:$4 sm:$0xff]  }
  0x3f   :  { %5099 = vmatpush1.bf16.msra.mxu0 %v8322_v8  ;;  %5632 = vmatpush1.bf16.msra.mxu1 %v8323_v9  ;;  %v8413_v8 = vld [vmem:[%s12458_s2 + $0x3cc] ss:$16 sps:$4 sm:$0xff]   ;;  %v882_v9 = vcombine.high %v9760_v52, %v9760_v52 }
  0x40   :  { %5109 = vmatprep.subr.bf16.mxu0 %v8326_v10  ;;  %5642 = vmatprep.subr.bf16.mxu1 %v8329_v11  ;;  %v8408_v10 = vld [vmem:[%s12458_s2 + $0x3c0] ss:$16 sps:$4 sm:$0xff]   ;;  %v8411_v11 = vld [vmem:[%s12458_s2 + $0x3c8] ss:$16 sps:$4 sm:$0xff]   ;;  %v8419_v52 = vld [vmem:[%s12458_s2 + $0x3ec] ss:$16 sps:$4 sm:$0xff]  }
  0x42   :  { %5101 = vmatmul.mubr.bf16.vlgmr.msra.gmra.mrb[0].mxu0 %v9829_v13  ;;  %5634 = vmatmul.mubr.bf16.vlgmr.msra.gmra.mrb[0].mxu1 %v9829_v13 }
  0x43   :  { %5110 = vmatpush1.bf16.msra.mxu0 %v8324_v12  ;;  %5643 = vmatpush1.bf16.msra.mxu1 %v8327_v14  ;;  %v8416_v12 = vld [vmem:[%s12458_s2 + $0x3e4] ss:$16 sps:$4 sm:$0xff]   ;;  %v10013_v14 = vrot.slane %v882_v9, %v9749_v49  ;;  %v8495_v9 = vld [vmem:[%s12458_s2 + $0x588] ss:$16 sps:$4 sm:$0xff]  }
  0x44   :  { %5111 = vmatprep.subr.bf16.mxu0 %v8332_v15  ;;  %5644 = vmatprep.subr.bf16.mxu1 %v8335_v16  ;;  %v8414_v15 = vld [vmem:[%s12458_s2 + $0x3e0] ss:$16 sps:$4 sm:$0xff]   ;;  %v8417_v16 = vld [vmem:[%s12458_s2 + $0x3e8] ss:$16 sps:$4 sm:$0xff]  }
  0x45   :  { %5141 = vmatprep.mubr.bf16.mxu0 %v929_v17  ;;  %5674 = vmatprep.mubr.bf16.mxu1 %v929_v17  ;;  %v8422_v17 = vld [vmem:[%s12458_s2 + $0x404] ss:$16 sps:$4 sm:$0xff]  }
  0x47   :  { %5112 = vmatpush1.bf16.msra.mxu0 %v8330_v18  ;;  %5645 = vmatpush1.bf16.msra.mxu1 %v8333_v19  ;;  %v8425_v18 = vld [vmem:[%s12458_s2 + $0x40c] ss:$16 sps:$4 sm:$0xff]   ;;  %v898_v19 = vcombine.high %v10013_v14, %v10013_v14 }
  0x48   :  { %5113 = vmatprep.subr.bf16.mxu0 %v8338_v20  ;;  %5646 = vmatprep.subr.bf16.mxu1 %v8341_v21  ;;  %v8420_v20 = vld [vmem:[%s12458_s2 + $0x400] ss:$16 sps:$4 sm:$0xff]   ;;  %v927_v21 = vcombine.high %v9829_v13, %v9829_v13 }
  0x49   :  { %v8426_v13 = vld [vmem:[%s12458_s2 + $0x420] ss:$16 sps:$4 sm:$0xff]  }
  0x4b   :  { %5114 = vmatpush1.bf16.msra.mxu0 %v8336_v22  ;;  %5647 = vmatpush1.bf16.msra.mxu1 %v8339_v23  ;;  %v8423_v22 = vld [vmem:[%s12458_s2 + $0x408] ss:$16 sps:$4 sm:$0xff]   ;;  %v8428_v23 = vld [vmem:[%s12458_s2 + $0x424] ss:$16 sps:$4 sm:$0xff]  }
  0x4c   :  { %5115 = vmatprep.subr.bf16.mxu0 %v8344_v24  ;;  %5648 = vmatprep.subr.bf16.mxu1 %v8347_v25  ;;  %v8431_v24 = vld [vmem:[%s12458_s2 + $0x42c] ss:$16 sps:$4 sm:$0xff]   ;;  %v10044_v25 = vrot.slane %v898_v19, %v9749_v49  ;;  %v8512_v19 = vld [vmem:[%s12458_s2 + $0x5e4] ss:$16 sps:$4 sm:$0xff]  }
  0x4f   :  { %5116 = vmatpush1.bf16.msra.mxu0 %v8342_v26  ;;  %5649 = vmatpush1.bf16.msra.mxu1 %v8345_v27  ;;  %v8429_v26 = vld [vmem:[%s12458_s2 + $0x428] ss:$16 sps:$4 sm:$0xff]   ;;  %v8434_v27 = vld [vmem:[%s12458_s2 + $0x444] ss:$16 sps:$4 sm:$0xff]  }
  0x50   :  { %5117 = vmatprep.subr.bf16.mxu0 %v8350_v28  ;;  %5650 = vmatprep.subr.bf16.mxu1 %v8353_v29  ;;  %v8437_v28 = vld [vmem:[%s12458_s2 + $0x44c] ss:$16 sps:$4 sm:$0xff]   ;;  %v8432_v29 = vld [vmem:[%s12458_s2 + $0x440] ss:$16 sps:$4 sm:$0xff]  }
  0x53   :  { %5118 = vmatpush1.bf16.msra.mxu0 %v8348_v30  ;;  %5651 = vmatpush1.bf16.msra.mxu1 %v8351_v31  ;;  %v8435_v30 = vld [vmem:[%s12458_s2 + $0x448] ss:$16 sps:$4 sm:$0xff]   ;;  %v8440_v31 = vld [vmem:[%s12458_s2 + $0x464] ss:$16 sps:$4 sm:$0xff]  }
  0x54   :  { %5119 = vmatprep.subr.bf16.mxu0 %v8356_v32  ;;  %5652 = vmatprep.subr.bf16.mxu1 %v8359_v33  ;;  %v8443_v32 = vld [vmem:[%s12458_s2 + $0x46c] ss:$16 sps:$4 sm:$0xff]   ;;  %v8438_v33 = vld [vmem:[%s12458_s2 + $0x460] ss:$16 sps:$4 sm:$0xff]  }
  0x57   :  { %5120 = vmatpush1.bf16.msra.mxu0 %v8354_v34  ;;  %5653 = vmatpush1.bf16.msra.mxu1 %v8357_v35  ;;  %v8441_v34 = vld [vmem:[%s12458_s2 + $0x468] ss:$16 sps:$4 sm:$0xff]   ;;  %v8446_v35 = vld [vmem:[%s12458_s2 + $0x484] ss:$16 sps:$4 sm:$0xff]  }
  0x58   :  { %5121 = vmatprep.subr.bf16.mxu0 %v8362_v36  ;;  %5654 = vmatprep.subr.bf16.mxu1 %v8365_v37  ;;  %v8449_v36 = vld [vmem:[%s12458_s2 + $0x48c] ss:$16 sps:$4 sm:$0xff]   ;;  %v8444_v37 = vld [vmem:[%s12458_s2 + $0x480] ss:$16 sps:$4 sm:$0xff]  }
  0x5b   :  { %5122 = vmatpush1.bf16.msra.mxu0 %v8360_v38  ;;  %5655 = vmatpush1.bf16.msra.mxu1 %v8363_v39  ;;  %v8447_v38 = vld [vmem:[%s12458_s2 + $0x488] ss:$16 sps:$4 sm:$0xff]   ;;  %v8452_v39 = vld [vmem:[%s12458_s2 + $0x4a4] ss:$16 sps:$4 sm:$0xff]  }
  0x5c   :  { %5123 = vmatprep.subr.bf16.mxu0 %v8368_v40  ;;  %5656 = vmatprep.subr.bf16.mxu1 %v8371_v41  ;;  %v8455_v40 = vld [vmem:[%s12458_s2 + $0x4ac] ss:$16 sps:$4 sm:$0xff]   ;;  %v8450_v41 = vld [vmem:[%s12458_s2 + $0x4a0] ss:$16 sps:$4 sm:$0xff]  }
  0x5f   :  { %5124 = vmatpush1.bf16.msra.mxu0 %v8366_v43  ;;  %5657 = vmatpush1.bf16.msra.mxu1 %v8369_v44  ;;  %v8453_v43 = vld [vmem:[%s12458_s2 + $0x4a8] ss:$16 sps:$4 sm:$0xff]   ;;  %v8458_v44 = vld [vmem:[%s12458_s2 + $0x4c4] ss:$16 sps:$4 sm:$0xff]  }
  0x60   :  { %5125 = vmatprep.subr.bf16.mxu0 %v8374_v45  ;;  %5658 = vmatprep.subr.bf16.mxu1 %v8377_v46  ;;  %v8461_v45 = vld [vmem:[%s12458_s2 + $0x4cc] ss:$16 sps:$4 sm:$0xff]   ;;  %v8456_v46 = vld [vmem:[%s12458_s2 + $0x4c0] ss:$16 sps:$4 sm:$0xff]  }
  0x63   :  { %5126 = vmatpush1.bf16.msra.mxu0 %v8372_v47  ;;  %5659 = vmatpush1.bf16.msra.mxu1 %v8375_v48  ;;  %v8459_v47 = vld [vmem:[%s12458_s2 + $0x4c8] ss:$16 sps:$4 sm:$0xff]   ;;  %v8464_v48 = vld [vmem:[%s12458_s2 + $0x4e4] ss:$16 sps:$4 sm:$0xff]  }
  0x64   :  { %5127 = vmatprep.subr.bf16.mxu0 %v8380_v50  ;;  %5660 = vmatprep.subr.bf16.mxu1 %v8383_v51  ;;  %v8467_v50 = vld [vmem:[%s12458_s2 + $0x4ec] ss:$16 sps:$4 sm:$0xff]   ;;  %v8462_v51 = vld [vmem:[%s12458_s2 + $0x4e0] ss:$16 sps:$4 sm:$0xff]  }
  0x67   :  { %5128 = vmatpush1.bf16.msra.mxu0 %v8378_v53  ;;  %5661 = vmatpush1.bf16.msra.mxu1 %v8381_v54  ;;  %v8465_v53 = vld [vmem:[%s12458_s2 + $0x4e8] ss:$16 sps:$4 sm:$0xff]   ;;  %v8470_v54 = vld [vmem:[%s12458_s2 + $0x504] ss:$16 sps:$4 sm:$0xff]  }
  0x68   :  { %5129 = vmatprep.subr.bf16.mxu0 %v8386_v55  ;;  %5662 = vmatprep.subr.bf16.mxu1 %v8389_v56  ;;  %v8473_v55 = vld [vmem:[%s12458_s2 + $0x50c] ss:$16 sps:$4 sm:$0xff]   ;;  %v8468_v56 = vld [vmem:[%s12458_s2 + $0x500] ss:$16 sps:$4 sm:$0xff]  }
  0x6b   :  { %5130 = vmatpush1.bf16.msra.mxu0 %v8384_v57  ;;  %5663 = vmatpush1.bf16.msra.mxu1 %v8387_v58  ;;  %v8471_v57 = vld [vmem:[%s12458_s2 + $0x508] ss:$16 sps:$4 sm:$0xff]   ;;  %v8476_v58 = vld [vmem:[%s12458_s2 + $0x524] ss:$16 sps:$4 sm:$0xff]  }
  0x6c   :  { %5131 = vmatprep.subr.bf16.mxu0 %v8392_v59  ;;  %5664 = vmatprep.subr.bf16.mxu1 %v8395_v60  ;;  %v8479_v59 = vld [vmem:[%s12458_s2 + $0x52c] ss:$16 sps:$4 sm:$0xff]   ;;  %v8474_v60 = vld [vmem:[%s12458_s2 + $0x520] ss:$16 sps:$4 sm:$0xff]  }
  0x6f   :  { %5132 = vmatpush1.bf16.msra.mxu0 %v8390_v61  ;;  %5665 = vmatpush1.bf16.msra.mxu1 %v8393_v62  ;;  %v8477_v61 = vld [vmem:[%s12458_s2 + $0x528] ss:$16 sps:$4 sm:$0xff]   ;;  %v8482_v62 = vld [vmem:[%s12458_s2 + $0x544] ss:$16 sps:$4 sm:$0xff]  }
  0x70   :  { %5133 = vmatprep.subr.bf16.mxu0 %v8398_v63  ;;  %5666 = vmatprep.subr.bf16.mxu1 %v8401_v0  ;;  %v8485_v63 = vld [vmem:[%s12458_s2 + $0x54c] ss:$16 sps:$4 sm:$0xff]   ;;  %v8480_v0 = vld [vmem:[%s12458_s2 + $0x540] ss:$16 sps:$4 sm:$0xff]  }
  0x73   :  { %5134 = vmatpush1.bf16.msra.mxu0 %v8396_v1  ;;  %5667 = vmatpush1.bf16.msra.mxu1 %v8399_v2  ;;  %v8483_v1 = vld [vmem:[%s12458_s2 + $0x548] ss:$16 sps:$4 sm:$0xff]   ;;  %v8488_v2 = vld [vmem:[%s12458_s2 + $0x564] ss:$16 sps:$4 sm:$0xff]  }
  0x74   :  { %5135 = vmatprep.subr.bf16.mxu0 %v8404_v3  ;;  %5668 = vmatprep.subr.bf16.mxu1 %v8407_v4  ;;  %v8491_v3 = vld [vmem:[%s12458_s2 + $0x56c] ss:$16 sps:$4 sm:$0xff]   ;;  %v8486_v4 = vld [vmem:[%s12458_s2 + $0x560] ss:$16 sps:$4 sm:$0xff]  }
  0x77   :  { %5136 = vmatpush1.bf16.msra.mxu0 %v8402_v5  ;;  %5669 = vmatpush1.bf16.msra.mxu1 %v8405_v6  ;;  %v8489_v5 = vld [vmem:[%s12458_s2 + $0x568] ss:$16 sps:$4 sm:$0xff]   ;;  %v8494_v6 = vld [vmem:[%s12458_s2 + $0x584] ss:$16 sps:$4 sm:$0xff]  }
  0x78   :  { %5137 = vmatprep.subr.bf16.mxu0 %v8410_v7  ;;  %5670 = vmatprep.subr.bf16.mxu1 %v8413_v8  ;;  %v8497_v7 = vld [vmem:[%s12458_s2 + $0x58c] ss:$16 sps:$4 sm:$0xff]   ;;  %v8492_v8 = vld [vmem:[%s12458_s2 + $0x580] ss:$16 sps:$4 sm:$0xff]  }
  0x7b   :  { %5138 = vmatpush1.bf16.msra.mxu0 %v8408_v10  ;;  %5671 = vmatpush1.bf16.msra.mxu1 %v8411_v11  ;;  %v8500_v10 = vld [vmem:[%s12458_s2 + $0x5a4] ss:$16 sps:$4 sm:$0xff]   ;;  %v8503_v11 = vld [vmem:[%s12458_s2 + $0x5ac] ss:$16 sps:$4 sm:$0xff]  }
  0x7c   :  { %5139 = vmatprep.subr.bf16.mxu0 %v8416_v12  ;;  %5672 = vmatprep.subr.bf16.mxu1 %v8419_v52  ;;  %v8498_v12 = vld [vmem:[%s12458_s2 + $0x5a0] ss:$16 sps:$4 sm:$0xff]   ;;  %v8501_v52 = vld [vmem:[%s12458_s2 + $0x5a8] ss:$16 sps:$4 sm:$0xff]  }
  0x7f   :  { %5140 = vmatpush1.bf16.msra.mxu0 %v8414_v15  ;;  %5673 = vmatpush1.bf16.msra.mxu1 %v8417_v16  ;;  %v8506_v15 = vld [vmem:[%s12458_s2 + $0x5c4] ss:$16 sps:$4 sm:$0xff]   ;;  %v8509_v16 = vld [vmem:[%s12458_s2 + $0x5cc] ss:$16 sps:$4 sm:$0xff]  }
  0x80   :  { %5150 = vmatprep.subr.bf16.mxu0 %v8422_v17  ;;  %5683 = vmatprep.subr.bf16.mxu1 %v8425_v18  ;;  %v8504_v17 = vld [vmem:[%s12458_s2 + $0x5c0] ss:$16 sps:$4 sm:$0xff]   ;;  %v8507_v18 = vld [vmem:[%s12458_s2 + $0x5c8] ss:$16 sps:$4 sm:$0xff]  }
  0x82   :  { %5142 = vmatmul.mubr.bf16.vlgmr.msra.gmra.mrb[0].mxu0 %v927_v21  ;;  %5675 = vmatmul.mubr.bf16.vlgmr.msra.gmra.mrb[0].mxu1 %v927_v21  ;;  %v8510_v21 = vld [vmem:[%s12458_s2 + $0x5e0] ss:$16 sps:$4 sm:$0xff]  }
  0x83   :  { %5151 = vmatpush1.bf16.msra.mxu0 %v8420_v20  ;;  %5684 = vmatpush1.bf16.msra.mxu1 %v8423_v22  ;;  %v8515_v20 = vld [vmem:[%s12458_s2 + $0x5ec] ss:$16 sps:$4 sm:$0xff]   ;;  %v8513_v22 = vld [vmem:[%s12458_s2 + $0x5e8] ss:$16 sps:$4 sm:$0xff]  }
  0x84   :  { %5152 = vmatprep.subr.bf16.mxu0 %v8428_v23  ;;  %5685 = vmatprep.subr.bf16.mxu1 %v8431_v24  ;;  %v8519_v23 = vld [vmem:[%s12458_s2 + $0x604] ss:$16 sps:$4 sm:$0xff]   ;;  %v8522_v24 = vld [vmem:[%s12458_s2 + $0x60c] ss:$16 sps:$4 sm:$0xff]  }
  0x85   :  { %5182 = vmatprep.mubr.bf16.mxu0 %v10044_v25  ;;  %5715 = vmatprep.mubr.bf16.mxu1 %v10044_v25 }
  0x87   :  { %5153 = vmatpush1.bf16.msra.mxu0 %v8426_v13  ;;  %5686 = vmatpush1.bf16.msra.mxu1 %v8429_v26  ;;  %v8517_v13 = vld [vmem:[%s12458_s2 + $0x600] ss:$16 sps:$4 sm:$0xff]   ;;  %v10233_v26 = vrot.slane %v10013_v14, %v9749_v49  ;;  %v930_v14 = vcombine.high %v10044_v25, %v10044_v25  ;;  %v8531_v25 = vld [vmem:[%s12458_s2 + $0x644] ss:$16 sps:$4 sm:$0xff]  }
  0x88   :  { %5154 = vmatprep.subr.bf16.mxu0 %v8434_v27  ;;  %5687 = vmatprep.subr.bf16.mxu1 %v8437_v28  ;;  %v8520_v27 = vld [vmem:[%s12458_s2 + $0x608] ss:$16 sps:$4 sm:$0xff]   ;;  %v8525_v28 = vld [vmem:[%s12458_s2 + $0x624] ss:$16 sps:$4 sm:$0xff]  }
  0x8b   :  { %5155 = vmatpush1.bf16.msra.mxu0 %v8432_v29  ;;  %5688 = vmatpush1.bf16.msra.mxu1 %v8435_v30  ;;  %v8528_v29 = vld [vmem:[%s12458_s2 + $0x62c] ss:$16 sps:$4 sm:$0xff]   ;;  %v8523_v30 = vld [vmem:[%s12458_s2 + $0x620] ss:$16 sps:$4 sm:$0xff]  }
  0x8c   :  { %5156 = vmatprep.subr.bf16.mxu0 %v8440_v31  ;;  %5689 = vmatprep.subr.bf16.mxu1 %v8443_v32  ;;  %v8526_v31 = vld [vmem:[%s12458_s2 + $0x628] ss:$16 sps:$4 sm:$0xff]   ;;  %v8534_v32 = vld [vmem:[%s12458_s2 + $0x64c] ss:$16 sps:$4 sm:$0xff]  }
  0x8f   :  { %5157 = vmatpush1.bf16.msra.mxu0 %v8438_v33  ;;  %5690 = vmatpush1.bf16.msra.mxu1 %v8441_v34  ;;  %v8529_v33 = vld [vmem:[%s12458_s2 + $0x640] ss:$16 sps:$4 sm:$0xff]   ;;  %v8532_v34 = vld [vmem:[%s12458_s2 + $0x648] ss:$16 sps:$4 sm:$0xff]  }
  0x90   :  { %5158 = vmatprep.subr.bf16.mxu0 %v8446_v35  ;;  %5691 = vmatprep.subr.bf16.mxu1 %v8449_v36  ;;  %v8537_v35 = vld [vmem:[%s12458_s2 + $0x664] ss:$16 sps:$4 sm:$0xff]   ;;  %v8540_v36 = vld [vmem:[%s12458_s2 + $0x66c] ss:$16 sps:$4 sm:$0xff]  }
  0x93   :  { %5159 = vmatpush1.bf16.msra.mxu0 %v8444_v37  ;;  %5692 = vmatpush1.bf16.msra.mxu1 %v8447_v38  ;;  %v8535_v37 = vld [vmem:[%s12458_s2 + $0x660] ss:$16 sps:$4 sm:$0xff]   ;;  %v8538_v38 = vld [vmem:[%s12458_s2 + $0x668] ss:$16 sps:$4 sm:$0xff]  }
  0x94   :  { %5160 = vmatprep.subr.bf16.mxu0 %v8452_v39  ;;  %5693 = vmatprep.subr.bf16.mxu1 %v8455_v40  ;;  %v8543_v39 = vld [vmem:[%s12458_s2 + $0x684] ss:$16 sps:$4 sm:$0xff]   ;;  %v8546_v40 = vld [vmem:[%s12458_s2 + $0x68c] ss:$16 sps:$4 sm:$0xff]  }
  0x97   :  { %5161 = vmatpush1.bf16.msra.mxu0 %v8450_v41  ;;  %5694 = vmatpush1.bf16.msra.mxu1 %v8453_v43  ;;  %v8541_v41 = vld [vmem:[%s12458_s2 + $0x680] ss:$16 sps:$4 sm:$0xff]   ;;  %v8544_v43 = vld [vmem:[%s12458_s2 + $0x688] ss:$16 sps:$4 sm:$0xff]  }
  0x98   :  { %5162 = vmatprep.subr.bf16.mxu0 %v8458_v44  ;;  %5695 = vmatprep.subr.bf16.mxu1 %v8461_v45  ;;  %v8549_v44 = vld [vmem:[%s12458_s2 + $0x6a4] ss:$16 sps:$4 sm:$0xff]   ;;  %v8552_v45 = vld [vmem:[%s12458_s2 + $0x6ac] ss:$16 sps:$4 sm:$0xff]  }
  0x9b   :  { %5163 = vmatpush1.bf16.msra.mxu0 %v8456_v46  ;;  %5696 = vmatpush1.bf16.msra.mxu1 %v8459_v47  ;;  %v8547_v46 = vld [vmem:[%s12458_s2 + $0x6a0] ss:$16 sps:$4 sm:$0xff]   ;;  %v8550_v47 = vld [vmem:[%s12458_s2 + $0x6a8] ss:$16 sps:$4 sm:$0xff]  }
  0x9c   :  { %5164 = vmatprep.subr.bf16.mxu0 %v8464_v48  ;;  %5697 = vmatprep.subr.bf16.mxu1 %v8467_v50  ;;  %v8555_v48 = vld [vmem:[%s12458_s2 + $0x6c4] ss:$16 sps:$4 sm:$0xff]   ;;  %v8558_v50 = vld [vmem:[%s12458_s2 + $0x6cc] ss:$16 sps:$4 sm:$0xff]  }
  0x9f   :  { %5165 = vmatpush1.bf16.msra.mxu0 %v8462_v51  ;;  %5698 = vmatpush1.bf16.msra.mxu1 %v8465_v53  ;;  %v8553_v51 = vld [vmem:[%s12458_s2 + $0x6c0] ss:$16 sps:$4 sm:$0xff]   ;;  %v8556_v53 = vld [vmem:[%s12458_s2 + $0x6c8] ss:$16 sps:$4 sm:$0xff]  }
  0xa0   :  { %5166 = vmatprep.subr.bf16.mxu0 %v8470_v54  ;;  %5699 = vmatprep.subr.bf16.mxu1 %v8473_v55  ;;  %v8561_v54 = vld [vmem:[%s12458_s2 + $0x6e4] ss:$16 sps:$4 sm:$0xff]   ;;  %v8564_v55 = vld [vmem:[%s12458_s2 + $0x6ec] ss:$16 sps:$4 sm:$0xff]  }
  0xa3   :  { %5167 = vmatpush1.bf16.msra.mxu0 %v8468_v56  ;;  %5700 = vmatpush1.bf16.msra.mxu1 %v8471_v57  ;;  %v8559_v56 = vld [vmem:[%s12458_s2 + $0x6e0] ss:$16 sps:$4 sm:$0xff]   ;;  %v8562_v57 = vld [vmem:[%s12458_s2 + $0x6e8] ss:$16 sps:$4 sm:$0xff]  }
  0xa4   :  { %5168 = vmatprep.subr.bf16.mxu0 %v8476_v58  ;;  %5701 = vmatprep.subr.bf16.mxu1 %v8479_v59  ;;  %v8567_v58 = vld [vmem:[%s12458_s2 + $0x704] ss:$16 sps:$4 sm:$0xff]   ;;  %v8570_v59 = vld [vmem:[%s12458_s2 + $0x70c] ss:$16 sps:$4 sm:$0xff]  }
  0xa7   :  { %5169 = vmatpush1.bf16.msra.mxu0 %v8474_v60  ;;  %5702 = vmatpush1.bf16.msra.mxu1 %v8477_v61  ;;  %v8565_v60 = vld [vmem:[%s12458_s2 + $0x700] ss:$16 sps:$4 sm:$0xff]   ;;  %v8568_v61 = vld [vmem:[%s12458_s2 + $0x708] ss:$16 sps:$4 sm:$0xff]  }
  0xa8   :  { %5170 = vmatprep.subr.bf16.mxu0 %v8482_v62  ;;  %5703 = vmatprep.subr.bf16.mxu1 %v8485_v63  ;;  %v8573_v62 = vld [vmem:[%s12458_s2 + $0x724] ss:$16 sps:$4 sm:$0xff]   ;;  %v8576_v63 = vld [vmem:[%s12458_s2 + $0x72c] ss:$16 sps:$4 sm:$0xff]  }
  0xab   :  { %5171 = vmatpush1.bf16.msra.mxu0 %v8480_v0  ;;  %5704 = vmatpush1.bf16.msra.mxu1 %v8483_v1  ;;  %v8571_v0 = vld [vmem:[%s12458_s2 + $0x720] ss:$16 sps:$4 sm:$0xff]   ;;  %v8574_v1 = vld [vmem:[%s12458_s2 + $0x728] ss:$16 sps:$4 sm:$0xff]  }
  0xac   :  { %5172 = vmatprep.subr.bf16.mxu0 %v8488_v2  ;;  %5705 = vmatprep.subr.bf16.mxu1 %v8491_v3  ;;  %v8579_v2 = vld [vmem:[%s12458_s2 + $0x744] ss:$16 sps:$4 sm:$0xff]   ;;  %v8582_v3 = vld [vmem:[%s12458_s2 + $0x74c] ss:$16 sps:$4 sm:$0xff]  }
  0xaf   :  { %5173 = vmatpush1.bf16.msra.mxu0 %v8486_v4  ;;  %5706 = vmatpush1.bf16.msra.mxu1 %v8489_v5  ;;  %v8577_v4 = vld [vmem:[%s12458_s2 + $0x740] ss:$16 sps:$4 sm:$0xff]   ;;  %v8580_v5 = vld [vmem:[%s12458_s2 + $0x748] ss:$16 sps:$4 sm:$0xff]  }
  0xb0   :  { %5174 = vmatprep.subr.bf16.mxu0 %v8494_v6  ;;  %5707 = vmatprep.subr.bf16.mxu1 %v8497_v7  ;;  %v8585_v6 = vld [vmem:[%s12458_s2 + $0x764] ss:$16 sps:$4 sm:$0xff]   ;;  %v8588_v7 = vld [vmem:[%s12458_s2 + $0x76c] ss:$16 sps:$4 sm:$0xff]  }
  0xb3   :  { %5175 = vmatpush1.bf16.msra.mxu0 %v8492_v8  ;;  %5708 = vmatpush1.bf16.msra.mxu1 %v8495_v9  ;;  %v8583_v8 = vld [vmem:[%s12458_s2 + $0x760] ss:$16 sps:$4 sm:$0xff]   ;;  %v8586_v9 = vld [vmem:[%s12458_s2 + $0x768] ss:$16 sps:$4 sm:$0xff]  }
  0xb4   :  { %5176 = vmatprep.subr.bf16.mxu0 %v8500_v10  ;;  %5709 = vmatprep.subr.bf16.mxu1 %v8503_v11  ;;  %v8591_v10 = vld [vmem:[%s12458_s2 + $0x784] ss:$16 sps:$4 sm:$0xff]   ;;  %v8594_v11 = vld [vmem:[%s12458_s2 + $0x78c] ss:$16 sps:$4 sm:$0xff]  }
  0xb7   :  { %5177 = vmatpush1.bf16.msra.mxu0 %v8498_v12  ;;  %5710 = vmatpush1.bf16.msra.mxu1 %v8501_v52  ;;  %v8589_v12 = vld [vmem:[%s12458_s2 + $0x780] ss:$16 sps:$4 sm:$0xff]   ;;  %v8592_v52 = vld [vmem:[%s12458_s2 + $0x788] ss:$16 sps:$4 sm:$0xff]  }
  0xb8   :  { %5178 = vmatprep.subr.bf16.mxu0 %v8506_v15  ;;  %5711 = vmatprep.subr.bf16.mxu1 %v8509_v16  ;;  %v8597_v15 = vld [vmem:[%s12458_s2 + $0x7a4] ss:$16 sps:$4 sm:$0xff]   ;;  %v8600_v16 = vld [vmem:[%s12458_s2 + $0x7ac] ss:$16 sps:$4 sm:$0xff]  }
  0xbb   :  { %5179 = vmatpush1.bf16.msra.mxu0 %v8504_v17  ;;  %5712 = vmatpush1.bf16.msra.mxu1 %v8507_v18  ;;  %v8595_v17 = vld [vmem:[%s12458_s2 + $0x7a0] ss:$16 sps:$4 sm:$0xff]   ;;  %v8598_v18 = vld [vmem:[%s12458_s2 + $0x7a8] ss:$16 sps:$4 sm:$0xff]  }
  0xbc   :  { %5180 = vmatprep.subr.bf16.mxu0 %v8512_v19  ;;  %5713 = vmatprep.subr.bf16.mxu1 %v8515_v20  ;;  %v8603_v19 = vld [vmem:[%s12458_s2 + $0x7c4] ss:$16 sps:$4 sm:$0xff]   ;;  %v8606_v20 = vld [vmem:[%s12458_s2 + $0x7cc] ss:$16 sps:$4 sm:$0xff]  }
  0xbf   :  { %5181 = vmatpush1.bf16.msra.mxu0 %v8510_v21  ;;  %5714 = vmatpush1.bf16.msra.mxu1 %v8513_v22  ;;  %v10407_v21 = vld.sshfl [vmem:[%s12456_s0 + $0x8] sm:$0xff pattern:$0x75316420]  ;;  %v8601_v22 = vld [vmem:[%s12458_s2 + $0x7c0] ss:$16 sps:$4 sm:$0xff]  }
  0xc0   :  { %5191 = vmatprep.subr.bf16.mxu0 %v8519_v23  ;;  %5724 = vmatprep.subr.bf16.mxu1 %v8522_v24  ;;  %v8604_v23 = vld [vmem:[%s12458_s2 + $0x7c8] ss:$16 sps:$4 sm:$0xff]   ;;  %v8609_v24 = vld [vmem:[%s12458_s2 + $0x7e4] ss:$16 sps:$4 sm:$0xff]  }
  0xc2   :  { %5183 = vmatmul.mubr.bf16.vlgmr.msra.gmra.mrb[0].mxu0 %v10233_v26  ;;  %5716 = vmatmul.mubr.bf16.vlgmr.msra.gmra.mrb[0].mxu1 %v10233_v26 }
  0xc3   :  { %5192 = vmatpush1.bf16.msra.mxu0 %v8517_v13  ;;  %5725 = vmatpush1.bf16.msra.mxu1 %v8520_v27  ;;  %v8612_v13 = vld [vmem:[%s12458_s2 + $0x7ec] ss:$16 sps:$4 sm:$0xff]   ;;  %v8607_v27 = vld [vmem:[%s12458_s2 + $0x7e0] ss:$16 sps:$4 sm:$0xff]  }
  0xc4   :  { %5193 = vmatprep.subr.bf16.mxu0 %v8525_v28  ;;  %5726 = vmatprep.subr.bf16.mxu1 %v8528_v29  ;;  %v8610_v28 = vld [vmem:[%s12458_s2 + $0x7e8] ss:$16 sps:$4 sm:$0xff]   ;;  %v8615_v29 = vld [vmem:[%s12458_s2 + $0x804] ss:$16 sps:$4 sm:$0xff]  }
  0xc5   :  { %5223 = vmatprep.mubr.bf16.mxu0 %v930_v14  ;;  %5756 = vmatprep.mubr.bf16.mxu1 %v930_v14  ;;  %v8618_v14 = vld [vmem:[%s12458_s2 + $0x80c] ss:$16 sps:$4 sm:$0xff]  }
  0xc7   :  { %5194 = vmatpush1.bf16.msra.mxu0 %v8523_v30  ;;  %5727 = vmatpush1.bf16.msra.mxu1 %v8526_v31  ;;  %v946_v30 = vcombine.high %v10407_v21, %v10407_v21  ;;  %v928_v31 = vcombine.high %v10233_v26, %v10233_v26  ;;  %v8624_v26 = vld [vmem:[%s12458_s2 + $0x82c] ss:$16 sps:$4 sm:$0xff]  }
  0xc8   :  { %5195 = vmatprep.subr.bf16.mxu0 %v8531_v25  ;;  %5728 = vmatprep.subr.bf16.mxu1 %v8534_v32  ;;  %v8613_v25 = vld [vmem:[%s12458_s2 + $0x800] ss:$16 sps:$4 sm:$0xff]   ;;  %v8616_v32 = vld [vmem:[%s12458_s2 + $0x808] ss:$16 sps:$4 sm:$0xff]  }
  0xcb   :  { %5196 = vmatpush1.bf16.msra.mxu0 %v8529_v33  ;;  %5729 = vmatpush1.bf16.msra.mxu1 %v8532_v34  ;;  %v8621_v33 = vld [vmem:[%s12458_s2 + $0x824] ss:$16 sps:$4 sm:$0xff]   ;;  %v10450_v34 = vrot.slane %v946_v30, %v9749_v49 }
  0xcc   :  { %5197 = vmatprep.subr.bf16.mxu0 %v8537_v35  ;;  %5730 = vmatprep.subr.bf16.mxu1 %v8540_v36  ;;  %v8619_v35 = vld [vmem:[%s12458_s2 + $0x820] ss:$16 sps:$4 sm:$0xff]   ;;  %v8622_v36 = vld [vmem:[%s12458_s2 + $0x828] ss:$16 sps:$4 sm:$0xff]   ;;  %v8705_v30 = vld [vmem:[%s12458_s2 + $0x9e4] ss:$16 sps:$4 sm:$0xff]  }
  0xcf   :  { %5198 = vmatpush1.bf16.msra.mxu0 %v8535_v37  ;;  %5731 = vmatpush1.bf16.msra.mxu1 %v8538_v38  ;;  %v8627_v37 = vld [vmem:[%s12458_s2 + $0x844] ss:$16 sps:$4 sm:$0xff]   ;;  %v8630_v38 = vld [vmem:[%s12458_s2 + $0x84c] ss:$16 sps:$4 sm:$0xff]  }
  0xd0   :  { %5199 = vmatprep.subr.bf16.mxu0 %v8543_v39  ;;  %5732 = vmatprep.subr.bf16.mxu1 %v8546_v40  ;;  %v8625_v39 = vld [vmem:[%s12458_s2 + $0x840] ss:$16 sps:$4 sm:$0xff]   ;;  %v8628_v40 = vld [vmem:[%s12458_s2 + $0x848] ss:$16 sps:$4 sm:$0xff]  }
  0xd3   :  { %5200 = vmatpush1.bf16.msra.mxu0 %v8541_v41  ;;  %5733 = vmatpush1.bf16.msra.mxu1 %v8544_v43  ;;  %v8633_v41 = vld [vmem:[%s12458_s2 + $0x864] ss:$16 sps:$4 sm:$0xff]   ;;  %v8636_v43 = vld [vmem:[%s12458_s2 + $0x86c] ss:$16 sps:$4 sm:$0xff]  }
  0xd4   :  { %5201 = vmatprep.subr.bf16.mxu0 %v8549_v44  ;;  %5734 = vmatprep.subr.bf16.mxu1 %v8552_v45  ;;  %v8631_v44 = vld [vmem:[%s12458_s2 + $0x860] ss:$16 sps:$4 sm:$0xff]   ;;  %v8634_v45 = vld [vmem:[%s12458_s2 + $0x868] ss:$16 sps:$4 sm:$0xff]  }
  0xd7   :  { %5202 = vmatpush1.bf16.msra.mxu0 %v8547_v46  ;;  %5735 = vmatpush1.bf16.msra.mxu1 %v8550_v47  ;;  %v8639_v46 = vld [vmem:[%s12458_s2 + $0x884] ss:$16 sps:$4 sm:$0xff]   ;;  %v8642_v47 = vld [vmem:[%s12458_s2 + $0x88c] ss:$16 sps:$4 sm:$0xff]  }
  0xd8   :  { %5203 = vmatprep.subr.bf16.mxu0 %v8555_v48  ;;  %5736 = vmatprep.subr.bf16.mxu1 %v8558_v50  ;;  %v8637_v48 = vld [vmem:[%s12458_s2 + $0x880] ss:$16 sps:$4 sm:$0xff]   ;;  %v8640_v50 = vld [vmem:[%s12458_s2 + $0x888] ss:$16 sps:$4 sm:$0xff]  }
  0xdb   :  { %5204 = vmatpush1.bf16.msra.mxu0 %v8553_v51  ;;  %5737 = vmatpush1.bf16.msra.mxu1 %v8556_v53  ;;  %v8645_v51 = vld [vmem:[%s12458_s2 + $0x8a4] ss:$16 sps:$4 sm:$0xff]   ;;  %v8648_v53 = vld [vmem:[%s12458_s2 + $0x8ac] ss:$16 sps:$4 sm:$0xff]  }
  0xdc   :  { %5205 = vmatprep.subr.bf16.mxu0 %v8561_v54  ;;  %5738 = vmatprep.subr.bf16.mxu1 %v8564_v55  ;;  %v8643_v54 = vld [vmem:[%s12458_s2 + $0x8a0] ss:$16 sps:$4 sm:$0xff]   ;;  %v8646_v55 = vld [vmem:[%s12458_s2 + $0x8a8] ss:$16 sps:$4 sm:$0xff]  }
  0xdf   :  { %5206 = vmatpush1.bf16.msra.mxu0 %v8559_v56  ;;  %5739 = vmatpush1.bf16.msra.mxu1 %v8562_v57  ;;  %v8651_v56 = vld [vmem:[%s12458_s2 + $0x8c4] ss:$16 sps:$4 sm:$0xff]   ;;  %v8654_v57 = vld [vmem:[%s12458_s2 + $0x8cc] ss:$16 sps:$4 sm:$0xff]  }
  0xe0   :  { %5207 = vmatprep.subr.bf16.mxu0 %v8567_v58  ;;  %5740 = vmatprep.subr.bf16.mxu1 %v8570_v59  ;;  %v8649_v58 = vld [vmem:[%s12458_s2 + $0x8c0] ss:$16 sps:$4 sm:$0xff]   ;;  %v8652_v59 = vld [vmem:[%s12458_s2 + $0x8c8] ss:$16 sps:$4 sm:$0xff]  }
  0xe3   :  { %5208 = vmatpush1.bf16.msra.mxu0 %v8565_v60  ;;  %5741 = vmatpush1.bf16.msra.mxu1 %v8568_v61  ;;  %v8657_v60 = vld [vmem:[%s12458_s2 + $0x8e4] ss:$16 sps:$4 sm:$0xff]   ;;  %v8660_v61 = vld [vmem:[%s12458_s2 + $0x8ec] ss:$16 sps:$4 sm:$0xff]  }
  0xe4   :  { %5209 = vmatprep.subr.bf16.mxu0 %v8573_v62  ;;  %5742 = vmatprep.subr.bf16.mxu1 %v8576_v63  ;;  %v8655_v62 = vld [vmem:[%s12458_s2 + $0x8e0] ss:$16 sps:$4 sm:$0xff]   ;;  %v8658_v63 = vld [vmem:[%s12458_s2 + $0x8e8] ss:$16 sps:$4 sm:$0xff]  }
  0xe7   :  { %5210 = vmatpush1.bf16.msra.mxu0 %v8571_v0  ;;  %5743 = vmatpush1.bf16.msra.mxu1 %v8574_v1  ;;  %v8663_v0 = vld [vmem:[%s12458_s2 + $0x904] ss:$16 sps:$4 sm:$0xff]   ;;  %v8666_v1 = vld [vmem:[%s12458_s2 + $0x90c] ss:$16 sps:$4 sm:$0xff]  }
  0xe8   :  { %5211 = vmatprep.subr.bf16.mxu0 %v8579_v2  ;;  %5744 = vmatprep.subr.bf16.mxu1 %v8582_v3  ;;  %v8661_v2 = vld [vmem:[%s12458_s2 + $0x900] ss:$16 sps:$4 sm:$0xff]   ;;  %v8664_v3 = vld [vmem:[%s12458_s2 + $0x908] ss:$16 sps:$4 sm:$0xff]  }
  0xeb   :  { %5212 = vmatpush1.bf16.msra.mxu0 %v8577_v4  ;;  %5745 = vmatpush1.bf16.msra.mxu1 %v8580_v5  ;;  %v8669_v4 = vld [vmem:[%s12458_s2 + $0x924] ss:$16 sps:$4 sm:$0xff]   ;;  %v8672_v5 = vld [vmem:[%s12458_s2 + $0x92c] ss:$16 sps:$4 sm:$0xff]  }
  0xec   :  { %5213 = vmatprep.subr.bf16.mxu0 %v8585_v6  ;;  %5746 = vmatprep.subr.bf16.mxu1 %v8588_v7  ;;  %v8667_v6 = vld [vmem:[%s12458_s2 + $0x920] ss:$16 sps:$4 sm:$0xff]   ;;  %v8670_v7 = vld [vmem:[%s12458_s2 + $0x928] ss:$16 sps:$4 sm:$0xff]  }
  0xef   :  { %5214 = vmatpush1.bf16.msra.mxu0 %v8583_v8  ;;  %5747 = vmatpush1.bf16.msra.mxu1 %v8586_v9  ;;  %v8675_v8 = vld [vmem:[%s12458_s2 + $0x944] ss:$16 sps:$4 sm:$0xff]   ;;  %v8678_v9 = vld [vmem:[%s12458_s2 + $0x94c] ss:$16 sps:$4 sm:$0xff]  }
  0xf0   :  { %5215 = vmatprep.subr.bf16.mxu0 %v8591_v10  ;;  %5748 = vmatprep.subr.bf16.mxu1 %v8594_v11  ;;  %v8673_v10 = vld [vmem:[%s12458_s2 + $0x940] ss:$16 sps:$4 sm:$0xff]   ;;  %v8676_v11 = vld [vmem:[%s12458_s2 + $0x948] ss:$16 sps:$4 sm:$0xff]  }
  0xf3   :  { %5216 = vmatpush1.bf16.msra.mxu0 %v8589_v12  ;;  %5749 = vmatpush1.bf16.msra.mxu1 %v8592_v52  ;;  %v8681_v12 = vld [vmem:[%s12458_s2 + $0x964] ss:$16 sps:$4 sm:$0xff]   ;;  %v8684_v52 = vld [vmem:[%s12458_s2 + $0x96c] ss:$16 sps:$4 sm:$0xff]  }
  0xf4   :  { %5217 = vmatprep.subr.bf16.mxu0 %v8597_v15  ;;  %5750 = vmatprep.subr.bf16.mxu1 %v8600_v16  ;;  %v8679_v15 = vld [vmem:[%s12458_s2 + $0x960] ss:$16 sps:$4 sm:$0xff]   ;;  %v8682_v16 = vld [vmem:[%s12458_s2 + $0x968] ss:$16 sps:$4 sm:$0xff]  }
  0xf7   :  { %5218 = vmatpush1.bf16.msra.mxu0 %v8595_v17  ;;  %5751 = vmatpush1.bf16.msra.mxu1 %v8598_v18  ;;  %v8687_v17 = vld [vmem:[%s12458_s2 + $0x984] ss:$16 sps:$4 sm:$0xff]   ;;  %v8690_v18 = vld [vmem:[%s12458_s2 + $0x98c] ss:$16 sps:$4 sm:$0xff]  }
  0xf8   :  { %5219 = vmatprep.subr.bf16.mxu0 %v8603_v19  ;;  %5752 = vmatprep.subr.bf16.mxu1 %v8606_v20  ;;  %v8685_v19 = vld [vmem:[%s12458_s2 + $0x980] ss:$16 sps:$4 sm:$0xff]   ;;  %v8688_v20 = vld [vmem:[%s12458_s2 + $0x988] ss:$16 sps:$4 sm:$0xff]  }
  0xfb   :  { %5220 = vmatpush1.bf16.msra.mxu0 %v8601_v22  ;;  %5753 = vmatpush1.bf16.msra.mxu1 %v8604_v23  ;;  %v8693_v22 = vld [vmem:[%s12458_s2 + $0x9a4] ss:$16 sps:$4 sm:$0xff]   ;;  %v8696_v23 = vld [vmem:[%s12458_s2 + $0x9ac] ss:$16 sps:$4 sm:$0xff]  }
  0xfc   :  { %5221 = vmatprep.subr.bf16.mxu0 %v8609_v24  ;;  %5754 = vmatprep.subr.bf16.mxu1 %v8612_v13  ;;  %v8691_v24 = vld [vmem:[%s12458_s2 + $0x9a0] ss:$16 sps:$4 sm:$0xff]   ;;  %v8694_v13 = vld [vmem:[%s12458_s2 + $0x9a8] ss:$16 sps:$4 sm:$0xff]  }
  0xff   :  { %5222 = vmatpush1.bf16.msra.mxu0 %v8607_v27  ;;  %5755 = vmatpush1.bf16.msra.mxu1 %v8610_v28  ;;  %v8699_v27 = vld [vmem:[%s12458_s2 + $0x9c4] ss:$16 sps:$4 sm:$0xff]   ;;  %v8702_v28 = vld [vmem:[%s12458_s2 + $0x9cc] ss:$16 sps:$4 sm:$0xff]  }
 0x100   :  { %5232 = vmatprep.subr.bf16.mxu0 %v8615_v29  ;;  %5765 = vmatprep.subr.bf16.mxu1 %v8618_v14  ;;  %v8697_v29 = vld [vmem:[%s12458_s2 + $0x9c0] ss:$16 sps:$4 sm:$0xff]   ;;  %v8700_v14 = vld [vmem:[%s12458_s2 + $0x9c8] ss:$16 sps:$4 sm:$0xff]  }
 0x102   :  { %5224 = vmatmul.mubr.bf16.vlgmr.msra.gmra.mrb[0].mxu0 %v928_v31  ;;  %5757 = vmatmul.mubr.bf16.vlgmr.msra.gmra.mrb[0].mxu1 %v928_v31  ;;  %v8708_v31 = vld [vmem:[%s12458_s2 + $0x9ec] ss:$16 sps:$4 sm:$0xff]  }
 0x103   :  { %5233 = vmatpush1.bf16.msra.mxu0 %v8613_v25  ;;  %5766 = vmatpush1.bf16.msra.mxu1 %v8616_v32  ;;  %v8703_v25 = vld [vmem:[%s12458_s2 + $0x9e0] ss:$16 sps:$4 sm:$0xff]   ;;  %v8706_v32 = vld [vmem:[%s12458_s2 + $0x9e8] ss:$16 sps:$4 sm:$0xff]  }
 0x104   :  { %5234 = vmatprep.subr.bf16.mxu0 %v8621_v33  ;;  %5767 = vmatprep.subr.bf16.mxu1 %v8624_v26  ;;  %v8711_v33 = vld [vmem:[%s12458_s2 + $0xa04] ss:$16 sps:$4 sm:$0xff]   ;;  %v8714_v26 = vld [vmem:[%s12458_s2 + $0xa0c] ss:$16 sps:$4 sm:$0xff]  }
 0x105   :  { %5264 = vmatprep.mubr.bf16.mxu0 %v10450_v34  ;;  %5797 = vmatprep.mubr.bf16.mxu1 %v10450_v34 }
 0x107   :  { %5235 = vmatpush1.bf16.msra.mxu0 %v8619_v35  ;;  %5768 = vmatpush1.bf16.msra.mxu1 %v8622_v36  ;;  %v10636_v35 = vrot.slane %v10407_v21, %v9749_v49  ;;  %v8709_v36 = vld [vmem:[%s12458_s2 + $0xa00] ss:$16 sps:$4 sm:$0xff]   ;;  %v8720_v21 = vld [vmem:[%s12458_s2 + $0xa2c] ss:$16 sps:$4 sm:$0xff]  }
 0x108   :  { %5236 = vmatprep.subr.bf16.mxu0 %v8627_v37  ;;  %5769 = vmatprep.subr.bf16.mxu1 %v8630_v38  ;;  %v8712_v37 = vld [vmem:[%s12458_s2 + $0xa08] ss:$16 sps:$4 sm:$0xff]   ;;  %v8717_v38 = vld [vmem:[%s12458_s2 + $0xa24] ss:$16 sps:$4 sm:$0xff]  }
 0x10b   :  { %5237 = vmatpush1.bf16.msra.mxu0 %v8625_v39  ;;  %5770 = vmatpush1.bf16.msra.mxu1 %v8628_v40  ;;  %v978_v39 = vcombine.high %v10450_v34, %v10450_v34  ;;  %v8715_v40 = vld [vmem:[%s12458_s2 + $0xa20] ss:$16 sps:$4 sm:$0xff]   ;;  %v8723_v34 = vld [vmem:[%s12458_s2 + $0xa44] ss:$16 sps:$4 sm:$0xff]  }
 0x10c   :  { %5238 = vmatprep.subr.bf16.mxu0 %v8633_v41  ;;  %5771 = vmatprep.subr.bf16.mxu1 %v8636_v43  ;;  %v8718_v41 = vld [vmem:[%s12458_s2 + $0xa28] ss:$16 sps:$4 sm:$0xff]   ;;  %v8726_v43 = vld [vmem:[%s12458_s2 + $0xa4c] ss:$16 sps:$4 sm:$0xff]  }
 0x10f   :  { %5239 = vmatpush1.bf16.msra.mxu0 %v8631_v44  ;;  %5772 = vmatpush1.bf16.msra.mxu1 %v8634_v45  ;;  %v8721_v44 = vld [vmem:[%s12458_s2 + $0xa40] ss:$16 sps:$4 sm:$0xff]   ;;  %v8724_v45 = vld [vmem:[%s12458_s2 + $0xa48] ss:$16 sps:$4 sm:$0xff]  }
 0x110   :  { %5240 = vmatprep.subr.bf16.mxu0 %v8639_v46  ;;  %5773 = vmatprep.subr.bf16.mxu1 %v8642_v47  ;;  %v8729_v46 = vld [vmem:[%s12458_s2 + $0xa64] ss:$16 sps:$4 sm:$0xff]   ;;  %v8732_v47 = vld [vmem:[%s12458_s2 + $0xa6c] ss:$16 sps:$4 sm:$0xff]  }
 0x113   :  { %5241 = vmatpush1.bf16.msra.mxu0 %v8637_v48  ;;  %5774 = vmatpush1.bf16.msra.mxu1 %v8640_v50  ;;  %v8727_v48 = vld [vmem:[%s12458_s2 + $0xa60] ss:$16 sps:$4 sm:$0xff]   ;;  %v8730_v50 = vld [vmem:[%s12458_s2 + $0xa68] ss:$16 sps:$4 sm:$0xff]  }
 0x114   :  { %5242 = vmatprep.subr.bf16.mxu0 %v8645_v51  ;;  %5775 = vmatprep.subr.bf16.mxu1 %v8648_v53  ;;  %v8735_v51 = vld [vmem:[%s12458_s2 + $0xa84] ss:$16 sps:$4 sm:$0xff]   ;;  %v8738_v53 = vld [vmem:[%s12458_s2 + $0xa8c] ss:$16 sps:$4 sm:$0xff]  }
 0x117   :  { %5243 = vmatpush1.bf16.msra.mxu0 %v8643_v54  ;;  %5776 = vmatpush1.bf16.msra.mxu1 %v8646_v55  ;;  %v8733_v54 = vld [vmem:[%s12458_s2 + $0xa80] ss:$16 sps:$4 sm:$0xff]   ;;  %v8736_v55 = vld [vmem:[%s12458_s2 + $0xa88] ss:$16 sps:$4 sm:$0xff]  }
 0x118   :  { %5244 = vmatprep.subr.bf16.mxu0 %v8651_v56  ;;  %5777 = vmatprep.subr.bf16.mxu1 %v8654_v57  ;;  %v8741_v56 = vld [vmem:[%s12458_s2 + $0xaa4] ss:$16 sps:$4 sm:$0xff]   ;;  %v8744_v57 = vld [vmem:[%s12458_s2 + $0xaac] ss:$16 sps:$4 sm:$0xff]  }
 0x11b   :  { %5245 = vmatpush1.bf16.msra.mxu0 %v8649_v58  ;;  %5778 = vmatpush1.bf16.msra.mxu1 %v8652_v59  ;;  %v8739_v58 = vld [vmem:[%s12458_s2 + $0xaa0] ss:$16 sps:$4 sm:$0xff]   ;;  %v8742_v59 = vld [vmem:[%s12458_s2 + $0xaa8] ss:$16 sps:$4 sm:$0xff]  }
 0x11c   :  { %5246 = vmatprep.subr.bf16.mxu0 %v8657_v60  ;;  %5779 = vmatprep.subr.bf16.mxu1 %v8660_v61  ;;  %v8747_v60 = vld [vmem:[%s12458_s2 + $0xac4] ss:$16 sps:$4 sm:$0xff]   ;;  %v8750_v61 = vld [vmem:[%s12458_s2 + $0xacc] ss:$16 sps:$4 sm:$0xff]  }
 0x11f   :  { %5247 = vmatpush1.bf16.msra.mxu0 %v8655_v62  ;;  %5780 = vmatpush1.bf16.msra.mxu1 %v8658_v63  ;;  %v8745_v62 = vld [vmem:[%s12458_s2 + $0xac0] ss:$16 sps:$4 sm:$0xff]   ;;  %v8748_v63 = vld [vmem:[%s12458_s2 + $0xac8] ss:$16 sps:$4 sm:$0xff]  }
 0x120   :  { %5248 = vmatprep.subr.bf16.mxu0 %v8663_v0  ;;  %5781 = vmatprep.subr.bf16.mxu1 %v8666_v1  ;;  %v8753_v0 = vld [vmem:[%s12458_s2 + $0xae4] ss:$16 sps:$4 sm:$0xff]   ;;  %v8756_v1 = vld [vmem:[%s12458_s2 + $0xaec] ss:$16 sps:$4 sm:$0xff]  }
 0x123   :  { %5249 = vmatpush1.bf16.msra.mxu0 %v8661_v2  ;;  %5782 = vmatpush1.bf16.msra.mxu1 %v8664_v3  ;;  %v8751_v2 = vld [vmem:[%s12458_s2 + $0xae0] ss:$16 sps:$4 sm:$0xff]   ;;  %v8754_v3 = vld [vmem:[%s12458_s2 + $0xae8] ss:$16 sps:$4 sm:$0xff]  }
 0x124   :  { %5250 = vmatprep.subr.bf16.mxu0 %v8669_v4  ;;  %5783 = vmatprep.subr.bf16.mxu1 %v8672_v5  ;;  %v8759_v4 = vld [vmem:[%s12458_s2 + $0xb04] ss:$16 sps:$4 sm:$0xff]   ;;  %v8762_v5 = vld [vmem:[%s12458_s2 + $0xb0c] ss:$16 sps:$4 sm:$0xff]  }
 0x127   :  { %5251 = vmatpush1.bf16.msra.mxu0 %v8667_v6  ;;  %5784 = vmatpush1.bf16.msra.mxu1 %v8670_v7  ;;  %v8757_v6 = vld [vmem:[%s12458_s2 + $0xb00] ss:$16 sps:$4 sm:$0xff]   ;;  %v8760_v7 = vld [vmem:[%s12458_s2 + $0xb08] ss:$16 sps:$4 sm:$0xff]  }
 0x128   :  { %5252 = vmatprep.subr.bf16.mxu0 %v8675_v8  ;;  %5785 = vmatprep.subr.bf16.mxu1 %v8678_v9  ;;  %v8765_v8 = vld [vmem:[%s12458_s2 + $0xb24] ss:$16 sps:$4 sm:$0xff]   ;;  %v8768_v9 = vld [vmem:[%s12458_s2 + $0xb2c] ss:$16 sps:$4 sm:$0xff]  }
 0x12b   :  { %5253 = vmatpush1.bf16.msra.mxu0 %v8673_v10  ;;  %5786 = vmatpush1.bf16.msra.mxu1 %v8676_v11  ;;  %v8763_v10 = vld [vmem:[%s12458_s2 + $0xb20] ss:$16 sps:$4 sm:$0xff]   ;;  %v8766_v11 = vld [vmem:[%s12458_s2 + $0xb28] ss:$16 sps:$4 sm:$0xff]  }
 0x12c   :  { %5254 = vmatprep.subr.bf16.mxu0 %v8681_v12  ;;  %5787 = vmatprep.subr.bf16.mxu1 %v8684_v52  ;;  %v8771_v12 = vld [vmem:[%s12458_s2 + $0xb44] ss:$16 sps:$4 sm:$0xff]   ;;  %v8774_v52 = vld [vmem:[%s12458_s2 + $0xb4c] ss:$16 sps:$4 sm:$0xff]  }
 0x12f   :  { %5255 = vmatpush1.bf16.msra.mxu0 %v8679_v15  ;;  %5788 = vmatpush1.bf16.msra.mxu1 %v8682_v16  ;;  %v8769_v15 = vld [vmem:[%s12458_s2 + $0xb40] ss:$16 sps:$4 sm:$0xff]   ;;  %v8772_v16 = vld [vmem:[%s12458_s2 + $0xb48] ss:$16 sps:$4 sm:$0xff]  }
 0x130   :  { %5256 = vmatprep.subr.bf16.mxu0 %v8687_v17  ;;  %5789 = vmatprep.subr.bf16.mxu1 %v8690_v18  ;;  %v8777_v17 = vld [vmem:[%s12458_s2 + $0xb64] ss:$16 sps:$4 sm:$0xff]   ;;  %v8780_v18 = vld [vmem:[%s12458_s2 + $0xb6c] ss:$16 sps:$4 sm:$0xff]  }
 0x133   :  { %5257 = vmatpush1.bf16.msra.mxu0 %v8685_v19  ;;  %5790 = vmatpush1.bf16.msra.mxu1 %v8688_v20  ;;  %v8775_v19 = vld [vmem:[%s12458_s2 + $0xb60] ss:$16 sps:$4 sm:$0xff]   ;;  %v8778_v20 = vld [vmem:[%s12458_s2 + $0xb68] ss:$16 sps:$4 sm:$0xff]  }
 0x134   :  { %5258 = vmatprep.subr.bf16.mxu0 %v8693_v22  ;;  %5791 = vmatprep.subr.bf16.mxu1 %v8696_v23  ;;  %v8783_v22 = vld [vmem:[%s12458_s2 + $0xb84] ss:$16 sps:$4 sm:$0xff]   ;;  %v8786_v23 = vld [vmem:[%s12458_s2 + $0xb8c] ss:$16 sps:$4 sm:$0xff]  }
 0x137   :  { %5259 = vmatpush1.bf16.msra.mxu0 %v8691_v24  ;;  %5792 = vmatpush1.bf16.msra.mxu1 %v8694_v13  ;;  %v8781_v24 = vld [vmem:[%s12458_s2 + $0xb80] ss:$16 sps:$4 sm:$0xff]   ;;  %v8784_v13 = vld [vmem:[%s12458_s2 + $0xb88] ss:$16 sps:$4 sm:$0xff]  }
 0x138   :  { %5260 = vmatprep.subr.bf16.mxu0 %v8699_v27  ;;  %5793 = vmatprep.subr.bf16.mxu1 %v8702_v28  ;;  %v8789_v27 = vld [vmem:[%s12458_s2 + $0xba4] ss:$16 sps:$4 sm:$0xff]   ;;  %v8792_v28 = vld [vmem:[%s12458_s2 + $0xbac] ss:$16 sps:$4 sm:$0xff]  }
 0x13b   :  { %5261 = vmatpush1.bf16.msra.mxu0 %v8697_v29  ;;  %5794 = vmatpush1.bf16.msra.mxu1 %v8700_v14  ;;  %v8787_v29 = vld [vmem:[%s12458_s2 + $0xba0] ss:$16 sps:$4 sm:$0xff]   ;;  %v8790_v14 = vld [vmem:[%s12458_s2 + $0xba8] ss:$16 sps:$4 sm:$0xff]  }
 0x13c   :  { %5262 = vmatprep.subr.bf16.mxu0 %v8705_v30  ;;  %5795 = vmatprep.subr.bf16.mxu1 %v8708_v31  ;;  %v8795_v30 = vld [vmem:[%s12458_s2 + $0xbc4] ss:$16 sps:$4 sm:$0xff]   ;;  %v8798_v31 = vld [vmem:[%s12458_s2 + $0xbcc] ss:$16 sps:$4 sm:$0xff]  }
 0x13f   :  { %5263 = vmatpush1.bf16.msra.mxu0 %v8703_v25  ;;  %5796 = vmatpush1.bf16.msra.mxu1 %v8706_v32  ;;  %v9503_v25 = vld [vmem:[%s12456_s0 + $0x8] sm:$0xff] }
 0x140   :  { %5273 = vmatprep.subr.bf16.mxu0 %v8711_v33  ;;  %5806 = vmatprep.subr.bf16.mxu1 %v8714_v26  ;;  %v931_v32 = vcombine.high %v9503_v25, %v9503_v25  ;;  %v8793_v33 = vld [vmem:[%s12458_s2 + $0xbc0] ss:$16 sps:$4 sm:$0xff]   ;;  %v8796_v26 = vld [vmem:[%s12458_s2 + $0xbc8] ss:$16 sps:$4 sm:$0xff]  }
 0x141   :  { %v8877_v25 = vld [vmem:[%s12458_s2 + $0xd80] ss:$16 sps:$4 sm:$0xff]  }
 0x142   :  { %5265 = vmatmul.mubr.bf16.vlgmr.msra.gmra.mrb[0].mxu0 %v10636_v35  ;;  %5798 = vmatmul.mubr.bf16.vlgmr.msra.gmra.mrb[0].mxu1 %v10636_v35 }
 0x143   :  { %5274 = vmatpush1.bf16.msra.mxu0 %v8709_v36  ;;  %5807 = vmatpush1.bf16.msra.mxu1 %v8712_v37  ;;  %v8801_v36 = vld [vmem:[%s12458_s2 + $0xbe4] ss:$16 sps:$4 sm:$0xff]   ;;  %v8804_v37 = vld [vmem:[%s12458_s2 + $0xbec] ss:$16 sps:$4 sm:$0xff]  }
 0x144   :  { %5275 = vmatprep.subr.bf16.mxu0 %v8717_v38  ;;  %5808 = vmatprep.subr.bf16.mxu1 %v8720_v21  ;;  %v10826_v38 = vrot.slane %v931_v32, %v9749_v49  ;;  %v8799_v21 = vld [vmem:[%s12458_s2 + $0xbe0] ss:$16 sps:$4 sm:$0xff]   ;;  %v8880_v32 = vld [vmem:[%s12458_s2 + $0xd88] ss:$16 sps:$4 sm:$0xff]  }
 0x145   :  { %5305 = vmatprep.mubr.bf16.mxu0 %v978_v39  ;;  %5838 = vmatprep.mubr.bf16.mxu1 %v978_v39  ;;  %v8802_v39 = vld [vmem:[%s12458_s2 + $0xbe8] ss:$16 sps:$4 sm:$0xff]  }
 0x147   :  { %5276 = vmatpush1.bf16.msra.mxu0 %v8715_v40  ;;  %5809 = vmatpush1.bf16.msra.mxu1 %v8718_v41  ;;  %v8807_v40 = vld [vmem:[%s12458_s2 + $0xc04] ss:$16 sps:$4 sm:$0xff]   ;;  %v8810_v41 = vld [vmem:[%s12458_s2 + $0xc0c] ss:$16 sps:$4 sm:$0xff]  }
 0x148   :  { %5277 = vmatprep.subr.bf16.mxu0 %v8723_v34  ;;  %5810 = vmatprep.subr.bf16.mxu1 %v8726_v43  ;;  %v947_v34 = vcombine.high %v10826_v38, %v10826_v38  ;;  %v976_v43 = vcombine.high %v10636_v35, %v10636_v35  ;;  %v8816_v35 = vld [vmem:[%s12458_s2 + $0xc2c] ss:$16 sps:$4 sm:$0xff]  }
 0x14b   :  { %5278 = vmatpush1.bf16.msra.mxu0 %v8721_v44  ;;  %5811 = vmatpush1.bf16.msra.mxu1 %v8724_v45  ;;  %v8805_v44 = vld [vmem:[%s12458_s2 + $0xc00] ss:$16 sps:$4 sm:$0xff]   ;;  %v8808_v45 = vld [vmem:[%s12458_s2 + $0xc08] ss:$16 sps:$4 sm:$0xff]  }
 0x14c   :  { %5279 = vmatprep.subr.bf16.mxu0 %v8729_v46  ;;  %5812 = vmatprep.subr.bf16.mxu1 %v8732_v47  ;;  %v8813_v46 = vld [vmem:[%s12458_s2 + $0xc24] ss:$16 sps:$4 sm:$0xff]   ;;  %v10857_v47 = vrot.slane %v947_v34, %v9749_v49 }
 0x14d   :  { %v8897_v34 = vld [vmem:[%s12458_s2 + $0xde4] ss:$16 sps:$4 sm:$0xff]  }
 0x14f   :  { %5280 = vmatpush1.bf16.msra.mxu0 %v8727_v48  ;;  %5813 = vmatpush1.bf16.msra.mxu1 %v8730_v50  ;;  %v8811_v48 = vld [vmem:[%s12458_s2 + $0xc20] ss:$16 sps:$4 sm:$0xff]   ;;  %v8814_v50 = vld [vmem:[%s12458_s2 + $0xc28] ss:$16 sps:$4 sm:$0xff]  }
 0x150   :  { %5281 = vmatprep.subr.bf16.mxu0 %v8735_v51  ;;  %5814 = vmatprep.subr.bf16.mxu1 %v8738_v53  ;;  %v8819_v51 = vld [vmem:[%s12458_s2 + $0xc44] ss:$16 sps:$4 sm:$0xff]   ;;  %v8822_v53 = vld [vmem:[%s12458_s2 + $0xc4c] ss:$16 sps:$4 sm:$0xff]  }
 0x153   :  { %5282 = vmatpush1.bf16.msra.mxu0 %v8733_v54  ;;  %5815 = vmatpush1.bf16.msra.mxu1 %v8736_v55  ;;  %v8817_v54 = vld [vmem:[%s12458_s2 + $0xc40] ss:$16 sps:$4 sm:$0xff]   ;;  %v8820_v55 = vld [vmem:[%s12458_s2 + $0xc48] ss:$16 sps:$4 sm:$0xff]  }
 0x154   :  { %5283 = vmatprep.subr.bf16.mxu0 %v8741_v56  ;;  %5816 = vmatprep.subr.bf16.mxu1 %v8744_v57  ;;  %v8825_v56 = vld [vmem:[%s12458_s2 + $0xc64] ss:$16 sps:$4 sm:$0xff]   ;;  %v8828_v57 = vld [vmem:[%s12458_s2 + $0xc6c] ss:$16 sps:$4 sm:$0xff]  }
 0x157   :  { %5284 = vmatpush1.bf16.msra.mxu0 %v8739_v58  ;;  %5817 = vmatpush1.bf16.msra.mxu1 %v8742_v59  ;;  %v8823_v58 = vld [vmem:[%s12458_s2 + $0xc60] ss:$16 sps:$4 sm:$0xff]   ;;  %v8826_v59 = vld [vmem:[%s12458_s2 + $0xc68] ss:$16 sps:$4 sm:$0xff]  }
 0x158   :  { %5285 = vmatprep.subr.bf16.mxu0 %v8747_v60  ;;  %5818 = vmatprep.subr.bf16.mxu1 %v8750_v61  ;;  %v8831_v60 = vld [vmem:[%s12458_s2 + $0xc84] ss:$16 sps:$4 sm:$0xff]   ;;  %v8834_v61 = vld [vmem:[%s12458_s2 + $0xc8c] ss:$16 sps:$4 sm:$0xff]  }
 0x15b   :  { %5286 = vmatpush1.bf16.msra.mxu0 %v8745_v62  ;;  %5819 = vmatpush1.bf16.msra.mxu1 %v8748_v63  ;;  %v8829_v62 = vld [vmem:[%s12458_s2 + $0xc80] ss:$16 sps:$4 sm:$0xff]   ;;  %v8832_v63 = vld [vmem:[%s12458_s2 + $0xc88] ss:$16 sps:$4 sm:$0xff]  }
 0x15c   :  { %5287 = vmatprep.subr.bf16.mxu0 %v8753_v0  ;;  %5820 = vmatprep.subr.bf16.mxu1 %v8756_v1  ;;  %v8837_v0 = vld [vmem:[%s12458_s2 + $0xca4] ss:$16 sps:$4 sm:$0xff]   ;;  %v8840_v1 = vld [vmem:[%s12458_s2 + $0xcac] ss:$16 sps:$4 sm:$0xff]  }
 0x15f   :  { %5288 = vmatpush1.bf16.msra.mxu0 %v8751_v2  ;;  %5821 = vmatpush1.bf16.msra.mxu1 %v8754_v3  ;;  %v8835_v2 = vld [vmem:[%s12458_s2 + $0xca0] ss:$16 sps:$4 sm:$0xff]   ;;  %v8838_v3 = vld [vmem:[%s12458_s2 + $0xca8] ss:$16 sps:$4 sm:$0xff]  }
 0x160   :  { %5289 = vmatprep.subr.bf16.mxu0 %v8759_v4  ;;  %5822 = vmatprep.subr.bf16.mxu1 %v8762_v5  ;;  %v8843_v4 = vld [vmem:[%s12458_s2 + $0xcc4] ss:$16 sps:$4 sm:$0xff]   ;;  %v8846_v5 = vld [vmem:[%s12458_s2 + $0xccc] ss:$16 sps:$4 sm:$0xff]  }
 0x163   :  { %5290 = vmatpush1.bf16.msra.mxu0 %v8757_v6  ;;  %5823 = vmatpush1.bf16.msra.mxu1 %v8760_v7  ;;  %v8841_v6 = vld [vmem:[%s12458_s2 + $0xcc0] ss:$16 sps:$4 sm:$0xff]   ;;  %v8844_v7 = vld [vmem:[%s12458_s2 + $0xcc8] ss:$16 sps:$4 sm:$0xff]  }
 0x164   :  { %5291 = vmatprep.subr.bf16.mxu0 %v8765_v8  ;;  %5824 = vmatprep.subr.bf16.mxu1 %v8768_v9  ;;  %v8849_v8 = vld [vmem:[%s12458_s2 + $0xce4] ss:$16 sps:$4 sm:$0xff]   ;;  %v8852_v9 = vld [vmem:[%s12458_s2 + $0xcec] ss:$16 sps:$4 sm:$0xff]  }
 0x167   :  { %5292 = vmatpush1.bf16.msra.mxu0 %v8763_v10  ;;  %5825 = vmatpush1.bf16.msra.mxu1 %v8766_v11  ;;  %v8847_v10 = vld [vmem:[%s12458_s2 + $0xce0] ss:$16 sps:$4 sm:$0xff]   ;;  %v8850_v11 = vld [vmem:[%s12458_s2 + $0xce8] ss:$16 sps:$4 sm:$0xff]  }
 0x168   :  { %5293 = vmatprep.subr.bf16.mxu0 %v8771_v12  ;;  %5826 = vmatprep.subr.bf16.mxu1 %v8774_v52  ;;  %v8855_v12 = vld [vmem:[%s12458_s2 + $0xd04] ss:$16 sps:$4 sm:$0xff]   ;;  %v8858_v52 = vld [vmem:[%s12458_s2 + $0xd0c] ss:$16 sps:$4 sm:$0xff]  }
 0x16b   :  { %5294 = vmatpush1.bf16.msra.mxu0 %v8769_v15  ;;  %5827 = vmatpush1.bf16.msra.mxu1 %v8772_v16  ;;  %v8853_v15 = vld [vmem:[%s12458_s2 + $0xd00] ss:$16 sps:$4 sm:$0xff]   ;;  %v8856_v16 = vld [vmem:[%s12458_s2 + $0xd08] ss:$16 sps:$4 sm:$0xff]  }
 0x16c   :  { %5295 = vmatprep.subr.bf16.mxu0 %v8777_v17  ;;  %5828 = vmatprep.subr.bf16.mxu1 %v8780_v18  ;;  %v8861_v17 = vld [vmem:[%s12458_s2 + $0xd24] ss:$16 sps:$4 sm:$0xff]   ;;  %v8864_v18 = vld [vmem:[%s12458_s2 + $0xd2c] ss:$16 sps:$4 sm:$0xff]  }
 0x16f   :  { %5296 = vmatpush1.bf16.msra.mxu0 %v8775_v19  ;;  %5829 = vmatpush1.bf16.msra.mxu1 %v8778_v20  ;;  %v8859_v19 = vld [vmem:[%s12458_s2 + $0xd20] ss:$16 sps:$4 sm:$0xff]   ;;  %v8862_v20 = vld [vmem:[%s12458_s2 + $0xd28] ss:$16 sps:$4 sm:$0xff]  }
 0x170   :  { %5297 = vmatprep.subr.bf16.mxu0 %v8783_v22  ;;  %5830 = vmatprep.subr.bf16.mxu1 %v8786_v23  ;;  %v8867_v22 = vld [vmem:[%s12458_s2 + $0xd44] ss:$16 sps:$4 sm:$0xff]   ;;  %v8870_v23 = vld [vmem:[%s12458_s2 + $0xd4c] ss:$16 sps:$4 sm:$0xff]  }
 0x173   :  { %5298 = vmatpush1.bf16.msra.mxu0 %v8781_v24  ;;  %5831 = vmatpush1.bf16.msra.mxu1 %v8784_v13  ;;  %v8865_v24 = vld [vmem:[%s12458_s2 + $0xd40] ss:$16 sps:$4 sm:$0xff]   ;;  %v8868_v13 = vld [vmem:[%s12458_s2 + $0xd48] ss:$16 sps:$4 sm:$0xff]  }
 0x174   :  { %5299 = vmatprep.subr.bf16.mxu0 %v8789_v27  ;;  %5832 = vmatprep.subr.bf16.mxu1 %v8792_v28  ;;  %v8873_v27 = vld [vmem:[%s12458_s2 + $0xd64] ss:$16 sps:$4 sm:$0xff]   ;;  %v8876_v28 = vld [vmem:[%s12458_s2 + $0xd6c] ss:$16 sps:$4 sm:$0xff]  }
 0x177   :  { %5300 = vmatpush1.bf16.msra.mxu0 %v8787_v29  ;;  %5833 = vmatpush1.bf16.msra.mxu1 %v8790_v14  ;;  %v8871_v29 = vld [vmem:[%s12458_s2 + $0xd60] ss:$16 sps:$4 sm:$0xff]   ;;  %v8874_v14 = vld [vmem:[%s12458_s2 + $0xd68] ss:$16 sps:$4 sm:$0xff]  }
 0x178   :  { %5301 = vmatprep.subr.bf16.mxu0 %v8795_v30  ;;  %5834 = vmatprep.subr.bf16.mxu1 %v8798_v31  ;;  %v8879_v30 = vld [vmem:[%s12458_s2 + $0xd84] ss:$16 sps:$4 sm:$0xff]   ;;  %v8882_v31 = vld [vmem:[%s12458_s2 + $0xd8c] ss:$16 sps:$4 sm:$0xff]  }
 0x17b   :  { %5302 = vmatpush1.bf16.msra.mxu0 %v8793_v33  ;;  %5835 = vmatpush1.bf16.msra.mxu1 %v8796_v26  ;;  %v8885_v33 = vld [vmem:[%s12458_s2 + $0xda4] ss:$16 sps:$4 sm:$0xff]   ;;  %v8888_v26 = vld [vmem:[%s12458_s2 + $0xdac] ss:$16 sps:$4 sm:$0xff]  }
 0x17c   :  { %5303 = vmatprep.subr.bf16.mxu0 %v8801_v36  ;;  %5836 = vmatprep.subr.bf16.mxu1 %v8804_v37  ;;  %v8883_v36 = vld [vmem:[%s12458_s2 + $0xda0] ss:$16 sps:$4 sm:$0xff]   ;;  %v8886_v37 = vld [vmem:[%s12458_s2 + $0xda8] ss:$16 sps:$4 sm:$0xff]  }
 0x17f   :  { %5304 = vmatpush1.bf16.msra.mxu0 %v8799_v21  ;;  %5837 = vmatpush1.bf16.msra.mxu1 %v8802_v39  ;;  %v8891_v21 = vld [vmem:[%s12458_s2 + $0xdc4] ss:$16 sps:$4 sm:$0xff]   ;;  %v8894_v39 = vld [vmem:[%s12458_s2 + $0xdcc] ss:$16 sps:$4 sm:$0xff]  }
 0x180   :  { %5314 = vmatprep.subr.bf16.mxu0 %v8807_v40  ;;  %5847 = vmatprep.subr.bf16.mxu1 %v8810_v41  ;;  %v8889_v40 = vld [vmem:[%s12458_s2 + $0xdc0] ss:$16 sps:$4 sm:$0xff]   ;;  %v8892_v41 = vld [vmem:[%s12458_s2 + $0xdc8] ss:$16 sps:$4 sm:$0xff]  }
 0x182   :  { %5306 = vmatmul.mubr.bf16.vlgmr.msra.gmra.mrb[0].mxu0 %v976_v43  ;;  %5839 = vmatmul.mubr.bf16.vlgmr.msra.gmra.mrb[0].mxu1 %v976_v43  ;;  %v8900_v43 = vld [vmem:[%s12458_s2 + $0xdec] ss:$16 sps:$4 sm:$0xff]  }
 0x183   :  { %5315 = vmatpush1.bf16.msra.mxu0 %v8805_v44  ;;  %5848 = vmatpush1.bf16.msra.mxu1 %v8808_v45  ;;  %v8895_v44 = vld [vmem:[%s12458_s2 + $0xde0] ss:$16 sps:$4 sm:$0xff]   ;;  %v8898_v45 = vld [vmem:[%s12458_s2 + $0xde8] ss:$16 sps:$4 sm:$0xff]  }
 0x184   :  { %5316 = vmatprep.subr.bf16.mxu0 %v8813_v46  ;;  %5849 = vmatprep.subr.bf16.mxu1 %v8816_v35  ;;  %v8904_v46 = vld [vmem:[%s12458_s2 + $0xe04] ss:$16 sps:$4 sm:$0xff]   ;;  %v8907_v35 = vld [vmem:[%s12458_s2 + $0xe0c] ss:$16 sps:$4 sm:$0xff]  }
 0x185   :  { %5346 = vmatprep.mubr.bf16.mxu0 %v10857_v47  ;;  %5879 = vmatprep.mubr.bf16.mxu1 %v10857_v47 }
 0x187   :  { %5317 = vmatpush1.bf16.msra.mxu0 %v8811_v48  ;;  %5850 = vmatpush1.bf16.msra.mxu1 %v8814_v50  ;;  %v11043_v48 = vrot.slane %v10826_v38, %v9749_v49  ;;  %v8902_v50 = vld [vmem:[%s12458_s2 + $0xe00] ss:$16 sps:$4 sm:$0xff]   ;;  %v8913_v38 = vld [vmem:[%s12458_s2 + $0xe2c] ss:$16 sps:$4 sm:$0xff]  }
 0x188   :  { %5318 = vmatprep.subr.bf16.mxu0 %v8819_v51  ;;  %5851 = vmatprep.subr.bf16.mxu1 %v8822_v53  ;;  %v8905_v51 = vld [vmem:[%s12458_s2 + $0xe08] ss:$16 sps:$4 sm:$0xff]   ;;  %v8910_v53 = vld [vmem:[%s12458_s2 + $0xe24] ss:$16 sps:$4 sm:$0xff]  }
 0x18b   :  { %5319 = vmatpush1.bf16.msra.mxu0 %v8817_v54  ;;  %5852 = vmatpush1.bf16.msra.mxu1 %v8820_v55  ;;  %v979_v54 = vcombine.high %v10857_v47, %v10857_v47  ;;  %v8908_v55 = vld [vmem:[%s12458_s2 + $0xe20] ss:$16 sps:$4 sm:$0xff]   ;;  %v8916_v47 = vld [vmem:[%s12458_s2 + $0xe44] ss:$16 sps:$4 sm:$0xff]  }
 0x18c   :  { %5320 = vmatprep.subr.bf16.mxu0 %v8825_v56  ;;  %5853 = vmatprep.subr.bf16.mxu1 %v8828_v57  ;;  %v8911_v56 = vld [vmem:[%s12458_s2 + $0xe28] ss:$16 sps:$4 sm:$0xff]   ;;  %v8919_v57 = vld [vmem:[%s12458_s2 + $0xe4c] ss:$16 sps:$4 sm:$0xff]  }
 0x18f   :  { %5321 = vmatpush1.bf16.msra.mxu0 %v8823_v58  ;;  %5854 = vmatpush1.bf16.msra.mxu1 %v8826_v59  ;;  %v8914_v58 = vld [vmem:[%s12458_s2 + $0xe40] ss:$16 sps:$4 sm:$0xff]   ;;  %v8917_v59 = vld [vmem:[%s12458_s2 + $0xe48] ss:$16 sps:$4 sm:$0xff]  }
 0x190   :  { %5322 = vmatprep.subr.bf16.mxu0 %v8831_v60  ;;  %5855 = vmatprep.subr.bf16.mxu1 %v8834_v61  ;;  %v8922_v60 = vld [vmem:[%s12458_s2 + $0xe64] ss:$16 sps:$4 sm:$0xff]   ;;  %v8925_v61 = vld [vmem:[%s12458_s2 + $0xe6c] ss:$16 sps:$4 sm:$0xff]  }
 0x193   :  { %5323 = vmatpush1.bf16.msra.mxu0 %v8829_v62  ;;  %5856 = vmatpush1.bf16.msra.mxu1 %v8832_v63  ;;  %v8920_v62 = vld [vmem:[%s12458_s2 + $0xe60] ss:$16 sps:$4 sm:$0xff]   ;;  %v8923_v63 = vld [vmem:[%s12458_s2 + $0xe68] ss:$16 sps:$4 sm:$0xff]  }
 0x194   :  { %5324 = vmatprep.subr.bf16.mxu0 %v8837_v0  ;;  %5857 = vmatprep.subr.bf16.mxu1 %v8840_v1  ;;  %v8928_v0 = vld [vmem:[%s12458_s2 + $0xe84] ss:$16 sps:$4 sm:$0xff]   ;;  %v8931_v1 = vld [vmem:[%s12458_s2 + $0xe8c] ss:$16 sps:$4 sm:$0xff]  }
 0x197   :  { %5325 = vmatpush1.bf16.msra.mxu0 %v8835_v2  ;;  %5858 = vmatpush1.bf16.msra.mxu1 %v8838_v3  ;;  %v8926_v2 = vld [vmem:[%s12458_s2 + $0xe80] ss:$16 sps:$4 sm:$0xff]   ;;  %v8929_v3 = vld [vmem:[%s12458_s2 + $0xe88] ss:$16 sps:$4 sm:$0xff]  }
 0x198   :  { %5326 = vmatprep.subr.bf16.mxu0 %v8843_v4  ;;  %5859 = vmatprep.subr.bf16.mxu1 %v8846_v5  ;;  %v8934_v4 = vld [vmem:[%s12458_s2 + $0xea4] ss:$16 sps:$4 sm:$0xff]   ;;  %v8937_v5 = vld [vmem:[%s12458_s2 + $0xeac] ss:$16 sps:$4 sm:$0xff]  }
 0x19b   :  { %5327 = vmatpush1.bf16.msra.mxu0 %v8841_v6  ;;  %5860 = vmatpush1.bf16.msra.mxu1 %v8844_v7  ;;  %v8932_v6 = vld [vmem:[%s12458_s2 + $0xea0] ss:$16 sps:$4 sm:$0xff]   ;;  %v8935_v7 = vld [vmem:[%s12458_s2 + $0xea8] ss:$16 sps:$4 sm:$0xff]  }
 0x19c   :  { %5328 = vmatprep.subr.bf16.mxu0 %v8849_v8  ;;  %5861 = vmatprep.subr.bf16.mxu1 %v8852_v9  ;;  %v8940_v8 = vld [vmem:[%s12458_s2 + $0xec4] ss:$16 sps:$4 sm:$0xff]   ;;  %v8943_v9 = vld [vmem:[%s12458_s2 + $0xecc] ss:$16 sps:$4 sm:$0xff]  }
 0x19f   :  { %5329 = vmatpush1.bf16.msra.mxu0 %v8847_v10  ;;  %5862 = vmatpush1.bf16.msra.mxu1 %v8850_v11  ;;  %v8938_v10 = vld [vmem:[%s12458_s2 + $0xec0] ss:$16 sps:$4 sm:$0xff]   ;;  %v8941_v11 = vld [vmem:[%s12458_s2 + $0xec8] ss:$16 sps:$4 sm:$0xff]  }
 0x1a0   :  { %5330 = vmatprep.subr.bf16.mxu0 %v8855_v12  ;;  %5863 = vmatprep.subr.bf16.mxu1 %v8858_v52  ;;  %v8946_v12 = vld [vmem:[%s12458_s2 + $0xee4] ss:$16 sps:$4 sm:$0xff]   ;;  %v8949_v52 = vld [vmem:[%s12458_s2 + $0xeec] ss:$16 sps:$4 sm:$0xff]  }
 0x1a3   :  { %5331 = vmatpush1.bf16.msra.mxu0 %v8853_v15  ;;  %5864 = vmatpush1.bf16.msra.mxu1 %v8856_v16  ;;  %v8944_v15 = vld [vmem:[%s12458_s2 + $0xee0] ss:$16 sps:$4 sm:$0xff]   ;;  %v8947_v16 = vld [vmem:[%s12458_s2 + $0xee8] ss:$16 sps:$4 sm:$0xff]  }
 0x1a4   :  { %5332 = vmatprep.subr.bf16.mxu0 %v8861_v17  ;;  %5865 = vmatprep.subr.bf16.mxu1 %v8864_v18  ;;  %v8952_v17 = vld [vmem:[%s12458_s2 + $0xf04] ss:$16 sps:$4 sm:$0xff]   ;;  %v8955_v18 = vld [vmem:[%s12458_s2 + $0xf0c] ss:$16 sps:$4 sm:$0xff]  }
 0x1a7   :  { %5333 = vmatpush1.bf16.msra.mxu0 %v8859_v19  ;;  %5866 = vmatpush1.bf16.msra.mxu1 %v8862_v20  ;;  %v8950_v19 = vld [vmem:[%s12458_s2 + $0xf00] ss:$16 sps:$4 sm:$0xff]   ;;  %v8953_v20 = vld [vmem:[%s12458_s2 + $0xf08] ss:$16 sps:$4 sm:$0xff]  }
 0x1a8   :  { %5334 = vmatprep.subr.bf16.mxu0 %v8867_v22  ;;  %5867 = vmatprep.subr.bf16.mxu1 %v8870_v23  ;;  %v8958_v22 = vld [vmem:[%s12458_s2 + $0xf24] ss:$16 sps:$4 sm:$0xff]   ;;  %v8961_v23 = vld [vmem:[%s12458_s2 + $0xf2c] ss:$16 sps:$4 sm:$0xff]  }
 0x1ab   :  { %5335 = vmatpush1.bf16.msra.mxu0 %v8865_v24  ;;  %5868 = vmatpush1.bf16.msra.mxu1 %v8868_v13  ;;  %v8956_v24 = vld [vmem:[%s12458_s2 + $0xf20] ss:$16 sps:$4 sm:$0xff]   ;;  %v8959_v13 = vld [vmem:[%s12458_s2 + $0xf28] ss:$16 sps:$4 sm:$0xff]  }
 0x1ac   :  { %5336 = vmatprep.subr.bf16.mxu0 %v8873_v27  ;;  %5869 = vmatprep.subr.bf16.mxu1 %v8876_v28  ;;  %v8964_v27 = vld [vmem:[%s12458_s2 + $0xf44] ss:$16 sps:$4 sm:$0xff]   ;;  %v8967_v28 = vld [vmem:[%s12458_s2 + $0xf4c] ss:$16 sps:$4 sm:$0xff]  }
 0x1af   :  { %5337 = vmatpush1.bf16.msra.mxu0 %v8871_v29  ;;  %5870 = vmatpush1.bf16.msra.mxu1 %v8874_v14  ;;  %v8962_v29 = vld [vmem:[%s12458_s2 + $0xf40] ss:$16 sps:$4 sm:$0xff]   ;;  %v8965_v14 = vld [vmem:[%s12458_s2 + $0xf48] ss:$16 sps:$4 sm:$0xff]  }
 0x1b0   :  { %5338 = vmatprep.subr.bf16.mxu0 %v8879_v30  ;;  %5871 = vmatprep.subr.bf16.mxu1 %v8882_v31  ;;  %v8970_v30 = vld [vmem:[%s12458_s2 + $0xf64] ss:$16 sps:$4 sm:$0xff]   ;;  %v8973_v31 = vld [vmem:[%s12458_s2 + $0xf6c] ss:$16 sps:$4 sm:$0xff]  }
 0x1b3   :  { %5339 = vmatpush1.bf16.msra.mxu0 %v8877_v25  ;;  %5872 = vmatpush1.bf16.msra.mxu1 %v8880_v32  ;;  %v8968_v25 = vld [vmem:[%s12458_s2 + $0xf60] ss:$16 sps:$4 sm:$0xff]   ;;  %v8971_v32 = vld [vmem:[%s12458_s2 + $0xf68] ss:$16 sps:$4 sm:$0xff]  }
 0x1b4   :  { %5340 = vmatprep.subr.bf16.mxu0 %v8885_v33  ;;  %5873 = vmatprep.subr.bf16.mxu1 %v8888_v26  ;;  %v8976_v33 = vld [vmem:[%s12458_s2 + $0xf84] ss:$16 sps:$4 sm:$0xff]   ;;  %v8979_v26 = vld [vmem:[%s12458_s2 + $0xf8c] ss:$16 sps:$4 sm:$0xff]  }
 0x1b7   :  { %5341 = vmatpush1.bf16.msra.mxu0 %v8883_v36  ;;  %5874 = vmatpush1.bf16.msra.mxu1 %v8886_v37  ;;  %v8974_v36 = vld [vmem:[%s12458_s2 + $0xf80] ss:$16 sps:$4 sm:$0xff]   ;;  %v8977_v37 = vld [vmem:[%s12458_s2 + $0xf88] ss:$16 sps:$4 sm:$0xff]  }
 0x1b8   :  { %5342 = vmatprep.subr.bf16.mxu0 %v8891_v21  ;;  %5875 = vmatprep.subr.bf16.mxu1 %v8894_v39  ;;  %v8982_v21 = vld [vmem:[%s12458_s2 + $0xfa4] ss:$16 sps:$4 sm:$0xff]   ;;  %v8985_v39 = vld [vmem:[%s12458_s2 + $0xfac] ss:$16 sps:$4 sm:$0xff]  }
 0x1bb   :  { %5343 = vmatpush1.bf16.msra.mxu0 %v8889_v40  ;;  %5876 = vmatpush1.bf16.msra.mxu1 %v8892_v41  ;;  %v8980_v40 = vld [vmem:[%s12458_s2 + $0xfa0] ss:$16 sps:$4 sm:$0xff]   ;;  %v8983_v41 = vld [vmem:[%s12458_s2 + $0xfa8] ss:$16 sps:$4 sm:$0xff]  }
 0x1bc   :  { %5344 = vmatprep.subr.bf16.mxu0 %v8897_v34  ;;  %5877 = vmatprep.subr.bf16.mxu1 %v8900_v43  ;;  %v8988_v34 = vld [vmem:[%s12458_s2 + $0xfc4] ss:$16 sps:$4 sm:$0xff]   ;;  %v8991_v43 = vld [vmem:[%s12458_s2 + $0xfcc] ss:$16 sps:$4 sm:$0xff]  }
 0x1bf   :  { %5345 = vmatpush1.bf16.msra.mxu0 %v8895_v44  ;;  %5878 = vmatpush1.bf16.msra.mxu1 %v8898_v45  ;;  %v11220_v44 = vld [vmem:[%s12456_s0 + $0x10] sm:$0xff] }
 0x1c0   :  { %5355 = vmatprep.subr.bf16.mxu0 %v8904_v46  ;;  %5888 = vmatprep.subr.bf16.mxu1 %v8907_v35  ;;  %v8986_v45 = vld [vmem:[%s12458_s2 + $0xfc0] ss:$16 sps:$4 sm:$0xff]   ;;  %v8989_v46 = vld [vmem:[%s12458_s2 + $0xfc8] ss:$16 sps:$4 sm:$0xff]   ;;  %v8994_v35 = vld [vmem:[%s12458_s2 + $0xfe4] ss:$16 sps:$4 sm:$0xff]  }
 0x1c2   :  { %5347 = vmatmul.mubr.bf16.vlgmr.msra.gmra.mrb[0].mxu0 %v11043_v48  ;;  %5880 = vmatmul.mubr.bf16.vlgmr.msra.gmra.mrb[0].mxu1 %v11043_v48 }
 0x1c3   :  { %5356 = vmatpush1.bf16.msra.mxu0 %v8902_v50  ;;  %5889 = vmatpush1.bf16.msra.mxu1 %v8905_v51  ;;  %v8997_v50 = vld [vmem:[%s12458_s2 + $0xfec] ss:$16 sps:$4 sm:$0xff]   ;;  %v11236_v51 = vrot.slane %v11220_v44, %v9749_v49 }
 0x1c4   :  { %5357 = vmatprep.subr.bf16.mxu0 %v8910_v53  ;;  %5890 = vmatprep.subr.bf16.mxu1 %v8913_v38  ;;  %v8992_v53 = vld [vmem:[%s12458_s2 + $0xfe0] ss:$16 sps:$4 sm:$0xff]   ;;  %v8995_v38 = vld [vmem:[%s12458_s2 + $0xfe8] ss:$16 sps:$4 sm:$0xff]  }
 0x1c5   :  { %5387 = vmatprep.mubr.bf16.mxu0 %v979_v54  ;;  %5920 = vmatprep.mubr.bf16.mxu1 %v979_v54  ;;  %v9000_v54 = vld [vmem:[%s12458_s2 + $0x1004] ss:$16 sps:$4 sm:$0xff]  }
 0x1c7   :  { %5358 = vmatpush1.bf16.msra.mxu0 %v8908_v55  ;;  %5891 = vmatpush1.bf16.msra.mxu1 %v8911_v56  ;;  %v9003_v55 = vld [vmem:[%s12458_s2 + $0x100c] ss:$16 sps:$4 sm:$0xff]   ;;  %v995_v56 = vcombine.high %v11236_v51, %v11236_v51 }
 0x1c8   :  { %5359 = vmatprep.subr.bf16.mxu0 %v8916_v47  ;;  %5892 = vmatprep.subr.bf16.mxu1 %v8919_v57  ;;  %v977_v47 = vcombine.high %v11043_v48, %v11043_v48  ;;  %v8998_v57 = vld [vmem:[%s12458_s2 + $0x1000] ss:$16 sps:$4 sm:$0xff]   ;;  %v9009_v48 = vld [vmem:[%s12458_s2 + $0x102c] ss:$16 sps:$4 sm:$0xff]  }
 0x1cb   :  { %5360 = vmatpush1.bf16.msra.mxu0 %v8914_v58  ;;  %5893 = vmatpush1.bf16.msra.mxu1 %v8917_v59  ;;  %v9001_v58 = vld [vmem:[%s12458_s2 + $0x1008] ss:$16 sps:$4 sm:$0xff]   ;;  %v9006_v59 = vld [vmem:[%s12458_s2 + $0x1024] ss:$16 sps:$4 sm:$0xff]  }
 0x1cc   :  { %5361 = vmatprep.subr.bf16.mxu0 %v8922_v60  ;;  %5894 = vmatprep.subr.bf16.mxu1 %v8925_v61  ;;  %v11267_v60 = vrot.slane %v995_v56, %v9749_v49  ;;  %v9004_v61 = vld [vmem:[%s12458_s2 + $0x1020] ss:$16 sps:$4 sm:$0xff]  }
 0x1cf   :  { %5362 = vmatpush1.bf16.msra.mxu0 %v8920_v62  ;;  %5895 = vmatpush1.bf16.msra.mxu1 %v8923_v63  ;;  %v9007_v62 = vld [vmem:[%s12458_s2 + $0x1028] ss:$16 sps:$4 sm:$0xff]   ;;  %v9012_v63 = vld [vmem:[%s12458_s2 + $0x1044] ss:$16 sps:$4 sm:$0xff]  }
 0x1d0   :  { %5363 = vmatprep.subr.bf16.mxu0 %v8928_v0  ;;  %5896 = vmatprep.subr.bf16.mxu1 %v8931_v1  ;;  %v9015_v0 = vld [vmem:[%s12458_s2 + $0x104c] ss:$16 sps:$4 sm:$0xff]   ;;  %v9010_v1 = vld [vmem:[%s12458_s2 + $0x1040] ss:$16 sps:$4 sm:$0xff]  }
 0x1d3   :  { %5364 = vmatpush1.bf16.msra.mxu0 %v8926_v2  ;;  %5897 = vmatpush1.bf16.msra.mxu1 %v8929_v3  ;;  %v9013_v2 = vld [vmem:[%s12458_s2 + $0x1048] ss:$16 sps:$4 sm:$0xff]   ;;  %v9018_v3 = vld [vmem:[%s12458_s2 + $0x1064] ss:$16 sps:$4 sm:$0xff]  }
 0x1d4   :  { %5365 = vmatprep.subr.bf16.mxu0 %v8934_v4  ;;  %5898 = vmatprep.subr.bf16.mxu1 %v8937_v5  ;;  %v9021_v4 = vld [vmem:[%s12458_s2 + $0x106c] ss:$16 sps:$4 sm:$0xff]   ;;  %v9016_v5 = vld [vmem:[%s12458_s2 + $0x1060] ss:$16 sps:$4 sm:$0xff]  }
 0x1d7   :  { %5366 = vmatpush1.bf16.msra.mxu0 %v8932_v6  ;;  %5899 = vmatpush1.bf16.msra.mxu1 %v8935_v7  ;;  %v9019_v6 = vld [vmem:[%s12458_s2 + $0x1068] ss:$16 sps:$4 sm:$0xff]   ;;  %v9024_v7 = vld [vmem:[%s12458_s2 + $0x1084] ss:$16 sps:$4 sm:$0xff]  }
 0x1d8   :  { %5367 = vmatprep.subr.bf16.mxu0 %v8940_v8  ;;  %5900 = vmatprep.subr.bf16.mxu1 %v8943_v9  ;;  %v9027_v8 = vld [vmem:[%s12458_s2 + $0x108c] ss:$16 sps:$4 sm:$0xff]   ;;  %v9022_v9 = vld [vmem:[%s12458_s2 + $0x1080] ss:$16 sps:$4 sm:$0xff]  }
 0x1db   :  { %5368 = vmatpush1.bf16.msra.mxu0 %v8938_v10  ;;  %5901 = vmatpush1.bf16.msra.mxu1 %v8941_v11  ;;  %v9025_v10 = vld [vmem:[%s12458_s2 + $0x1088] ss:$16 sps:$4 sm:$0xff]   ;;  %v9030_v11 = vld [vmem:[%s12458_s2 + $0x10a4] ss:$16 sps:$4 sm:$0xff]  }
 0x1dc   :  { %5369 = vmatprep.subr.bf16.mxu0 %v8946_v12  ;;  %5902 = vmatprep.subr.bf16.mxu1 %v8949_v52  ;;  %v9033_v12 = vld [vmem:[%s12458_s2 + $0x10ac] ss:$16 sps:$4 sm:$0xff]   ;;  %v9028_v52 = vld [vmem:[%s12458_s2 + $0x10a0] ss:$16 sps:$4 sm:$0xff]  }
 0x1df   :  { %5370 = vmatpush1.bf16.msra.mxu0 %v8944_v15  ;;  %5903 = vmatpush1.bf16.msra.mxu1 %v8947_v16  ;;  %v9031_v15 = vld [vmem:[%s12458_s2 + $0x10a8] ss:$16 sps:$4 sm:$0xff]   ;;  %v9036_v16 = vld [vmem:[%s12458_s2 + $0x10c4] ss:$16 sps:$4 sm:$0xff]  }
 0x1e0   :  { %5371 = vmatprep.subr.bf16.mxu0 %v8952_v17  ;;  %5904 = vmatprep.subr.bf16.mxu1 %v8955_v18  ;;  %v9039_v17 = vld [vmem:[%s12458_s2 + $0x10cc] ss:$16 sps:$4 sm:$0xff]   ;;  %v9034_v18 = vld [vmem:[%s12458_s2 + $0x10c0] ss:$16 sps:$4 sm:$0xff]  }
 0x1e3   :  { %5372 = vmatpush1.bf16.msra.mxu0 %v8950_v19  ;;  %5905 = vmatpush1.bf16.msra.mxu1 %v8953_v20  ;;  %v9037_v19 = vld [vmem:[%s12458_s2 + $0x10c8] ss:$16 sps:$4 sm:$0xff]   ;;  %v9042_v20 = vld [vmem:[%s12458_s2 + $0x10e4] ss:$16 sps:$4 sm:$0xff]  }
 0x1e4   :  { %5373 = vmatprep.subr.bf16.mxu0 %v8958_v22  ;;  %5906 = vmatprep.subr.bf16.mxu1 %v8961_v23  ;;  %v9045_v22 = vld [vmem:[%s12458_s2 + $0x10ec] ss:$16 sps:$4 sm:$0xff]  }
 0x1e7   :  { %5374 = vmatpush1.bf16.msra.mxu0 %v8956_v24  ;;  %5907 = vmatpush1.bf16.msra.mxu1 %v8959_v13 }
 0x1e8   :  { %5375 = vmatprep.subr.bf16.mxu0 %v8964_v27  ;;  %5908 = vmatprep.subr.bf16.mxu1 %v8967_v28 }
 0x1eb   :  { %5376 = vmatpush1.bf16.msra.mxu0 %v8962_v29  ;;  %5909 = vmatpush1.bf16.msra.mxu1 %v8965_v14 }
 0x1ec   :  { %5377 = vmatprep.subr.bf16.mxu0 %v8970_v30  ;;  %5910 = vmatprep.subr.bf16.mxu1 %v8973_v31 }
 0x1ef   :  { %5378 = vmatpush1.bf16.msra.mxu0 %v8968_v25  ;;  %5911 = vmatpush1.bf16.msra.mxu1 %v8971_v32 }
 0x1f0   :  { %5379 = vmatprep.subr.bf16.mxu0 %v8976_v33  ;;  %5912 = vmatprep.subr.bf16.mxu1 %v8979_v26 }
 0x1f3   :  { %5380 = vmatpush1.bf16.msra.mxu0 %v8974_v36  ;;  %5913 = vmatpush1.bf16.msra.mxu1 %v8977_v37 }
 0x1f4   :  { %5381 = vmatprep.subr.bf16.mxu0 %v8982_v21  ;;  %5914 = vmatprep.subr.bf16.mxu1 %v8985_v39 }
 0x1f7   :  { %5382 = vmatpush1.bf16.msra.mxu0 %v8980_v40  ;;  %5915 = vmatpush1.bf16.msra.mxu1 %v8983_v41 }
 0x1f8   :  { %5383 = vmatprep.subr.bf16.mxu0 %v8988_v34  ;;  %5916 = vmatprep.subr.bf16.mxu1 %v8991_v43 }
 0x1fb   :  { %5384 = vmatpush1.bf16.msra.mxu0 %v8986_v45  ;;  %5917 = vmatpush1.bf16.msra.mxu1 %v8989_v46 }
 0x1fc   :  { %5385 = vmatprep.subr.bf16.mxu0 %v8994_v35  ;;  %5918 = vmatprep.subr.bf16.mxu1 %v8997_v50 }
 0x1ff   :  { %5386 = vmatpush1.bf16.msra.mxu0 %v8992_v53  ;;  %5919 = vmatpush1.bf16.msra.mxu1 %v8995_v38 }
 0x200   :  { %5396 = vmatprep.subr.bf16.mxu0 %v9000_v54  ;;  %5929 = vmatprep.subr.bf16.mxu1 %v9003_v55 }
 0x202   :  { %5388 = vmatmul.mubr.bf16.vlgmr.msra.gmra.mrb[0].mxu0 %v977_v47  ;;  %5921 = vmatmul.mubr.bf16.vlgmr.msra.gmra.mrb[0].mxu1 %v977_v47 }
 0x203   :  { %5397 = vmatpush1.bf16.msra.mxu0 %v8998_v57  ;;  %5930 = vmatpush1.bf16.msra.mxu1 %v9001_v58 }
 0x204   :  { %5398 = vmatprep.subr.bf16.mxu0 %v9006_v59  ;;  %5931 = vmatprep.subr.bf16.mxu1 %v9009_v48 }
 0x205   :  { %5428 = vmatprep.mubr.bf16.mxu0 %v11267_v60  ;;  %5961 = vmatprep.mubr.bf16.mxu1 %v11267_v60 }
 0x207   :  { %5399 = vmatpush1.bf16.msra.mxu0 %v9004_v61  ;;  %5932 = vmatpush1.bf16.msra.mxu1 %v9007_v62 }
 0x208   :  { %5400 = vmatprep.subr.bf16.mxu0 %v9012_v63  ;;  %5933 = vmatprep.subr.bf16.mxu1 %v9015_v0 }
 0x20b   :  { %5401 = vmatpush1.bf16.msra.mxu0 %v9010_v1  ;;  %5934 = vmatpush1.bf16.msra.mxu1 %v9013_v2 }
 0x20c   :  { %5402 = vmatprep.subr.bf16.mxu0 %v9018_v3  ;;  %5935 = vmatprep.subr.bf16.mxu1 %v9021_v4 }
 0x20f   :  { %5403 = vmatpush1.bf16.msra.mxu0 %v9016_v5  ;;  %5936 = vmatpush1.bf16.msra.mxu1 %v9019_v6 }
 0x210   :  { %5404 = vmatprep.subr.bf16.mxu0 %v9024_v7  ;;  %5937 = vmatprep.subr.bf16.mxu1 %v9027_v8 }
 0x213   :  { %5405 = vmatpush1.bf16.msra.mxu0 %v9022_v9  ;;  %5938 = vmatpush1.bf16.msra.mxu1 %v9025_v10 }
 0x214   :  { %5406 = vmatprep.subr.bf16.mxu0 %v9030_v11  ;;  %5939 = vmatprep.subr.bf16.mxu1 %v9033_v12 }
 0x217   :  { %5407 = vmatpush1.bf16.msra.mxu0 %v9028_v52  ;;  %5940 = vmatpush1.bf16.msra.mxu1 %v9031_v15 }
 0x218   :  { %5408 = vmatprep.subr.bf16.mxu0 %v9036_v16  ;;  %5941 = vmatprep.subr.bf16.mxu1 %v9039_v17 }
 0x219   :  { %20 = vsyncpa [#allocation3], 0  ;;  %v9040_v23 = vld [vmem:[%s12458_s2 + $0x10e0] ss:$16 sps:$4 sm:$0xff]   ;;  %v9043_v24 = vld [vmem:[%s12458_s2 + $0x10e8] ss:$16 sps:$4 sm:$0xff]   ;;  %v11453_v62 = vrot.slane %v11236_v51, %v9749_v49  ;;  %v1027_v2 = vcombine.high %v11267_v60, %v11267_v60 }
 0x21a   :  { %v9048_v13 = vld [vmem:[%s12458_s2 + $0x1104] ss:$16 sps:$4 sm:$0xff]   ;;  %v9051_v27 = vld [vmem:[%s12458_s2 + $0x110c] ss:$16 sps:$4 sm:$0xff]   ;;  %v9046_v28 = vld [vmem:[%s12458_s2 + $0x1100] ss:$16 sps:$4 sm:$0xff]  }
 0x21b   :  { %5409 = vmatpush1.bf16.msra.mxu0 %v9034_v18  ;;  %5942 = vmatpush1.bf16.msra.mxu1 %v9037_v19  ;;  %v9049_v29 = vld [vmem:[%s12458_s2 + $0x1108] ss:$16 sps:$4 sm:$0xff]   ;;  %v9054_v14 = vld [vmem:[%s12458_s2 + $0x1124] ss:$16 sps:$4 sm:$0xff]   ;;  %v9057_v30 = vld [vmem:[%s12458_s2 + $0x112c] ss:$16 sps:$4 sm:$0xff]  }
 0x21c   :  { %5410 = vmatprep.subr.bf16.mxu0 %v9042_v20  ;;  %5943 = vmatprep.subr.bf16.mxu1 %v9045_v22  ;;  %v9052_v31 = vld [vmem:[%s12458_s2 + $0x1120] ss:$16 sps:$4 sm:$0xff]   ;;  %v9055_v25 = vld [vmem:[%s12458_s2 + $0x1128] ss:$16 sps:$4 sm:$0xff]   ;;  %v9060_v32 = vld [vmem:[%s12458_s2 + $0x1144] ss:$16 sps:$4 sm:$0xff]  }
 0x21d   :  { %v9063_v33 = vld [vmem:[%s12458_s2 + $0x114c] ss:$16 sps:$4 sm:$0xff]   ;;  %v9058_v26 = vld [vmem:[%s12458_s2 + $0x1140] ss:$16 sps:$4 sm:$0xff]   ;;  %v9061_v36 = vld [vmem:[%s12458_s2 + $0x1148] ss:$16 sps:$4 sm:$0xff]  }
 0x21e   :  { %v9066_v37 = vld [vmem:[%s12458_s2 + $0x1164] ss:$16 sps:$4 sm:$0xff]   ;;  %v9069_v21 = vld [vmem:[%s12458_s2 + $0x116c] ss:$16 sps:$4 sm:$0xff]   ;;  %v9064_v39 = vld [vmem:[%s12458_s2 + $0x1160] ss:$16 sps:$4 sm:$0xff]  }
 0x21f   :  { %5411 = vmatpush1.bf16.msra.mxu0 %v9040_v23  ;;  %5944 = vmatpush1.bf16.msra.mxu1 %v9043_v24  ;;  %v9067_v40 = vld [vmem:[%s12458_s2 + $0x1168] ss:$16 sps:$4 sm:$0xff]   ;;  %v9072_v41 = vld [vmem:[%s12458_s2 + $0x1184] ss:$16 sps:$4 sm:$0xff]   ;;  %v9075_v34 = vld [vmem:[%s12458_s2 + $0x118c] ss:$16 sps:$4 sm:$0xff]  }
 0x220   :  { %5412 = vmatprep.subr.bf16.mxu0 %v9048_v13  ;;  %5945 = vmatprep.subr.bf16.mxu1 %v9051_v27  ;;  %v9070_v43 = vld [vmem:[%s12458_s2 + $0x1180] ss:$16 sps:$4 sm:$0xff]   ;;  %v9073_v45 = vld [vmem:[%s12458_s2 + $0x1188] ss:$16 sps:$4 sm:$0xff]   ;;  %v9078_v46 = vld [vmem:[%s12458_s2 + $0x11a4] ss:$16 sps:$4 sm:$0xff]  }
 0x221   :  { %v9081_v35 = vld [vmem:[%s12458_s2 + $0x11ac] ss:$16 sps:$4 sm:$0xff]   ;;  %v9076_v50 = vld [vmem:[%s12458_s2 + $0x11a0] ss:$16 sps:$4 sm:$0xff]   ;;  %v9079_v53 = vld [vmem:[%s12458_s2 + $0x11a8] ss:$16 sps:$4 sm:$0xff]  }
 0x222   :  { %v9084_v38 = vld [vmem:[%s12458_s2 + $0x11c4] ss:$16 sps:$4 sm:$0xff]   ;;  %v9087_v54 = vld [vmem:[%s12458_s2 + $0x11cc] ss:$16 sps:$4 sm:$0xff]   ;;  %v9082_v55 = vld [vmem:[%s12458_s2 + $0x11c0] ss:$16 sps:$4 sm:$0xff]  }
 0x223   :  { %5413 = vmatpush1.bf16.msra.mxu0 %v9046_v28  ;;  %5946 = vmatpush1.bf16.msra.mxu1 %v9049_v29  ;;  %v9085_v56 = vld [vmem:[%s12458_s2 + $0x11c8] ss:$16 sps:$4 sm:$0xff]   ;;  %v9090_v47 = vld [vmem:[%s12458_s2 + $0x11e4] ss:$16 sps:$4 sm:$0xff]   ;;  %v9093_v57 = vld [vmem:[%s12458_s2 + $0x11ec] ss:$16 sps:$4 sm:$0xff]  }
 0x224   :  { %5414 = vmatprep.subr.bf16.mxu0 %v9054_v14  ;;  %5947 = vmatprep.subr.bf16.mxu1 %v9057_v30  ;;  %v9088_v58 = vld [vmem:[%s12458_s2 + $0x11e0] ss:$16 sps:$4 sm:$0xff]   ;;  %v9091_v59 = vld [vmem:[%s12458_s2 + $0x11e8] ss:$16 sps:$4 sm:$0xff]   ;;  %v9096_v48 = vld [vmem:[%s12458_s2 + $0x1204] ss:$16 sps:$4 sm:$0xff]  }
 0x225   :  { %v9099_v61 = vld [vmem:[%s12458_s2 + $0x120c] ss:$16 sps:$4 sm:$0xff]   ;;  %v9094_v63 = vld [vmem:[%s12458_s2 + $0x1200] ss:$16 sps:$4 sm:$0xff]   ;;  %v9097_v0 = vld [vmem:[%s12458_s2 + $0x1208] ss:$16 sps:$4 sm:$0xff]  }
 0x226   :  { %v9102_v1 = vld [vmem:[%s12458_s2 + $0x1224] ss:$16 sps:$4 sm:$0xff]   ;;  %v9105_v51 = vld [vmem:[%s12458_s2 + $0x122c] ss:$16 sps:$4 sm:$0xff]   ;;  %v9100_v3 = vld [vmem:[%s12458_s2 + $0x1220] ss:$16 sps:$4 sm:$0xff]  }
 0x227   :  { %5415 = vmatpush1.bf16.msra.mxu0 %v9052_v31  ;;  %5948 = vmatpush1.bf16.msra.mxu1 %v9055_v25  ;;  %v9103_v4 = vld [vmem:[%s12458_s2 + $0x1228] ss:$16 sps:$4 sm:$0xff]   ;;  %v9108_v60 = vld [vmem:[%s12458_s2 + $0x1244] ss:$16 sps:$4 sm:$0xff]   ;;  %v9111_v5 = vld [vmem:[%s12458_s2 + $0x124c] ss:$16 sps:$4 sm:$0xff]  }
 0x228   :  { %5416 = vmatprep.subr.bf16.mxu0 %v9060_v32  ;;  %5949 = vmatprep.subr.bf16.mxu1 %v9063_v33  ;;  %v9106_v6 = vld [vmem:[%s12458_s2 + $0x1240] ss:$16 sps:$4 sm:$0xff]   ;;  %v9109_v7 = vld [vmem:[%s12458_s2 + $0x1248] ss:$16 sps:$4 sm:$0xff]   ;;  %v9114_v8 = vld [vmem:[%s12458_s2 + $0x1264] ss:$16 sps:$4 sm:$0xff]  }
 0x229   :  { %v9117_v9 = vld [vmem:[%s12458_s2 + $0x126c] ss:$16 sps:$4 sm:$0xff]   ;;  %v9112_v10 = vld [vmem:[%s12458_s2 + $0x1260] ss:$16 sps:$4 sm:$0xff]   ;;  %v9115_v11 = vld [vmem:[%s12458_s2 + $0x1268] ss:$16 sps:$4 sm:$0xff]  }
 0x22a   :  { %v9120_v12 = vld [vmem:[%s12458_s2 + $0x1284] ss:$16 sps:$4 sm:$0xff]   ;;  %v9123_v52 = vld [vmem:[%s12458_s2 + $0x128c] ss:$16 sps:$4 sm:$0xff]   ;;  %v9118_v15 = vld [vmem:[%s12458_s2 + $0x1280] ss:$16 sps:$4 sm:$0xff]  }
 0x22b   :  { %5417 = vmatpush1.bf16.msra.mxu0 %v9058_v26  ;;  %5950 = vmatpush1.bf16.msra.mxu1 %v9061_v36  ;;  %v9121_v16 = vld [vmem:[%s12458_s2 + $0x1288] ss:$16 sps:$4 sm:$0xff]   ;;  %v9126_v17 = vld [vmem:[%s12458_s2 + $0x12a4] ss:$16 sps:$4 sm:$0xff]   ;;  %v9129_v18 = vld [vmem:[%s12458_s2 + $0x12ac] ss:$16 sps:$4 sm:$0xff]  }
 0x22c   :  { %5418 = vmatprep.subr.bf16.mxu0 %v9066_v37  ;;  %5951 = vmatprep.subr.bf16.mxu1 %v9069_v21  ;;  %v9124_v19 = vld [vmem:[%s12458_s2 + $0x12a0] ss:$16 sps:$4 sm:$0xff]   ;;  %v9127_v20 = vld [vmem:[%s12458_s2 + $0x12a8] ss:$16 sps:$4 sm:$0xff]   ;;  %v9132_v22 = vld [vmem:[%s12458_s2 + $0x12c4] ss:$16 sps:$4 sm:$0xff]  }
 0x22d   :  { %v9135_v23 = vld [vmem:[%s12458_s2 + $0x12cc] ss:$16 sps:$4 sm:$0xff]   ;;  %v9130_v24 = vld [vmem:[%s12458_s2 + $0x12c0] ss:$16 sps:$4 sm:$0xff]   ;;  %v9133_v13 = vld [vmem:[%s12458_s2 + $0x12c8] ss:$16 sps:$4 sm:$0xff]  }
 0x22e   :  { %v9138_v27 = vld [vmem:[%s12458_s2 + $0x12e4] ss:$16 sps:$4 sm:$0xff]   ;;  %v9141_v28 = vld [vmem:[%s12458_s2 + $0x12ec] ss:$16 sps:$4 sm:$0xff]   ;;  %v9136_v29 = vld [vmem:[%s12458_s2 + $0x12e0] ss:$16 sps:$4 sm:$0xff]  }
 0x22f   :  { %5419 = vmatpush1.bf16.msra.mxu0 %v9064_v39  ;;  %5952 = vmatpush1.bf16.msra.mxu1 %v9067_v40  ;;  %v9139_v14 = vld [vmem:[%s12458_s2 + $0x12e8] ss:$16 sps:$4 sm:$0xff]   ;;  %v9144_v30 = vld [vmem:[%s12458_s2 + $0x1304] ss:$16 sps:$4 sm:$0xff]   ;;  %v9147_v31 = vld [vmem:[%s12458_s2 + $0x130c] ss:$16 sps:$4 sm:$0xff]  }
 0x230   :  { %5420 = vmatprep.subr.bf16.mxu0 %v9072_v41  ;;  %5953 = vmatprep.subr.bf16.mxu1 %v9075_v34  ;;  %v9142_v25 = vld [vmem:[%s12458_s2 + $0x1300] ss:$16 sps:$4 sm:$0xff]   ;;  %v9145_v32 = vld [vmem:[%s12458_s2 + $0x1308] ss:$16 sps:$4 sm:$0xff]   ;;  %v9150_v33 = vld [vmem:[%s12458_s2 + $0x1324] ss:$16 sps:$4 sm:$0xff]  }
 0x231   :  { %v9153_v26 = vld [vmem:[%s12458_s2 + $0x132c] ss:$16 sps:$4 sm:$0xff]   ;;  %v9148_v36 = vld [vmem:[%s12458_s2 + $0x1320] ss:$16 sps:$4 sm:$0xff]   ;;  %v9151_v37 = vld [vmem:[%s12458_s2 + $0x1328] ss:$16 sps:$4 sm:$0xff]  }
 0x232   :  { %v9156_v21 = vld [vmem:[%s12458_s2 + $0x1344] ss:$16 sps:$4 sm:$0xff]   ;;  %v9159_v39 = vld [vmem:[%s12458_s2 + $0x134c] ss:$16 sps:$4 sm:$0xff]   ;;  %v9154_v40 = vld [vmem:[%s12458_s2 + $0x1340] ss:$16 sps:$4 sm:$0xff]  }
 0x233   :  { %5421 = vmatpush1.bf16.msra.mxu0 %v9070_v43  ;;  %5954 = vmatpush1.bf16.msra.mxu1 %v9073_v45  ;;  %v9157_v41 = vld [vmem:[%s12458_s2 + $0x1348] ss:$16 sps:$4 sm:$0xff]   ;;  %v9162_v34 = vld [vmem:[%s12458_s2 + $0x1364] ss:$16 sps:$4 sm:$0xff]   ;;  %v9165_v43 = vld [vmem:[%s12458_s2 + $0x136c] ss:$16 sps:$4 sm:$0xff]  }
 0x234   :  { %5422 = vmatprep.subr.bf16.mxu0 %v9078_v46  ;;  %5955 = vmatprep.subr.bf16.mxu1 %v9081_v35  ;;  %v9160_v45 = vld [vmem:[%s12458_s2 + $0x1360] ss:$16 sps:$4 sm:$0xff]   ;;  %v9163_v46 = vld [vmem:[%s12458_s2 + $0x1368] ss:$16 sps:$4 sm:$0xff]   ;;  %v9168_v35 = vld [vmem:[%s12458_s2 + $0x1384] ss:$16 sps:$4 sm:$0xff]  }
 0x235   :  { %vm9532_vm0 = vmmov 0   ;;  %vm7040_vm1 = vcmask 164864  }
 0x237   :  { %5423 = vmatpush1.bf16.msra.mxu0 %v9076_v50  ;;  %5956 = vmatpush1.bf16.msra.mxu1 %v9079_v53  ;;  %v9171_v50 = vld [vmem:[%s12458_s2 + $0x138c] ss:$16 sps:$4 sm:$0xff]   ;;  %v9166_v53 = vld [vmem:[%s12458_s2 + $0x1380] ss:$16 sps:$4 sm:$0xff]  }
 0x238   :  { %5424 = vmatprep.subr.bf16.mxu0 %v9084_v38  ;;  %5957 = vmatprep.subr.bf16.mxu1 %v9087_v54  ;;  %v9169_v38 = vld [vmem:[%s12458_s2 + $0x1388] ss:$16 sps:$4 sm:$0xff]   ;;  %v9174_v54 = vld [vmem:[%s12458_s2 + $0x13a4] ss:$16 sps:$4 sm:$0xff]  }
 0x23b   :  { %5425 = vmatpush1.bf16.msra.mxu0 %v9082_v55  ;;  %5958 = vmatpush1.bf16.msra.mxu1 %v9085_v56  ;;  %v9177_v55 = vld [vmem:[%s12458_s2 + $0x13ac] ss:$16 sps:$4 sm:$0xff]   ;;  %v9172_v56 = vld [vmem:[%s12458_s2 + $0x13a0] ss:$16 sps:$4 sm:$0xff]  }
 0x23c   :  { %5426 = vmatprep.subr.bf16.mxu0 %v9090_v47  ;;  %5959 = vmatprep.subr.bf16.mxu1 %v9093_v57  ;;  %v9175_v47 = vld [vmem:[%s12458_s2 + $0x13a8] ss:$16 sps:$4 sm:$0xff]   ;;  %v9180_v57 = vld [vmem:[%s12458_s2 + $0x13c4] ss:$16 sps:$4 sm:$0xff]  }
 0x23f   :  { %5427 = vmatpush1.bf16.msra.mxu0 %v9088_v58  ;;  %5960 = vmatpush1.bf16.msra.mxu1 %v9091_v59  ;;  %v9183_v58 = vld [vmem:[%s12458_s2 + $0x13cc] ss:$16 sps:$4 sm:$0xff]   ;;  %v980_v59 = vcombine.high %v11220_v44, %v11220_v44 }
 0x240   :  { %5437 = vmatprep.subr.bf16.mxu0 %v9096_v48  ;;  %5970 = vmatprep.subr.bf16.mxu1 %v9099_v61  ;;  %v9178_v48 = vld [vmem:[%s12458_s2 + $0x13c0] ss:$16 sps:$4 sm:$0xff]   ;;  %v9181_v61 = vld [vmem:[%s12458_s2 + $0x13c8] ss:$16 sps:$4 sm:$0xff]   ;;  %v9189_v44 = vld [vmem:[%s12458_s2 + $0x13ec] ss:$16 sps:$4 sm:$0xff]  }
 0x242   :  { %5429 = vmatmul.mubr.bf16.vlgmr.msra.gmra.mrb[0].mxu0 %v11453_v62  ;;  %5962 = vmatmul.mubr.bf16.vlgmr.msra.gmra.mrb[0].mxu1 %v11453_v62 }
 0x243   :  { %5438 = vmatpush1.bf16.msra.mxu0 %v9094_v63  ;;  %5971 = vmatpush1.bf16.msra.mxu1 %v9097_v0  ;;  %v9186_v63 = vld [vmem:[%s12458_s2 + $0x13e4] ss:$16 sps:$4 sm:$0xff]   ;;  %v11642_v0 = vrot.slane %v980_v59, %v9749_v49  ;;  %v9265_v59 = vld [vmem:[%s12458_s2 + $0x1588] ss:$16 sps:$4 sm:$0xff]  }
 0x244   :  { %5439 = vmatprep.subr.bf16.mxu0 %v9102_v1  ;;  %5972 = vmatprep.subr.bf16.mxu1 %v9105_v51  ;;  %v9184_v1 = vld [vmem:[%s12458_s2 + $0x13e0] ss:$16 sps:$4 sm:$0xff]   ;;  %v9187_v51 = vld [vmem:[%s12458_s2 + $0x13e8] ss:$16 sps:$4 sm:$0xff]  }
 0x245   :  { %5469 = vmatprep.mubr.bf16.mxu0 %v1027_v2  ;;  %6002 = vmatprep.mubr.bf16.mxu1 %v1027_v2  ;;  %v9192_v2 = vld [vmem:[%s12458_s2 + $0x1404] ss:$16 sps:$4 sm:$0xff]  }
 0x247   :  { %5440 = vmatpush1.bf16.msra.mxu0 %v9100_v3  ;;  %5973 = vmatpush1.bf16.msra.mxu1 %v9103_v4  ;;  %v9195_v3 = vld [vmem:[%s12458_s2 + $0x140c] ss:$16 sps:$4 sm:$0xff]   ;;  %v996_v4 = vcombine.high %v11642_v0, %v11642_v0 }
 0x248   :  { %5441 = vmatprep.subr.bf16.mxu0 %v9108_v60  ;;  %5974 = vmatprep.subr.bf16.mxu1 %v9111_v5  ;;  %v1025_v60 = vcombine.high %v11453_v62, %v11453_v62  ;;  %v9190_v5 = vld [vmem:[%s12458_s2 + $0x1400] ss:$16 sps:$4 sm:$0xff]   ;;  %v9201_v62 = vld [vmem:[%s12458_s2 + $0x142c] ss:$16 sps:$4 sm:$0xff]  }
 0x24b   :  { %5442 = vmatpush1.bf16.msra.mxu0 %v9106_v6  ;;  %5975 = vmatpush1.bf16.msra.mxu1 %v9109_v7  ;;  %v9193_v6 = vld [vmem:[%s12458_s2 + $0x1408] ss:$16 sps:$4 sm:$0xff]   ;;  %v9198_v7 = vld [vmem:[%s12458_s2 + $0x1424] ss:$16 sps:$4 sm:$0xff]  }
 0x24c   :  { %5443 = vmatprep.subr.bf16.mxu0 %v9114_v8  ;;  %5976 = vmatprep.subr.bf16.mxu1 %v9117_v9  ;;  %v11673_v8 = vrot.slane %v996_v4, %v9749_v49  ;;  %v9196_v9 = vld [vmem:[%s12458_s2 + $0x1420] ss:$16 sps:$4 sm:$0xff]   ;;  %v9282_v4 = vld [vmem:[%s12458_s2 + $0x15e4] ss:$16 sps:$4 sm:$0xff]  }
 0x24f   :  { %5444 = vmatpush1.bf16.msra.mxu0 %v9112_v10  ;;  %5977 = vmatpush1.bf16.msra.mxu1 %v9115_v11  ;;  %v9199_v10 = vld [vmem:[%s12458_s2 + $0x1428] ss:$16 sps:$4 sm:$0xff]   ;;  %v9204_v11 = vld [vmem:[%s12458_s2 + $0x1444] ss:$16 sps:$4 sm:$0xff]  }
 0x250   :  { %5445 = vmatprep.subr.bf16.mxu0 %v9120_v12  ;;  %5978 = vmatprep.subr.bf16.mxu1 %v9123_v52  ;;  %v9207_v12 = vld [vmem:[%s12458_s2 + $0x144c] ss:$16 sps:$4 sm:$0xff]   ;;  %v9202_v52 = vld [vmem:[%s12458_s2 + $0x1440] ss:$16 sps:$4 sm:$0xff]  }
 0x253   :  { %5446 = vmatpush1.bf16.msra.mxu0 %v9118_v15  ;;  %5979 = vmatpush1.bf16.msra.mxu1 %v9121_v16  ;;  %v9205_v15 = vld [vmem:[%s12458_s2 + $0x1448] ss:$16 sps:$4 sm:$0xff]   ;;  %v9210_v16 = vld [vmem:[%s12458_s2 + $0x1464] ss:$16 sps:$4 sm:$0xff]  }
 0x254   :  { %5447 = vmatprep.subr.bf16.mxu0 %v9126_v17  ;;  %5980 = vmatprep.subr.bf16.mxu1 %v9129_v18  ;;  %v9213_v17 = vld [vmem:[%s12458_s2 + $0x146c] ss:$16 sps:$4 sm:$0xff]   ;;  %v9208_v18 = vld [vmem:[%s12458_s2 + $0x1460] ss:$16 sps:$4 sm:$0xff]  }
 0x257   :  { %5448 = vmatpush1.bf16.msra.mxu0 %v9124_v19  ;;  %5981 = vmatpush1.bf16.msra.mxu1 %v9127_v20  ;;  %v9211_v19 = vld [vmem:[%s12458_s2 + $0x1468] ss:$16 sps:$4 sm:$0xff]   ;;  %v9216_v20 = vld [vmem:[%s12458_s2 + $0x1484] ss:$16 sps:$4 sm:$0xff]  }
 0x258   :  { %5449 = vmatprep.subr.bf16.mxu0 %v9132_v22  ;;  %5982 = vmatprep.subr.bf16.mxu1 %v9135_v23  ;;  %v9219_v22 = vld [vmem:[%s12458_s2 + $0x148c] ss:$16 sps:$4 sm:$0xff]   ;;  %v9214_v23 = vld [vmem:[%s12458_s2 + $0x1480] ss:$16 sps:$4 sm:$0xff]  }
 0x25b   :  { %5450 = vmatpush1.bf16.msra.mxu0 %v9130_v24  ;;  %5983 = vmatpush1.bf16.msra.mxu1 %v9133_v13  ;;  %v9217_v24 = vld [vmem:[%s12458_s2 + $0x1488] ss:$16 sps:$4 sm:$0xff]   ;;  %v9222_v13 = vld [vmem:[%s12458_s2 + $0x14a4] ss:$16 sps:$4 sm:$0xff]  }
 0x25c   :  { %5451 = vmatprep.subr.bf16.mxu0 %v9138_v27  ;;  %5984 = vmatprep.subr.bf16.mxu1 %v9141_v28  ;;  %v9225_v27 = vld [vmem:[%s12458_s2 + $0x14ac] ss:$16 sps:$4 sm:$0xff]   ;;  %v9220_v28 = vld [vmem:[%s12458_s2 + $0x14a0] ss:$16 sps:$4 sm:$0xff]  }
 0x25f   :  { %5452 = vmatpush1.bf16.msra.mxu0 %v9136_v29  ;;  %5985 = vmatpush1.bf16.msra.mxu1 %v9139_v14  ;;  %v9223_v29 = vld [vmem:[%s12458_s2 + $0x14a8] ss:$16 sps:$4 sm:$0xff]   ;;  %v9228_v14 = vld [vmem:[%s12458_s2 + $0x14c4] ss:$16 sps:$4 sm:$0xff]  }
 0x260   :  { %5453 = vmatprep.subr.bf16.mxu0 %v9144_v30  ;;  %5986 = vmatprep.subr.bf16.mxu1 %v9147_v31  ;;  %v9231_v30 = vld [vmem:[%s12458_s2 + $0x14cc] ss:$16 sps:$4 sm:$0xff]   ;;  %v9226_v31 = vld [vmem:[%s12458_s2 + $0x14c0] ss:$16 sps:$4 sm:$0xff]  }
 0x263   :  { %5454 = vmatpush1.bf16.msra.mxu0 %v9142_v25  ;;  %5987 = vmatpush1.bf16.msra.mxu1 %v9145_v32  ;;  %v9229_v25 = vld [vmem:[%s12458_s2 + $0x14c8] ss:$16 sps:$4 sm:$0xff]   ;;  %v9234_v32 = vld [vmem:[%s12458_s2 + $0x14e4] ss:$16 sps:$4 sm:$0xff]  }
 0x264   :  { %5455 = vmatprep.subr.bf16.mxu0 %v9150_v33  ;;  %5988 = vmatprep.subr.bf16.mxu1 %v9153_v26  ;;  %v9237_v33 = vld [vmem:[%s12458_s2 + $0x14ec] ss:$16 sps:$4 sm:$0xff]   ;;  %v9232_v26 = vld [vmem:[%s12458_s2 + $0x14e0] ss:$16 sps:$4 sm:$0xff]  }
 0x267   :  { %5456 = vmatpush1.bf16.msra.mxu0 %v9148_v36  ;;  %5989 = vmatpush1.bf16.msra.mxu1 %v9151_v37  ;;  %v9235_v36 = vld [vmem:[%s12458_s2 + $0x14e8] ss:$16 sps:$4 sm:$0xff]   ;;  %v9240_v37 = vld [vmem:[%s12458_s2 + $0x1504] ss:$16 sps:$4 sm:$0xff]  }
 0x268   :  { %5457 = vmatprep.subr.bf16.mxu0 %v9156_v21  ;;  %5990 = vmatprep.subr.bf16.mxu1 %v9159_v39  ;;  %v9243_v21 = vld [vmem:[%s12458_s2 + $0x150c] ss:$16 sps:$4 sm:$0xff]   ;;  %v9238_v39 = vld [vmem:[%s12458_s2 + $0x1500] ss:$16 sps:$4 sm:$0xff]  }
 0x26b   :  { %5458 = vmatpush1.bf16.msra.mxu0 %v9154_v40  ;;  %5991 = vmatpush1.bf16.msra.mxu1 %v9157_v41  ;;  %v9241_v40 = vld [vmem:[%s12458_s2 + $0x1508] ss:$16 sps:$4 sm:$0xff]   ;;  %v9246_v41 = vld [vmem:[%s12458_s2 + $0x1524] ss:$16 sps:$4 sm:$0xff]  }
 0x26c   :  { %5459 = vmatprep.subr.bf16.mxu0 %v9162_v34  ;;  %5992 = vmatprep.subr.bf16.mxu1 %v9165_v43  ;;  %v9249_v34 = vld [vmem:[%s12458_s2 + $0x152c] ss:$16 sps:$4 sm:$0xff]   ;;  %v9244_v43 = vld [vmem:[%s12458_s2 + $0x1520] ss:$16 sps:$4 sm:$0xff]  }
 0x26f   :  { %5460 = vmatpush1.bf16.msra.mxu0 %v9160_v45  ;;  %5993 = vmatpush1.bf16.msra.mxu1 %v9163_v46  ;;  %v9247_v45 = vld [vmem:[%s12458_s2 + $0x1528] ss:$16 sps:$4 sm:$0xff]   ;;  %v9252_v46 = vld [vmem:[%s12458_s2 + $0x1544] ss:$16 sps:$4 sm:$0xff]  }
 0x270   :  { %5461 = vmatprep.subr.bf16.mxu0 %v9168_v35  ;;  %5994 = vmatprep.subr.bf16.mxu1 %v9171_v50  ;;  %v9255_v35 = vld [vmem:[%s12458_s2 + $0x154c] ss:$16 sps:$4 sm:$0xff]   ;;  %v9250_v50 = vld [vmem:[%s12458_s2 + $0x1540] ss:$16 sps:$4 sm:$0xff]  }
 0x273   :  { %5462 = vmatpush1.bf16.msra.mxu0 %v9166_v53  ;;  %5995 = vmatpush1.bf16.msra.mxu1 %v9169_v38  ;;  %v9253_v53 = vld [vmem:[%s12458_s2 + $0x1548] ss:$16 sps:$4 sm:$0xff]   ;;  %v9258_v38 = vld [vmem:[%s12458_s2 + $0x1564] ss:$16 sps:$4 sm:$0xff]  }
 0x274   :  { %5463 = vmatprep.subr.bf16.mxu0 %v9174_v54  ;;  %5996 = vmatprep.subr.bf16.mxu1 %v9177_v55  ;;  %v9261_v54 = vld [vmem:[%s12458_s2 + $0x156c] ss:$16 sps:$4 sm:$0xff]   ;;  %v9256_v55 = vld [vmem:[%s12458_s2 + $0x1560] ss:$16 sps:$4 sm:$0xff]  }
 0x277   :  { %5464 = vmatpush1.bf16.msra.mxu0 %v9172_v56  ;;  %5997 = vmatpush1.bf16.msra.mxu1 %v9175_v47  ;;  %v9259_v56 = vld [vmem:[%s12458_s2 + $0x1568] ss:$16 sps:$4 sm:$0xff]   ;;  %v9264_v47 = vld [vmem:[%s12458_s2 + $0x1584] ss:$16 sps:$4 sm:$0xff]  }
 0x278   :  { %5465 = vmatprep.subr.bf16.mxu0 %v9180_v57  ;;  %5998 = vmatprep.subr.bf16.mxu1 %v9183_v58  ;;  %v9267_v57 = vld [vmem:[%s12458_s2 + $0x158c] ss:$16 sps:$4 sm:$0xff]   ;;  %v9262_v58 = vld [vmem:[%s12458_s2 + $0x1580] ss:$16 sps:$4 sm:$0xff]  }
 0x27b   :  { %5466 = vmatpush1.bf16.msra.mxu0 %v9178_v48  ;;  %5999 = vmatpush1.bf16.msra.mxu1 %v9181_v61  ;;  %v9270_v48 = vld [vmem:[%s12458_s2 + $0x15a4] ss:$16 sps:$4 sm:$0xff]   ;;  %v9273_v61 = vld [vmem:[%s12458_s2 + $0x15ac] ss:$16 sps:$4 sm:$0xff]  }
 0x27c   :  { %5467 = vmatprep.subr.bf16.mxu0 %v9186_v63  ;;  %6000 = vmatprep.subr.bf16.mxu1 %v9189_v44  ;;  %v9268_v63 = vld [vmem:[%s12458_s2 + $0x15a0] ss:$16 sps:$4 sm:$0xff]   ;;  %v9271_v44 = vld [vmem:[%s12458_s2 + $0x15a8] ss:$16 sps:$4 sm:$0xff]  }
 0x27f   :  { %5468 = vmatpush1.bf16.msra.mxu0 %v9184_v1  ;;  %6001 = vmatpush1.bf16.msra.mxu1 %v9187_v51  ;;  %v9276_v1 = vld [vmem:[%s12458_s2 + $0x15c4] ss:$16 sps:$4 sm:$0xff]   ;;  %v9279_v51 = vld [vmem:[%s12458_s2 + $0x15cc] ss:$16 sps:$4 sm:$0xff]  }
 0x280   :  { %5478 = vmatprep.subr.bf16.mxu0 %v9192_v2  ;;  %6011 = vmatprep.subr.bf16.mxu1 %v9195_v3  ;;  %v9274_v2 = vld [vmem:[%s12458_s2 + $0x15c0] ss:$16 sps:$4 sm:$0xff]   ;;  %v9277_v3 = vld [vmem:[%s12458_s2 + $0x15c8] ss:$16 sps:$4 sm:$0xff]  }
 0x282   :  { %5470 = vmatmul.mubr.bf16.vlgmr.msra.gmra.mrb[0].mxu0 %v1025_v60  ;;  %6003 = vmatmul.mubr.bf16.vlgmr.msra.gmra.mrb[0].mxu1 %v1025_v60  ;;  %v9285_v60 = vld [vmem:[%s12458_s2 + $0x15ec] ss:$16 sps:$4 sm:$0xff]  }
 0x283   :  { %5479 = vmatpush1.bf16.msra.mxu0 %v9190_v5  ;;  %6012 = vmatpush1.bf16.msra.mxu1 %v9193_v6  ;;  %v9280_v5 = vld [vmem:[%s12458_s2 + $0x15e0] ss:$16 sps:$4 sm:$0xff]   ;;  %v9283_v6 = vld [vmem:[%s12458_s2 + $0x15e8] ss:$16 sps:$4 sm:$0xff]  }
 0x284   :  { %5480 = vmatprep.subr.bf16.mxu0 %v9198_v7  ;;  %6013 = vmatprep.subr.bf16.mxu1 %v9201_v62  ;;  %v9289_v7 = vld [vmem:[%s12458_s2 + $0x1604] ss:$16 sps:$4 sm:$0xff]   ;;  %v9292_v62 = vld [vmem:[%s12458_s2 + $0x160c] ss:$16 sps:$4 sm:$0xff]  }
 0x285   :  { %5510 = vmatprep.mubr.bf16.mxu0 %v11673_v8  ;;  %6043 = vmatprep.mubr.bf16.mxu1 %v11673_v8 }
 0x287   :  { %5481 = vmatpush1.bf16.msra.mxu0 %v9196_v9  ;;  %6014 = vmatpush1.bf16.msra.mxu1 %v9199_v10  ;;  %v11859_v9 = vrot.slane %v11642_v0, %v9749_v49  ;;  %v9287_v10 = vld [vmem:[%s12458_s2 + $0x1600] ss:$16 sps:$4 sm:$0xff]   ;;  %v9298_v0 = vld [vmem:[%s12458_s2 + $0x162c] ss:$16 sps:$4 sm:$0xff]  }
 0x288   :  { %5482 = vmatprep.subr.bf16.mxu0 %v9204_v11  ;;  %6015 = vmatprep.subr.bf16.mxu1 %v9207_v12  ;;  %v9290_v11 = vld [vmem:[%s12458_s2 + $0x1608] ss:$16 sps:$4 sm:$0xff]   ;;  %v9295_v12 = vld [vmem:[%s12458_s2 + $0x1624] ss:$16 sps:$4 sm:$0xff]  }
 0x28b   :  { %5483 = vmatpush1.bf16.msra.mxu0 %v9202_v52  ;;  %6016 = vmatpush1.bf16.msra.mxu1 %v9205_v15  ;;  %v1028_v52 = vcombine.high %v11673_v8, %v11673_v8  ;;  %v9293_v15 = vld [vmem:[%s12458_s2 + $0x1620] ss:$16 sps:$4 sm:$0xff]   ;;  %v9301_v8 = vld [vmem:[%s12458_s2 + $0x1644] ss:$16 sps:$4 sm:$0xff]  }
 0x28c   :  { %5484 = vmatprep.subr.bf16.mxu0 %v9210_v16  ;;  %6017 = vmatprep.subr.bf16.mxu1 %v9213_v17  ;;  %v9296_v16 = vld [vmem:[%s12458_s2 + $0x1628] ss:$16 sps:$4 sm:$0xff]   ;;  %v9304_v17 = vld [vmem:[%s12458_s2 + $0x164c] ss:$16 sps:$4 sm:$0xff]  }
 0x28f   :  { %5485 = vmatpush1.bf16.msra.mxu0 %v9208_v18  ;;  %6018 = vmatpush1.bf16.msra.mxu1 %v9211_v19  ;;  %v9299_v18 = vld [vmem:[%s12458_s2 + $0x1640] ss:$16 sps:$4 sm:$0xff]   ;;  %v9302_v19 = vld [vmem:[%s12458_s2 + $0x1648] ss:$16 sps:$4 sm:$0xff]  }
 0x290   :  { %5486 = vmatprep.subr.bf16.mxu0 %v9216_v20  ;;  %6019 = vmatprep.subr.bf16.mxu1 %v9219_v22  ;;  %v9307_v20 = vld [vmem:[%s12458_s2 + $0x1664] ss:$16 sps:$4 sm:$0xff]   ;;  %v9310_v22 = vld [vmem:[%s12458_s2 + $0x166c] ss:$16 sps:$4 sm:$0xff]  }
 0x293   :  { %5487 = vmatpush1.bf16.msra.mxu0 %v9214_v23  ;;  %6020 = vmatpush1.bf16.msra.mxu1 %v9217_v24  ;;  %v9305_v23 = vld [vmem:[%s12458_s2 + $0x1660] ss:$16 sps:$4 sm:$0xff]   ;;  %v9308_v24 = vld [vmem:[%s12458_s2 + $0x1668] ss:$16 sps:$4 sm:$0xff]  }
 0x294   :  { %5488 = vmatprep.subr.bf16.mxu0 %v9222_v13  ;;  %6021 = vmatprep.subr.bf16.mxu1 %v9225_v27  ;;  %v9313_v13 = vld [vmem:[%s12458_s2 + $0x1684] ss:$16 sps:$4 sm:$0xff]   ;;  %v9316_v27 = vld [vmem:[%s12458_s2 + $0x168c] ss:$16 sps:$4 sm:$0xff]  }
 0x297   :  { %5489 = vmatpush1.bf16.msra.mxu0 %v9220_v28  ;;  %6022 = vmatpush1.bf16.msra.mxu1 %v9223_v29  ;;  %v9311_v28 = vld [vmem:[%s12458_s2 + $0x1680] ss:$16 sps:$4 sm:$0xff]   ;;  %v9314_v29 = vld [vmem:[%s12458_s2 + $0x1688] ss:$16 sps:$4 sm:$0xff]  }
 0x298   :  { %5490 = vmatprep.subr.bf16.mxu0 %v9228_v14  ;;  %6023 = vmatprep.subr.bf16.mxu1 %v9231_v30  ;;  %v9319_v14 = vld [vmem:[%s12458_s2 + $0x16a4] ss:$16 sps:$4 sm:$0xff]   ;;  %v9322_v30 = vld [vmem:[%s12458_s2 + $0x16ac] ss:$16 sps:$4 sm:$0xff]  }
 0x29b   :  { %5491 = vmatpush1.bf16.msra.mxu0 %v9226_v31  ;;  %6024 = vmatpush1.bf16.msra.mxu1 %v9229_v25  ;;  %v9317_v31 = vld [vmem:[%s12458_s2 + $0x16a0] ss:$16 sps:$4 sm:$0xff]   ;;  %v9320_v25 = vld [vmem:[%s12458_s2 + $0x16a8] ss:$16 sps:$4 sm:$0xff]  }
 0x29c   :  { %5492 = vmatprep.subr.bf16.mxu0 %v9234_v32  ;;  %6025 = vmatprep.subr.bf16.mxu1 %v9237_v33  ;;  %v9325_v32 = vld [vmem:[%s12458_s2 + $0x16c4] ss:$16 sps:$4 sm:$0xff]   ;;  %v9328_v33 = vld [vmem:[%s12458_s2 + $0x16cc] ss:$16 sps:$4 sm:$0xff]  }
 0x29f   :  { %5493 = vmatpush1.bf16.msra.mxu0 %v9232_v26  ;;  %6026 = vmatpush1.bf16.msra.mxu1 %v9235_v36  ;;  %v9323_v26 = vld [vmem:[%s12458_s2 + $0x16c0] ss:$16 sps:$4 sm:$0xff]   ;;  %v9326_v36 = vld [vmem:[%s12458_s2 + $0x16c8] ss:$16 sps:$4 sm:$0xff]  }
 0x2a0   :  { %5494 = vmatprep.subr.bf16.mxu0 %v9240_v37  ;;  %6027 = vmatprep.subr.bf16.mxu1 %v9243_v21  ;;  %v9331_v37 = vld [vmem:[%s12458_s2 + $0x16e4] ss:$16 sps:$4 sm:$0xff]   ;;  %v9334_v21 = vld [vmem:[%s12458_s2 + $0x16ec] ss:$16 sps:$4 sm:$0xff]  }
 0x2a3   :  { %5495 = vmatpush1.bf16.msra.mxu0 %v9238_v39  ;;  %6028 = vmatpush1.bf16.msra.mxu1 %v9241_v40  ;;  %v9329_v39 = vld [vmem:[%s12458_s2 + $0x16e0] ss:$16 sps:$4 sm:$0xff]   ;;  %v9332_v40 = vld [vmem:[%s12458_s2 + $0x16e8] ss:$16 sps:$4 sm:$0xff]  }
 0x2a4   :  { %5496 = vmatprep.subr.bf16.mxu0 %v9246_v41  ;;  %6029 = vmatprep.subr.bf16.mxu1 %v9249_v34  ;;  %v9337_v41 = vld [vmem:[%s12458_s2 + $0x1704] ss:$16 sps:$4 sm:$0xff]   ;;  %v9340_v34 = vld [vmem:[%s12458_s2 + $0x170c] ss:$16 sps:$4 sm:$0xff]  }
 0x2a7   :  { %5497 = vmatpush1.bf16.msra.mxu0 %v9244_v43  ;;  %6030 = vmatpush1.bf16.msra.mxu1 %v9247_v45  ;;  %v9335_v43 = vld [vmem:[%s12458_s2 + $0x1700] ss:$16 sps:$4 sm:$0xff]   ;;  %v9338_v45 = vld [vmem:[%s12458_s2 + $0x1708] ss:$16 sps:$4 sm:$0xff]  }
 0x2a8   :  { %5498 = vmatprep.subr.bf16.mxu0 %v9252_v46  ;;  %6031 = vmatprep.subr.bf16.mxu1 %v9255_v35  ;;  %v9343_v46 = vld [vmem:[%s12458_s2 + $0x1724] ss:$16 sps:$4 sm:$0xff]   ;;  %v9346_v35 = vld [vmem:[%s12458_s2 + $0x172c] ss:$16 sps:$4 sm:$0xff]  }
 0x2ab   :  { %5499 = vmatpush1.bf16.msra.mxu0 %v9250_v50  ;;  %6032 = vmatpush1.bf16.msra.mxu1 %v9253_v53  ;;  %v9341_v50 = vld [vmem:[%s12458_s2 + $0x1720] ss:$16 sps:$4 sm:$0xff]   ;;  %v9344_v53 = vld [vmem:[%s12458_s2 + $0x1728] ss:$16 sps:$4 sm:$0xff]  }
 0x2ac   :  { %5500 = vmatprep.subr.bf16.mxu0 %v9258_v38  ;;  %6033 = vmatprep.subr.bf16.mxu1 %v9261_v54  ;;  %v9349_v38 = vld [vmem:[%s12458_s2 + $0x1744] ss:$16 sps:$4 sm:$0xff]   ;;  %v9352_v54 = vld [vmem:[%s12458_s2 + $0x174c] ss:$16 sps:$4 sm:$0xff]  }
 0x2af   :  { %5501 = vmatpush1.bf16.msra.mxu0 %v9256_v55  ;;  %6034 = vmatpush1.bf16.msra.mxu1 %v9259_v56  ;;  %v9347_v55 = vld [vmem:[%s12458_s2 + $0x1740] ss:$16 sps:$4 sm:$0xff]   ;;  %v9350_v56 = vld [vmem:[%s12458_s2 + $0x1748] ss:$16 sps:$4 sm:$0xff]  }
 0x2b0   :  { %5502 = vmatprep.subr.bf16.mxu0 %v9264_v47  ;;  %6035 = vmatprep.subr.bf16.mxu1 %v9267_v57  ;;  %v9355_v47 = vld [vmem:[%s12458_s2 + $0x1764] ss:$16 sps:$4 sm:$0xff]   ;;  %v9358_v57 = vld [vmem:[%s12458_s2 + $0x176c] ss:$16 sps:$4 sm:$0xff]  }
 0x2b3   :  { %5503 = vmatpush1.bf16.msra.mxu0 %v9262_v58  ;;  %6036 = vmatpush1.bf16.msra.mxu1 %v9265_v59  ;;  %v9353_v58 = vld [vmem:[%s12458_s2 + $0x1760] ss:$16 sps:$4 sm:$0xff]   ;;  %v9356_v59 = vld [vmem:[%s12458_s2 + $0x1768] ss:$16 sps:$4 sm:$0xff]  }
 0x2b4   :  { %5504 = vmatprep.subr.bf16.mxu0 %v9270_v48  ;;  %6037 = vmatprep.subr.bf16.mxu1 %v9273_v61  ;;  %v9361_v48 = vld [vmem:[%s12458_s2 + $0x1784] ss:$16 sps:$4 sm:$0xff]   ;;  %v9364_v61 = vld [vmem:[%s12458_s2 + $0x178c] ss:$16 sps:$4 sm:$0xff]  }
 0x2b7   :  { %5505 = vmatpush1.bf16.msra.mxu0 %v9268_v63  ;;  %6038 = vmatpush1.bf16.msra.mxu1 %v9271_v44  ;;  %v9359_v63 = vld [vmem:[%s12458_s2 + $0x1780] ss:$16 sps:$4 sm:$0xff]   ;;  %v9362_v44 = vld [vmem:[%s12458_s2 + $0x1788] ss:$16 sps:$4 sm:$0xff]  }
 0x2b8   :  { %5506 = vmatprep.subr.bf16.mxu0 %v9276_v1  ;;  %6039 = vmatprep.subr.bf16.mxu1 %v9279_v51  ;;  %v9367_v1 = vld [vmem:[%s12458_s2 + $0x17a4] ss:$16 sps:$4 sm:$0xff]   ;;  %v9370_v51 = vld [vmem:[%s12458_s2 + $0x17ac] ss:$16 sps:$4 sm:$0xff]  }
 0x2bb   :  { %5507 = vmatpush1.bf16.msra.mxu0 %v9274_v2  ;;  %6040 = vmatpush1.bf16.msra.mxu1 %v9277_v3  ;;  %v9365_v2 = vld [vmem:[%s12458_s2 + $0x17a0] ss:$16 sps:$4 sm:$0xff]   ;;  %v9368_v3 = vld [vmem:[%s12458_s2 + $0x17a8] ss:$16 sps:$4 sm:$0xff]  }
 0x2bc   :  { %5508 = vmatprep.subr.bf16.mxu0 %v9282_v4  ;;  %6041 = vmatprep.subr.bf16.mxu1 %v9285_v60  ;;  %v9373_v4 = vld [vmem:[%s12458_s2 + $0x17c4] ss:$16 sps:$4 sm:$0xff]   ;;  %v9376_v60 = vld [vmem:[%s12458_s2 + $0x17cc] ss:$16 sps:$4 sm:$0xff]  }
 0x2bf   :  { %5509 = vmatpush1.bf16.msra.mxu0 %v9280_v5  ;;  %6042 = vmatpush1.bf16.msra.mxu1 %v9283_v6  ;;  %v9371_v5 = vld [vmem:[%s12458_s2 + $0x17c0] ss:$16 sps:$4 sm:$0xff]   ;;  %v9374_v6 = vld [vmem:[%s12458_s2 + $0x17c8] ss:$16 sps:$4 sm:$0xff]  }
 0x2c0   :  { %5519 = vmatprep.subr.bf16.mxu0 %v9289_v7  ;;  %6052 = vmatprep.subr.bf16.mxu1 %v9292_v62  ;;  %v9379_v7 = vld [vmem:[%s12458_s2 + $0x17e4] ss:$16 sps:$4 sm:$0xff]   ;;  %v9382_v62 = vld [vmem:[%s12458_s2 + $0x17ec] ss:$16 sps:$4 sm:$0xff]  }
 0x2c2   :  { %5511 = vmatmul.mubr.bf16.vlgmr.msra.gmra.mrb[0].mxu0 %v11859_v9  ;;  %6044 = vmatmul.mubr.bf16.vlgmr.msra.gmra.mrb[0].mxu1 %v11859_v9 }
 0x2c3   :  { %5520 = vmatpush1.bf16.msra.mxu0 %v9287_v10  ;;  %6053 = vmatpush1.bf16.msra.mxu1 %v9290_v11  ;;  %v9377_v10 = vld [vmem:[%s12458_s2 + $0x17e0] ss:$16 sps:$4 sm:$0xff]   ;;  %v9380_v11 = vld [vmem:[%s12458_s2 + $0x17e8] ss:$16 sps:$4 sm:$0xff]  }
 0x2c4   :  { %5521 = vmatprep.subr.bf16.mxu0 %v9295_v12  ;;  %6054 = vmatprep.subr.bf16.mxu1 %v9298_v0  ;;  %v9385_v12 = vld [vmem:[%s12458_s2 + $0x1804] ss:$16 sps:$4 sm:$0xff]   ;;  %v9388_v0 = vld [vmem:[%s12458_s2 + $0x180c] ss:$16 sps:$4 sm:$0xff]  }
 0x2c5   :  { %5551 = vmatprep.mubr.bf16.mxu0 %v1028_v52  ;;  %6084 = vmatprep.mubr.bf16.mxu1 %v1028_v52  ;;  %v1026_v52 = vcombine.high %v11859_v9, %v11859_v9  ;;  %v9394_v9 = vld [vmem:[%s12458_s2 + $0x182c] ss:$16 sps:$4 sm:$0xff]  }
 0x2c7   :  { %5522 = vmatpush1.bf16.msra.mxu0 %v9293_v15  ;;  %6055 = vmatpush1.bf16.msra.mxu1 %v9296_v16  ;;  %v9383_v15 = vld [vmem:[%s12458_s2 + $0x1800] ss:$16 sps:$4 sm:$0xff]   ;;  %v9386_v16 = vld [vmem:[%s12458_s2 + $0x1808] ss:$16 sps:$4 sm:$0xff]  }
 0x2c8   :  { %5523 = vmatprep.subr.bf16.mxu0 %v9301_v8  ;;  %6056 = vmatprep.subr.bf16.mxu1 %v9304_v17  ;;  %v9391_v8 = vld [vmem:[%s12458_s2 + $0x1824] ss:$16 sps:$4 sm:$0xff]   ;;  %v9389_v17 = vld [vmem:[%s12458_s2 + $0x1820] ss:$16 sps:$4 sm:$0xff]  }
 0x2cb   :  { %5524 = vmatpush1.bf16.msra.mxu0 %v9299_v18  ;;  %6057 = vmatpush1.bf16.msra.mxu1 %v9302_v19  ;;  %v9392_v18 = vld [vmem:[%s12458_s2 + $0x1828] ss:$16 sps:$4 sm:$0xff]   ;;  %v9397_v19 = vld [vmem:[%s12458_s2 + $0x1844] ss:$16 sps:$4 sm:$0xff]  }
 0x2cc   :  { %5525 = vmatprep.subr.bf16.mxu0 %v9307_v20  ;;  %6058 = vmatprep.subr.bf16.mxu1 %v9310_v22  ;;  %v9400_v20 = vld [vmem:[%s12458_s2 + $0x184c] ss:$16 sps:$4 sm:$0xff]   ;;  %v9530_v22 = vmov 0  }
 0x2cf   :  { %5526 = vmatpush1.bf16.msra.mxu0 %v9305_v23  ;;  %6059 = vmatpush1.bf16.msra.mxu1 %v9308_v24  ;;  %v9395_v23 = vld [vmem:[%s12458_s2 + $0x1840] ss:$16 sps:$4 sm:$0xff]   ;;  %v9398_v24 = vld [vmem:[%s12458_s2 + $0x1848] ss:$16 sps:$4 sm:$0xff]  }
 0x2d0   :  { %5527 = vmatprep.subr.bf16.mxu0 %v9313_v13  ;;  %6060 = vmatprep.subr.bf16.mxu1 %v9316_v27  ;;  %v9403_v13 = vld [vmem:[%s12458_s2 + $0x1864] ss:$16 sps:$4 sm:$0xff]   ;;  %v9406_v27 = vld [vmem:[%s12458_s2 + $0x186c] ss:$16 sps:$4 sm:$0xff]  }
 0x2d3   :  { %5528 = vmatpush1.bf16.msra.mxu0 %v9311_v28  ;;  %6061 = vmatpush1.bf16.msra.mxu1 %v9314_v29  ;;  %v9401_v28 = vld [vmem:[%s12458_s2 + $0x1860] ss:$16 sps:$4 sm:$0xff]   ;;  %v9404_v29 = vld [vmem:[%s12458_s2 + $0x1868] ss:$16 sps:$4 sm:$0xff]  }
 0x2d4   :  { %5529 = vmatprep.subr.bf16.mxu0 %v9319_v14  ;;  %6062 = vmatprep.subr.bf16.mxu1 %v9322_v30  ;;  %v9409_v14 = vld [vmem:[%s12458_s2 + $0x1884] ss:$16 sps:$4 sm:$0xff]   ;;  %v9412_v30 = vld [vmem:[%s12458_s2 + $0x188c] ss:$16 sps:$4 sm:$0xff]  }
 0x2d7   :  { %5530 = vmatpush1.bf16.msra.mxu0 %v9317_v31  ;;  %6063 = vmatpush1.bf16.msra.mxu1 %v9320_v25  ;;  %v9407_v31 = vld [vmem:[%s12458_s2 + $0x1880] ss:$16 sps:$4 sm:$0xff]   ;;  %v9410_v25 = vld [vmem:[%s12458_s2 + $0x1888] ss:$16 sps:$4 sm:$0xff]  }
 0x2d8   :  { %5531 = vmatprep.subr.bf16.mxu0 %v9325_v32  ;;  %6064 = vmatprep.subr.bf16.mxu1 %v9328_v33  ;;  %v9415_v32 = vld [vmem:[%s12458_s2 + $0x18a4] ss:$16 sps:$4 sm:$0xff]   ;;  %v9418_v33 = vld [vmem:[%s12458_s2 + $0x18ac] ss:$16 sps:$4 sm:$0xff]  }
 0x2db   :  { %5532 = vmatpush1.bf16.msra.mxu0 %v9323_v26  ;;  %6065 = vmatpush1.bf16.msra.mxu1 %v9326_v36  ;;  %v9413_v26 = vld [vmem:[%s12458_s2 + $0x18a0] ss:$16 sps:$4 sm:$0xff]   ;;  %v9416_v36 = vld [vmem:[%s12458_s2 + $0x18a8] ss:$16 sps:$4 sm:$0xff]  }
 0x2dc   :  { %5533 = vmatprep.subr.bf16.mxu0 %v9331_v37  ;;  %6066 = vmatprep.subr.bf16.mxu1 %v9334_v21  ;;  %v9421_v37 = vld [vmem:[%s12458_s2 + $0x18c4] ss:$16 sps:$4 sm:$0xff]   ;;  %v9424_v21 = vld [vmem:[%s12458_s2 + $0x18cc] ss:$16 sps:$4 sm:$0xff]  }
 0x2df   :  { %5534 = vmatpush1.bf16.msra.mxu0 %v9329_v39  ;;  %6067 = vmatpush1.bf16.msra.mxu1 %v9332_v40  ;;  %v9419_v39 = vld [vmem:[%s12458_s2 + $0x18c0] ss:$16 sps:$4 sm:$0xff]   ;;  %v9422_v40 = vld [vmem:[%s12458_s2 + $0x18c8] ss:$16 sps:$4 sm:$0xff]  }
 0x2e0   :  { %5535 = vmatprep.subr.bf16.mxu0 %v9337_v41  ;;  %6068 = vmatprep.subr.bf16.mxu1 %v9340_v34  ;;  %v9427_v41 = vld [vmem:[%s12458_s2 + $0x18e4] ss:$16 sps:$4 sm:$0xff]   ;;  %v9430_v34 = vld [vmem:[%s12458_s2 + $0x18ec] ss:$16 sps:$4 sm:$0xff]  }
 0x2e3   :  { %5536 = vmatpush1.bf16.msra.mxu0 %v9335_v43  ;;  %6069 = vmatpush1.bf16.msra.mxu1 %v9338_v45  ;;  %v9425_v43 = vld [vmem:[%s12458_s2 + $0x18e0] ss:$16 sps:$4 sm:$0xff]   ;;  %v9428_v45 = vld [vmem:[%s12458_s2 + $0x18e8] ss:$16 sps:$4 sm:$0xff]  }
 0x2e4   :  { %5537 = vmatprep.subr.bf16.mxu0 %v9343_v46  ;;  %6070 = vmatprep.subr.bf16.mxu1 %v9346_v35  ;;  %v7056_v46 = vld.sshfl [vmem:[%s12456_s0 + $0x18] sm:$0x1 pattern:$0x75316420]  ;;  %v9431_v35 = vld [vmem:[%s12460_s4 + $0x40] sm:$0xff]  }
 0x2e7   :  { %5538 = vmatpush1.bf16.msra.mxu0 %v9341_v50  ;;  %6071 = vmatpush1.bf16.msra.mxu1 %v9344_v53  ;;  %v9432_v50 = vld [vmem:[%s12460_s4 + $0xc0] sm:$0xff]   ;;  %v1042_v53 = vrot.slane %v7056_v46, %v9749_v49  ;;  %v9436_v49 = vld [vmem:[%s12460_s4 + $0xc8] sm:$0xff]  }
 0x2e8   :  { %5539 = vmatprep.subr.bf16.mxu0 %v9349_v38  ;;  %6072 = vmatprep.subr.bf16.mxu1 %v9352_v54  ;;  %v9433_v38 = vld [vmem:[%s12460_s4] sm:$0xff]  }
 0x2e9   :  { %v9434_v54 = vld [vmem:[%s12460_s4 + $0x80] sm:$0xff]  }
 0x2eb   :  { %5540 = vmatpush1.bf16.msra.mxu0 %v9347_v55  ;;  %6073 = vmatpush1.bf16.msra.mxu1 %v9350_v56  ;;  %v9435_v55 = vld [vmem:[%s12460_s4 + $0x48] sm:$0xff]  }
 0x2ec   :  { %5541 = vmatprep.subr.bf16.mxu0 %v9355_v47  ;;  %6074 = vmatprep.subr.bf16.mxu1 %v9358_v57  ;;  %v9437_v56 = vld [vmem:[%s12460_s4 + $0x8] sm:$0xff]   ;;  %v9439_v57 = vld [vmem:[%s12460_s4 + $0x50] sm:$0xff]  }
 0x2ed   :  { %v9438_v47 = vld [vmem:[%s12460_s4 + $0x88] sm:$0xff]  }
 0x2ef   :  { %5542 = vmatpush1.bf16.msra.mxu0 %v9353_v58  ;;  %6075 = vmatpush1.bf16.msra.mxu1 %v9356_v59  ;;  %v9440_v58 = vld [vmem:[%s12460_s4 + $0xd0] sm:$0xff]  }
 0x2f0   :  { %5543 = vmatprep.subr.bf16.mxu0 %v9361_v48  ;;  %6076 = vmatprep.subr.bf16.mxu1 %v9364_v61  ;;  %v9441_v59 = vld [vmem:[%s12460_s4 + $0x10] sm:$0xff]   ;;  %v9443_v61 = vld [vmem:[%s12460_s4 + $0x58] sm:$0xff]  }
 0x2f1   :  { %v9442_v48 = vld [vmem:[%s12460_s4 + $0x90] sm:$0xff]  }
 0x2f3   :  { %5544 = vmatpush1.bf16.msra.mxu0 %v9359_v63  ;;  %6077 = vmatpush1.bf16.msra.mxu1 %v9362_v44  ;;  %v9444_v63 = vld [vmem:[%s12460_s4 + $0xd8] sm:$0xff]  }
 0x2f4   :  { %5545 = vmatprep.subr.bf16.mxu0 %v9367_v1  ;;  %6078 = vmatprep.subr.bf16.mxu1 %v9370_v51  ;;  %v9445_v44 = vld [vmem:[%s12460_s4 + $0x18] sm:$0xff]   ;;  %v9447_v51 = vld [vmem:[%s12460_s4 + $0x60] sm:$0xff]  }
 0x2f5   :  { %v9446_v1 = vld [vmem:[%s12460_s4 + $0x98] sm:$0xff]  }
 0x2f7   :  { %5546 = vmatpush1.bf16.msra.mxu0 %v9365_v2  ;;  %6079 = vmatpush1.bf16.msra.mxu1 %v9368_v3  ;;  %v9448_v2 = vld [vmem:[%s12460_s4 + $0xe0] sm:$0xff]  }
 0x2f8   :  { %5547 = vmatprep.subr.bf16.mxu0 %v9373_v4  ;;  %6080 = vmatprep.subr.bf16.mxu1 %v9376_v60  ;;  %v9449_v3 = vld [vmem:[%s12460_s4 + $0x20] sm:$0xff]   ;;  %v9451_v60 = vld [vmem:[%s12460_s4 + $0x68] sm:$0xff]  }
 0x2f9   :  { %v9450_v4 = vld [vmem:[%s12460_s4 + $0xa0] sm:$0xff]  }
 0x2fb   :  { %5548 = vmatpush1.bf16.msra.mxu0 %v9371_v5  ;;  %6081 = vmatpush1.bf16.msra.mxu1 %v9374_v6  ;;  %v9452_v5 = vld [vmem:[%s12460_s4 + $0xe8] sm:$0xff]  }
 0x2fc   :  { %5549 = vmatprep.subr.bf16.mxu0 %v9379_v7  ;;  %6082 = vmatprep.subr.bf16.mxu1 %v9382_v62  ;;  %v9453_v6 = vld [vmem:[%s12460_s4 + $0x28] sm:$0xff]   ;;  %v9455_v62 = vld [vmem:[%s12460_s4 + $0x70] sm:$0xff]  }
 0x2fd   :  { %v9454_v7 = vld [vmem:[%s12460_s4 + $0xa8] sm:$0xff]  }
 0x2ff   :  { %5550 = vmatpush1.bf16.msra.mxu0 %v9377_v10  ;;  %6083 = vmatpush1.bf16.msra.mxu1 %v9380_v11  ;;  %v9456_v10 = vld [vmem:[%s12460_s4 + $0xf0] sm:$0xff]  }
 0x300   :  { %5560 = vmatprep.subr.bf16.mxu0 %v9385_v12  ;;  %6093 = vmatprep.subr.bf16.mxu1 %v9388_v0  ;;  %v9457_v11 = vld [vmem:[%s12460_s4 + $0x30] sm:$0xff]   ;;  %v9459_v0 = vld [vmem:[%s12460_s4 + $0x78] sm:$0xff]  }
 0x301   :  { %v9458_v12 = vld [vmem:[%s12460_s4 + $0xb0] sm:$0xff]  }
 0x302   :  { %5552 = vmatmul.mubr.bf16.vlgmr.msra.gmra.mrb[0].mxu0 %v1026_v52  ;;  %6085 = vmatmul.mubr.bf16.vlgmr.msra.gmra.mrb[0].mxu1 %v1026_v52  ;;  %v9460_v52 = vld [vmem:[%s12460_s4 + $0xf8] sm:$0xff]  }
 0x303   :  { %5561 = vmatpush1.bf16.msra.mxu0 %v9383_v15  ;;  %6094 = vmatpush1.bf16.msra.mxu1 %v9386_v16  ;;  %v9461_v15 = vld [vmem:[%s12460_s4 + $0x38] sm:$0xff]  }
 0x304   :  { %5562 = vmatprep.subr.bf16.mxu0 %v9391_v8  ;;  %6095 = vmatprep.subr.bf16.mxu1 %v9394_v9  ;;  %v9462_v16 = vld [vmem:[%s12460_s4 + $0xb8] sm:$0xff]   ;;  %v9531_v8 = vmov 0.0   ;;  %v860_v9 = vsub.s32 0, %v9731_v42 }
 0x305   :  { %5592 = vmatprep.mubr.bf16.mxu0 %v9530_v22  ;;  %6125 = vmatprep.mubr.bf16.mxu1 %v9530_v22 }
 0x307   :  { %5563 = vmatpush1.bf16.msra.mxu0 %v9389_v17  ;;  %6096 = vmatpush1.bf16.msra.mxu1 %v9392_v18  ;;  %v868_v17 = vsub.s32 2, %v9731_v42  ;;  %v856_v18 = vld [vmem:[%s12459_s3] sm:$0xf] }
 0x308   :  { %5564 = vmatprep.subr.bf16.mxu0 %v9397_v19  ;;  %6097 = vmatprep.subr.bf16.mxu1 %v9400_v20  ;;  %v864_v19 = vsub.s32 1, %v9731_v42  ;;  %v872_v20 = vsub.s32 3, %v9731_v42  ;;  %v861_v22 = vrot.slane %v856_v18, %v860_v9  ;;  %v9481_v9 = vld [vmem:[%s12466_s10 + $0x10] sm:$0xff]  }
 0x30b   :  { %5565 = vmatpush1.bf16.msra.mxu0 %v9395_v23  ;;  %6098 = vmatpush1.bf16.msra.mxu1 %v9398_v24  ;;  %v869_v23 = vrot.slane %v856_v18, %v868_v17  ;;  %v865_v24 = vrot.slane %v856_v18, %v864_v19  ;;  %v9482_v17 = vld [vmem:[%s12466_s10 + $0x18] sm:$0xff]   ;;  %v9484_v19 = vld [vmem:[%s12466_s10 + $0x28] sm:$0xff]  }
 0x30c   :  { %5566 = vmatprep.subr.bf16.mxu0 %v9403_v13  ;;  %6099 = vmatprep.subr.bf16.mxu1 %v9406_v27  ;;  %v873_v13 = vrot.slane %v856_v18, %v872_v20  ;;  %v9483_v18 = vld [vmem:[%s12466_s10 + $0x20] sm:$0xff]  }
 0x30f   :  { %5567 = vmatpush1.bf16.msra.mxu0 %v9401_v28  ;;  %6100 = vmatpush1.bf16.msra.mxu1 %v9404_v29 }
 0x310   :  { %5568 = vmatprep.subr.bf16.mxu0 %v9409_v14  ;;  %6101 = vmatprep.subr.bf16.mxu1 %v9412_v30 }
 0x313   :  { %5569 = vmatpush1.bf16.msra.mxu0 %v9407_v31  ;;  %6102 = vmatpush1.bf16.msra.mxu1 %v9410_v25 }
 0x314   :  { %5570 = vmatprep.subr.bf16.mxu0 %v9415_v32  ;;  %6103 = vmatprep.subr.bf16.mxu1 %v9418_v33 }
 0x317   :  { %5571 = vmatpush1.bf16.msra.mxu0 %v9413_v26  ;;  %6104 = vmatpush1.bf16.msra.mxu1 %v9416_v36 }
 0x318   :  { %5572 = vmatprep.subr.bf16.mxu0 %v9421_v37  ;;  %6105 = vmatprep.subr.bf16.mxu1 %v9424_v21 }
 0x31b   :  { %5573 = vmatpush1.bf16.msra.mxu0 %v9419_v39  ;;  %6106 = vmatpush1.bf16.msra.mxu1 %v9422_v40 }
 0x31c   :  { %5574 = vmatprep.subr.bf16.mxu0 %v9427_v41  ;;  %6107 = vmatprep.subr.bf16.mxu1 %v9430_v34 }
 0x31f   :  { %5575 = vmatpush1.bf16.msra.mxu0 %v9425_v43  ;;  %6108 = vmatpush1.bf16.msra.mxu1 %v9428_v45  ;;  %v9463_v43 = vld [vmem:[%s12464_s8] sm:$0xff]  }
 0x320   :  { %7934 = vmatprep.subr.bf16.mxu0 %v9431_v35  ;;  %7956 = vmatprep.subr.bf16.mxu1 %v9432_v50  ;;  %v9471_v35 = vld [vmem:[%s12462_s6] sm:$0xff]   ;;  %v9464_v50 = vld [vmem:[%s12464_s8 + $0x8] sm:$0xff]  }
 0x322   :  { %5593 = vmatmul.mubr.bf16.vlgmr.msra.gmra.mrb[0].mxu0 %v1042_v53  ;;  %6126 = vmatmul.mubr.bf16.vlgmr.msra.gmra.mrb[0].mxu1 %v1042_v53  ;;  %v9472_v53 = vld [vmem:[%s12462_s6 + $0x8] sm:$0xff]  }
 0x323   :  { %7935 = vmatpush3.bf16.msra.mxu0 %v9433_v38  ;;  %7957 = vmatpush3.bf16.msra.mxu1 %v9434_v54  ;;  %v9465_v38 = vld [vmem:[%s12464_s8 + $0x10] sm:$0xff]  }
 0x324   :  { %7936 = vmatprep.subr.bf16.mxu0 %v9435_v55  ;;  %7958 = vmatprep.subr.bf16.mxu1 %v9436_v49  ;;  %v9473_v54 = vld [vmem:[%s12462_s6 + $0x10] sm:$0xff]   ;;  %v9466_v55 = vld [vmem:[%s12464_s8 + $0x18] sm:$0xff]  }
 0x325   :  { %v9474_v49 = vld [vmem:[%s12462_s6 + $0x18] sm:$0xff]  }
 0x327   :  { %7937 = vmatpush3.bf16.msra.mxu0 %v9437_v56  ;;  %7959 = vmatpush3.bf16.msra.mxu1 %v9438_v47  ;;  %v9467_v56 = vld [vmem:[%s12464_s8 + $0x20] sm:$0xff]  }
 0x328   :  { %7938 = vmatprep.subr.bf16.mxu0 %v9439_v57  ;;  %7960 = vmatprep.subr.bf16.mxu1 %v9440_v58  ;;  %v9475_v47 = vld [vmem:[%s12462_s6 + $0x20] sm:$0xff]   ;;  %v9468_v57 = vld [vmem:[%s12464_s8 + $0x28] sm:$0xff]   ;;  %v9469_v58 = vld [vmem:[%s12464_s8 + $0x30] sm:$0xff]  }
 0x32b   :  { %7939 = vmatpush3.bf16.msra.mxu0 %v9441_v59  ;;  %7961 = vmatpush3.bf16.msra.mxu1 %v9442_v48  ;;  %v9470_v59 = vld [vmem:[%s12464_s8 + $0x38] sm:$0xff]   ;;  %v6599_v48 = vld [vmem:[%s12457_s1] sm:$0x1] }
 0x32c   :  { %7940 = vmatprep.subr.bf16.mxu0 %v9443_v61  ;;  %7962 = vmatprep.subr.bf16.mxu1 %v9444_v63  ;;  %v9476_v61 = vld [vmem:[%s12462_s6 + $0x28] sm:$0xff]   ;;  %v9477_v63 = vld [vmem:[%s12462_s6 + $0x30] sm:$0xff]  }
 0x32f   :  { %7941 = vmatpush3.bf16.msra.mxu0 %v9445_v44  ;;  %7963 = vmatpush3.bf16.msra.mxu1 %v9446_v1  ;;  %v9478_v44 = vld [vmem:[%s12462_s6 + $0x38] sm:$0xff]  }
 0x330   :  { %7942 = vmatprep.subr.bf16.mxu0 %v9447_v51  ;;  %7964 = vmatprep.subr.bf16.mxu1 %v9448_v2  ;;  %v7857_v2 = vld [vmem:[%s12461_s5] ss:$0 sm:$0xff]  ;;  %s9533_s5 = smov [#allocation2]  }
 0x331   :  { %s7048_s19 = sshll.u32 %s9533_s5, 4  ;;  %s7049_s19 = int_to_ptr.vmem [resolvable:$true] %s7048_s19 }
 0x332   :  { %p9510_p1 = scmp.lt.s32.totalorder %s7049_s19, %s7049_s19 }
 0x333   :  { %7943 = vmatpush3.bf16.msra.mxu0 %v9449_v3  ;;  %7965 = vmatpush3.bf16.msra.mxu1 %v9450_v4 }
 0x334   :  { %7944 = vmatprep.subr.bf16.mxu0 %v9451_v60  ;;  %7966 = vmatprep.subr.bf16.mxu1 %v9452_v5 }
 0x337   :  { %7945 = vmatpush3.bf16.msra.mxu0 %v9453_v6  ;;  %7967 = vmatpush3.bf16.msra.mxu1 %v9454_v7 }
 0x338   :  { %7946 = vmatprep.subr.bf16.mxu0 %v9455_v62  ;;  %7968 = vmatprep.subr.bf16.mxu1 %v9456_v10 }
 0x33b   :  { %7947 = vmatpush3.bf16.msra.mxu0 %v9457_v11  ;;  %7969 = vmatpush3.bf16.msra.mxu1 %v9458_v12 }
 0x33c   :  { %7948 = vmatprep.subr.bf16.mxu0 %v9459_v0  ;;  %7970 = vmatprep.subr.bf16.mxu1 %v9460_v52  ;;  %v9479_v52 = vld [vmem:[%s12466_s10] sm:$0xff]  }
 0x33f   :  { %7949 = vmatpush3.bf16.msra.mxu0 %v9461_v15  ;;  %7971 = vmatpush3.bf16.msra.mxu1 %v9462_v16  ;;  %v9480_v16 = vld [vmem:[%s12466_s10 + $0x8] sm:$0xff]  }
 0x340   :  { %8043 = vmatprep.subr.bf16.mxu1 %v9531_v8  ;;  %8023 = vmatprep.subr.bf16.mxu0 %v9531_v8 }
 0x3f5   :  { %v5594_v27 = vpop.f32.mrb[0].mxu0  ;;  %v6127_v28 = vpop.f32.mrb[0].mxu1 }
 0x3f6   :  { %v8123_v29 = vadd.f32 %v5594_v27, %v861_v22  ;;  %v8125_v14 = vadd.f32 %v6127_v28, %v869_v23  ;;  %v5596_v30 = vpop.f32.mrb[1].mxu0  ;;  %v6129_v31 = vpop.f32.mrb[1].mxu1  ;;  %v7899_v22 = vld [vmem:[%s12465_s9] ss:$0 sm:$0xff] }
 0x3f7   :  { %v8124_v25 = vadd.f32 %v5596_v30, %v865_v24  ;;  %v8126_v32 = vadd.f32 %v6129_v31, %v873_v13  ;;  %v5598_v33 = vpop.f32.mrb[2].mxu0  ;;  %v6131_v26 = vpop.f32.mrb[2].mxu1  ;;  %v9485_v24 = vld [vmem:[%s12466_s10 + $0x30] sm:$0xff]   ;;  %v9487_v30 = vld [vmem:[%s12468_s12] sm:$0xff]   ;;  %v9488_v31 = vld [vmem:[%s12468_s12 + $0x8] sm:$0xff]  }
 0x3f8   :  { %v6134_v36 = vmax.f32 %v8123_v29, 0.0  ;;  %v6136_v37 = vmax.f32 %v8125_v14, 0.0  ;;  %v5599_v21 = vpop.f32.mrb[3].mxu0  ;;  %v6132_v39 = vpop.f32.mrb[3].mxu1  ;;  %v9486_v29 = vld [vmem:[%s12466_s10 + $0x38] sm:$0xff]   ;;  %v9491_v33 = vld [vmem:[%s12468_s12 + $0x20] sm:$0xff]  }
 0x3f9   :  { %v6135_v40 = vmax.f32 %v8124_v25, 0.0  ;;  %v6137_v42 = vmax.f32 %v8126_v32, 0.0  ;;  %v9489_v25 = vld [vmem:[%s12468_s12 + $0x10] sm:$0xff]   ;;  %v9490_v32 = vld [vmem:[%s12468_s12 + $0x18] sm:$0xff]   ;;  %v9492_v26 = vld [vmem:[%s12468_s12 + $0x28] sm:$0xff]  }
 0x3fa   :  { %v6138_v45 = vpack.c.bf16 %v6134_v36, %v6134_v36  ;;  %v6140_v46 = vpack.c.bf16 %v6136_v37, %v6136_v37  ;;  %v9493_v36 = vld [vmem:[%s12468_s12 + $0x30] sm:$0xff]   ;;  %v9494_v37 = vld [vmem:[%s12468_s12 + $0x38] sm:$0xff]   ;;  %v9495_v21 = vld [vmem:[%s12469_s13] sm:$0xff]  }
 0x3fb   :  { %v6139_v41 = vpack.c.bf16 %v6135_v40, %v6135_v40  ;;  %v6141_v34 = vpack.c.bf16 %v6137_v42, %v6137_v42  ;;  %v9496_v39 = vld [vmem:[%s12469_s13 + $0x8] sm:$0xff]   ;;  %v9497_v40 = vld [vmem:[%s12469_s13 + $0x10] sm:$0xff]   ;;  %v9498_v42 = vld [vmem:[%s12469_s13 + $0x18] sm:$0xff]  }
 0x3fd   :  { %6437 = vmatprep.mubr.bf16.mxu0 %v6139_v41  ;;  %6477 = vmatprep.mubr.bf16.mxu1 %v6141_v34  ;;  %v9499_v41 = vld [vmem:[%s12469_s13 + $0x20] sm:$0xff]   ;;  %v9500_v34 = vld [vmem:[%s12469_s13 + $0x28] sm:$0xff]  }
 0x3fe   :  { %6438 = vmatmul.mubr.bf16.vlgmr.msra.gmra.mrb[4].mxu0 %v6138_v45  ;;  %6478 = vmatmul.mubr.bf16.vlgmr.msra.gmra.mrb[4].mxu1 %v6140_v46  ;;  %v9502_v45 = vld [vmem:[%s12469_s13 + $0x38] sm:$0xff]   ;;  %v7890_v46 = vld [vmem:[%s12463_s7] ss:$0 sm:$0xff] }
 0x3ff   :  { %8044 = vmatpush3.bf16.msra.mxu1 %v9463_v43  ;;  %8059 = vmatprep.mubr.msk.bf16.mxu1 %vm9532_vm0, %v9531_v8  ;;  %v9501_v43 = vld [vmem:[%s12469_s13 + $0x30] sm:$0xff]  }
 0x400   :  { %8045 = vmatprep.subr.bf16.mxu1 %v9531_v8  ;;  %8024 = vmatpush3.bf16.msra.mxu0 %v9471_v35 }
 0x401   :  { %8025 = vmatprep.subr.bf16.mxu0 %v9531_v8  ;;  %8039 = vmatprep.mubr.msk.bf16.mxu0 %vm9532_vm0, %v9531_v8 }
 0x403   :  { %8046 = vmatpush3.bf16.msra.mxu1 %v9464_v50 }
 0x404   :  { %8047 = vmatprep.subr.bf16.mxu1 %v9531_v8  ;;  %8026 = vmatpush3.bf16.msra.mxu0 %v9472_v53 }
 0x405   :  { %8027 = vmatprep.subr.bf16.mxu0 %v9531_v8 }
 0x407   :  { %8048 = vmatpush3.bf16.msra.mxu1 %v9465_v38 }
 0x408   :  { %8049 = vmatprep.subr.bf16.mxu1 %v9531_v8  ;;  %8028 = vmatpush3.bf16.msra.mxu0 %v9473_v54 }
 0x409   :  { %8029 = vmatprep.subr.bf16.mxu0 %v9531_v8 }
 0x40b   :  { %8050 = vmatpush3.bf16.msra.mxu1 %v9466_v55 }
 0x40c   :  { %8051 = vmatprep.subr.bf16.mxu1 %v9531_v8  ;;  %8030 = vmatpush3.bf16.msra.mxu0 %v9474_v49 }
 0x40d   :  { %8031 = vmatprep.subr.bf16.mxu0 %v9531_v8 }
 0x40f   :  { %8052 = vmatpush3.bf16.msra.mxu1 %v9467_v56 }
 0x410   :  { %8053 = vmatprep.subr.bf16.mxu1 %v9531_v8  ;;  %8032 = vmatpush3.bf16.msra.mxu0 %v9475_v47 }
 0x411   :  { %8033 = vmatprep.subr.bf16.mxu0 %v9531_v8 }
 0x413   :  { %8054 = vmatpush3.bf16.msra.mxu1 %v9468_v57 }
 0x414   :  { %8055 = vmatprep.subr.bf16.mxu1 %v9531_v8  ;;  %8034 = vmatpush3.bf16.msra.mxu0 %v9476_v61 }
 0x415   :  { %8035 = vmatprep.subr.bf16.mxu0 %v9531_v8 }
 0x417   :  { %8056 = vmatpush3.bf16.msra.mxu1 %v9469_v58 }
 0x418   :  { %8057 = vmatprep.subr.bf16.mxu1 %v9531_v8  ;;  %8036 = vmatpush3.bf16.msra.mxu0 %v9477_v63 }
 0x419   :  { %8037 = vmatprep.subr.bf16.mxu0 %v9531_v8 }
 0x41b   :  { %8058 = vmatpush3.bf16.msra.mxu1 %v9470_v59 }
 0x41c   :  { %8083 = vmatprep.subr.bf16.mxu1 %v9531_v8  ;;  %8038 = vmatpush3.bf16.msra.mxu0 %v9478_v44 }
 0x41d   :  { %8063 = vmatprep.subr.bf16.mxu0 %v9531_v8 }
 0x41e   :  { %8060 = vmatmul.mubr.bf16.vlgmr.msra.gmra.mrb[8].mxu1 %v6599_v48 }
 0x41f   :  { %8099 = vmatprep.mubr.msk.bf16.mxu1 %vm9532_vm0, %v9531_v8  ;;  %8084 = vmatpush3.bf16.msra.mxu1 %v9495_v21 }
 0x420   :  { %8085 = vmatprep.subr.bf16.mxu1 %v9531_v8 }
 0x423   :  { %8086 = vmatpush3.bf16.msra.mxu1 %v9496_v39 }
 0x424   :  { %8087 = vmatprep.subr.bf16.mxu1 %v9531_v8 }
 0x427   :  { %8088 = vmatpush3.bf16.msra.mxu1 %v9497_v40 }
 0x428   :  { %8089 = vmatprep.subr.bf16.mxu1 %v9531_v8 }
 0x42b   :  { %8090 = vmatpush3.bf16.msra.mxu1 %v9498_v42 }
 0x42c   :  { %8091 = vmatprep.subr.bf16.mxu1 %v9531_v8 }
 0x42f   :  { %8092 = vmatpush3.bf16.msra.mxu1 %v9499_v41 }
 0x430   :  { %8093 = vmatprep.subr.bf16.mxu1 %v9531_v8 }
 0x433   :  { %8094 = vmatpush3.bf16.msra.mxu1 %v9500_v34 }
 0x434   :  { %8095 = vmatprep.subr.bf16.mxu1 %v9531_v8 }
 0x437   :  { %8096 = vmatpush3.bf16.msra.mxu1 %v9501_v43 }
 0x438   :  { %8097 = vmatprep.subr.bf16.mxu1 %v9531_v8 }
 0x43b   :  { %8098 = vmatpush3.bf16.msra.mxu1 %v9502_v45 }
 0x4d1   :  { %v7950_v1 = vpop.f32.mrb[4].mxu0  ;;  %v7972_v51 = vpop.f32.mrb[4].mxu1 }
 0x4d2   :  { %v7951_v3 = vpop.f32.mrb[5].mxu0  ;;  %v7973_v4 = vpop.f32.mrb[5].mxu1 }
 0x4d3   :  { %v7952_v60 = vadd.f32 %v7951_v3, %v7950_v1  ;;  %v7974_v5 = vadd.f32 %v7973_v4, %v7972_v51  ;;  %v7953_v6 = vpop.f32.mrb[6].mxu0  ;;  %v7975_v7 = vpop.f32.mrb[6].mxu1  ;;  %v7933_v51 = vld [vmem:[%s12470_s14] ss:$0 sm:$0xff] }
 0x4d4   :  { %v7954_v62 = vpop.f32.mrb[7].mxu0  ;;  %v7976_v10 = vpop.f32.mrb[7].mxu1 }
 0x4d5   :  { %v6440_v11 = vadd.f32 %v7952_v60, %v7857_v2 }
 0x4d7   :  { %v6480_v12 = vadd.f32 %v7974_v5, %v6440_v11 }
 0x4d9   :  { %v6485_v0 = vmax.f32 %v6480_v12, 0.0 }
 0x4db   :  { %v6486_v15 = vpack.c.bf16 %v6485_v0, %v6485_v0 }
 0x4dd   :  { %8040 = vmatmul.mubr.bf16.vlgmr.msra.gmra.mrb[8].mxu0 %v6486_v15 }
 0x4de   :  { %8064 = vmatpush3.bf16.msra.mxu0 %v9479_v52  ;;  %8079 = vmatprep.mubr.msk.bf16.mxu0 %vm9532_vm0, %v9531_v8 }
 0x4df   :  { %8065 = vmatprep.subr.bf16.mxu0 %v9531_v8 }
 0x4e2   :  { %8066 = vmatpush3.bf16.msra.mxu0 %v9480_v16 }
 0x4e3   :  { %8067 = vmatprep.subr.bf16.mxu0 %v9531_v8 }
 0x4e6   :  { %8068 = vmatpush3.bf16.msra.mxu0 %v9481_v9 }
 0x4e7   :  { %8069 = vmatprep.subr.bf16.mxu0 %v9531_v8 }
 0x4ea   :  { %8070 = vmatpush3.bf16.msra.mxu0 %v9482_v17 }
 0x4eb   :  { %8071 = vmatprep.subr.bf16.mxu0 %v9531_v8 }
 0x4ee   :  { %8072 = vmatpush3.bf16.msra.mxu0 %v9483_v18 }
 0x4ef   :  { %8073 = vmatprep.subr.bf16.mxu0 %v9531_v8 }
 0x4f1   :  { %v6705_v20 = vpop.f32.mrb[8].mxu1 }
 0x4f2   :  { %8074 = vmatpush3.bf16.msra.mxu0 %v9484_v19  ;;  %v8061_v23 = vpop.f32.mrb[9].mxu1  ;;  %v6706_v28 = vadd.f32 %v7899_v22, %v6705_v20 }
 0x4f3   :  { %8075 = vmatprep.subr.bf16.mxu0 %v9531_v8  ;;  %v6708_v13 = vpop.f32.mrb[10].mxu1 }
 0x4f4   :  { %v8062_v27 = vpop.f32.mrb[11].mxu1  ;;  %v6711_v14 = vpack.c.bf16 %v6706_v28, %v6706_v28 }
 0x4f6   :  { %8076 = vmatpush3.bf16.msra.mxu0 %v9485_v24 }
 0x4f7   :  { %8077 = vmatprep.subr.bf16.mxu0 %v9531_v8 }
 0x4fa   :  { %8078 = vmatpush3.bf16.msra.mxu0 %v9486_v29 }
 0x4fb   :  { %8103 = vmatprep.subr.bf16.mxu0 %v9531_v8 }
 0x4fd   :  { %8080 = vmatmul.mubr.bf16.vlgmr.msra.gmra.mrb[12].mxu0 %v6711_v14 }
 0x4fe   :  { %8104 = vmatpush3.bf16.msra.mxu0 %v9487_v30  ;;  %8119 = vmatprep.mubr.msk.bf16.mxu0 %vm9532_vm0, %v9531_v8 }
 0x4ff   :  { %8105 = vmatprep.subr.bf16.mxu0 %v9531_v8 }
 0x502   :  { %8106 = vmatpush3.bf16.msra.mxu0 %v9488_v31 }
 0x503   :  { %8107 = vmatprep.subr.bf16.mxu0 %v9531_v8 }
 0x506   :  { %8108 = vmatpush3.bf16.msra.mxu0 %v9489_v25 }
 0x507   :  { %8109 = vmatprep.subr.bf16.mxu0 %v9531_v8 }
 0x50a   :  { %8110 = vmatpush3.bf16.msra.mxu0 %v9490_v32 }
 0x50b   :  { %8111 = vmatprep.subr.bf16.mxu0 %v9531_v8 }
 0x50e   :  { %8112 = vmatpush3.bf16.msra.mxu0 %v9491_v33 }
 0x50f   :  { %8113 = vmatprep.subr.bf16.mxu0 %v9531_v8 }
 0x512   :  { %8114 = vmatpush3.bf16.msra.mxu0 %v9492_v26 }
 0x513   :  { %8115 = vmatprep.subr.bf16.mxu0 %v9531_v8 }
 0x516   :  { %8116 = vmatpush3.bf16.msra.mxu0 %v9493_v36 }
 0x517   :  { %8117 = vmatprep.subr.bf16.mxu0 %v9531_v8  ;;  %v7908_v8 = vld [vmem:[%s12467_s11] ss:$0 sm:$0xff]  ;;  %s9505_s11 = scalar_lea.vmem %s7049_s19, 32 }
 0x518   :  { %p9506_p0 = scmp.ne.s32.totalorder %s7049_s19, %s9505_s11  ;;  %p9511_p2 = scmp.lt.s32.totalorder %s9505_s11, %s9505_s11 }
 0x51a   :  { %8118 = vmatpush3.bf16.msra.mxu0 %v9494_v37  ;;  %p9512_p3 = por %p9511_p2, %p9510_p1 }
 0x51c   :  { %p9513_p4 = pnand %p9512_p3, %p9506_p0 }
 0x5b0   :  { %v6592_v35 = vpop.f32.mrb[8].mxu0 }
 0x5b1   :  { %v6593_v50 = vadd.f32 %v7890_v46, %v6592_v35  ;;  %v8041_v53 = vpop.f32.mrb[9].mxu0 }
 0x5b2   :  { %v6595_v38 = vpop.f32.mrb[10].mxu0 }
 0x5b3   :  { %v6598_v54 = vpack.c.bf16 %v6593_v50, %v6593_v50  ;;  %v8042_v55 = vpop.f32.mrb[11].mxu0 }
 0x5b5   :  { %8120 = vmatmul.mubr.bf16.vlgmr.msra.gmra.mrb[16].mxu0 %v6598_v54 }
 0x5d0   :  { %v6817_v49 = vpop.f32.mrb[12].mxu0 }
 0x5d1   :  { %v6818_v56 = vadd.f32 %v7908_v8, %v6817_v49  ;;  %v8081_v47 = vpop.f32.mrb[13].mxu0 }
 0x5d2   :  { %v6820_v57 = vpop.f32.mrb[14].mxu0 }
 0x5d3   :  { %v6823_v58 = vpack.c.bf16 %v6818_v56, %v6818_v56  ;;  %v8082_v59 = vpop.f32.mrb[15].mxu0 }
 0x5d5   :  { %8100 = vmatmul.mubr.bf16.vlgmr.msra.gmra.mrb[12].mxu1 %v6823_v58 }
 0x688   :  { %v7026_v48 = vpop.f32.mrb[16].mxu0 }
 0x689   :  { %v8121_v61 = vpop.f32.mrb[17].mxu0 }
 0x68a   :  { %v7029_v63 = vpop.f32.mrb[18].mxu0 }
 0x68b   :  { %v8122_v44 = vpop.f32.mrb[19].mxu0 }
 0x6a8   :  { %v6938_v1 = vpop.f32.mrb[12].mxu1 }
 0x6a9   :  { %v7027_v2 = vadd.f32 %v7026_v48, %v6938_v1  ;;  %v8101_v3 = vpop.f32.mrb[13].mxu1 }
 0x6aa   :  { %v6941_v4 = vpop.f32.mrb[14].mxu1 }
 0x6ab   :  { %v7039_v60 = vadd.f32 %v7933_v51, %v7027_v2  ;;  %v8102_v5 = vpop.f32.mrb[15].mxu1 }
 0x6ad   :  { %7041 = vst.msk [vmem:[#allocation2] sm:$0x3] %vm7040_vm1, %v7039_v60 }
 0x6ae   :  { %9516 = shalt.err (!%p9513_p4)
}
 0x6af   :  { %s9517_s14 = scalar_lea.hbm %s12471_s15, 32 }
 0x6b0   :  { %p9518_p5 = scmp.ne.s32.totalorder %s12471_s15, %s9517_s14  ;;  %p9521_p6 = scmp.lt.u32.totalorder %s9517_s14, %s12471_s15 }
 0x6b2   :  { %p9523_p7 = pnand %p9521_p6, %p9518_p5 }
 0x6b4   :  { %9526 = shalt.err (!%p9523_p7)
}
 0x6b5   :  { %7051 = dma.vmem_to_hbm [thread:$0]  %s7049_s19, 32, %s12471_s15, [#allocation3]  }
 0x6b6   :  { %9527 = dma.done.wait [#allocation3], 32  }
 0x6b7   :  { %9528 = vsyncadd [#allocation3], 4294967264 }
 0x6b8   :  { %7055 = vsyncpa [#allocation3], 1 }

</bundles_post_ra>
